<compile_context>
chip_gen: v7x
topology: tpu7x:2x2x1
jax: 0.10.0
libtpu: 0.0.40
codegen_flags: <defaults>
</compile_context>

<pallas_src>
import functools

import jax
import jax.numpy as jnp
from jax.experimental import pallas as pl
from jax.experimental.pallas import tpu as pltpu


# ----------------------------------------------------------------------------
# Pallas kernel: one (batch-tile, output time-frame) of
#                conv3d  +  BN (scale*acc + bias, f32)  (+ ReLU)
# ----------------------------------------------------------------------------
def _conv_bn_kernel(x_ref, w_ref, s_ref, b_ref, o_ref, *acc_scratch,
                    kh, kw, stride, ho, wo, kt, relu):
    # x_ref: (nb, s*s, Hq, Wq, Cin)   phase-split padded input frame t = to + dt
    # w_ref: (kt, kh*kw*Cin, cp)      resident bf16 conv weights (all taps)
    # s_ref: (1, cp)                  BN scale  (gamma / sqrt(var+eps)), f32
    # b_ref: (1, cp)                  BN bias   (beta - mean*scale), f32
    # o_ref: (nb, Ho, Wo, cp)         output frame `to` (bf16, lane-dense cp)
    # acc_scratch[0]: (nb*Ho*Wo, cp)  f32 accumulator (only if kt > 1)
    dt = pl.program_id(2)
    nb = x_ref.shape[0]
    cin = x_ref.shape[-1]
    cp = o_ref.shape[-1]
    m = nb * ho * wo

    # Build the fused A operand (M, kh*kw*Cin): all spatial taps gathered
    # in-VMEM so the contraction runs as ONE MXU pass with K = kh*kw*Cin.
    taps = []
    for dh in range(kh):
        for dw in range(kw):
            phase = (dh % stride) * stride + (dw % stride)
            xs = x_ref[:, phase,
                       pl.ds(dh // stride, ho),
                       pl.ds(dw // stride, wo), :]          # (nb, Ho, Wo, Cin)
            taps.append(xs.reshape(m, cin))                  # bf16
    a = taps[0] if len(taps) == 1 else jnp.concatenate(taps, axis=-1)

    partial = jnp.dot(a, w_ref[dt], preferred_element_type=jnp.float32)

    if kt > 1:
        acc_ref = acc_scratch[0]

        @pl.when(dt == 0)
        def _():
            acc_ref[...] = jnp.zeros_like(acc_ref)

        acc = acc_ref[...] + partial
        acc_ref[...] = acc                  # carry partial sum to next dt
    else:
        acc = partial

    @pl.when(dt == kt - 1)
    def _():
        y = acc * s_ref[...] + b_ref[...]   # f32 BN epilogue
        if relu:
            y = jnp.maximum(y, 0.0)
        o_ref[...] = y.reshape(o_ref.shape).astype(o_ref.dtype)


# ----------------------------------------------------------------------------
# Wrapper glue (layout plumbing only)
# ----------------------------------------------------------------------------
def _phase_split(xp, s):
    """(N,Tp,Hp,Wp,C) -> (N,Tp,s*s,Hq,Wq,C) so stride-s taps become contiguous."""
    N, Tp, Hp, Wp, C = xp.shape
    Hq, Wq = -(-Hp // s), -(-Wp // s)
    xp = jnp.pad(xp, ((0, 0), (0, 0), (0, Hq * s - Hp), (0, Wq * s - Wp), (0, 0)))
    xp = xp.reshape(N, Tp, Hq, s, Wq, s, C)
    xp = jnp.transpose(xp, (0, 1, 3, 5, 2, 4, 6))
    return xp.reshape(N, Tp, s * s, Hq, Wq, C)


def conv3d_bn_relu(x_cl, w, scale, bias, *, stride, pad_t, pad_hw, relu, cp):
    """x_cl: (N,T,H,W,Cin) bf16 channels-last.  w: (Cout,Cin,kt,kh,kw) f32.
       Returns (N,To,Ho,Wo,cp) bf16 with output channels zero-padded to cp."""
    N, T, H, W, Cin = x_cl.shape
    Cout, Cin_w, kt, kh, kw = w.shape
    assert Cin_w == Cin

    Kc = kh * kw * Cin

    # Weights: (kt, kh*kw*Cin, cp) bf16 (tap-major, Cin-minor along K so it
    # matches the in-kernel concat ordering).  BN stays in the f32 epilogue.
    wf = jnp.transpose(w.astype(jnp.float32), (2, 3, 4, 1, 0))   # (kt,kh,kw,Cin,Cout)
    wf = wf.reshape(kt, Kc, Cout)
    wf = jnp.pad(wf, ((0, 0), (0, 0), (0, cp - Cout))).astype(jnp.bfloat16)
    sp = jnp.pad(scale.astype(jnp.float32), (0, cp - Cout)).reshape(1, cp)
    bp = jnp.pad(bias.astype(jnp.float32), (0, cp - Cout)).reshape(1, cp)

    # Zero padding (time + spatial), then stride phase-split (skipped for s=1).
    xp = jnp.pad(x_cl, ((0, 0), (pad_t, pad_t), (pad_hw, pad_hw),
                        (pad_hw, pad_hw), (0, 0)))
    Tp, Hp, Wp = T + 2 * pad_t, H + 2 * pad_hw, W + 2 * pad_hw
    To = Tp - kt + 1                               # temporal stride is always 1
    Ho = (Hp - kh) // stride + 1
    Wo = (Wp - kw) // stride + 1
    if stride == 1:
        xs = xp[:, :, None]                        # (N, Tp, 1, Hp, Wp, Cin)
    else:
        xs = _phase_split(xp, stride)              # (N, Tp, s*s, Hq, Wq, Cin)
    P, Hq, Wq = xs.shape[2], xs.shape[3], xs.shape[4]

    # ---- batch tiling so the per-step VMEM working set stays bounded -------
    per_n = (2 * P * Hq * Wq * Cin * 2             # x block (double-buffered bf16)
             + 2 * Ho * Wo * cp * 2                # out block (double-buffered bf16)
             + (Ho * Wo * cp * 4 if kt > 1 else 0)  # f32 accumulator
             + Ho * Wo * (Kc * 2 + cp * 4))        # in-kernel A operand + f32 partial
    w_bytes = 2 * kt * Kc * cp * 2                 # resident weights (+1 spare buf)
    budget = 20 * 1024 * 1024
    nb = 1
    for cand in range(N, 0, -1):
        if N % cand == 0 and (w_bytes + cand * per_n) <= budget:
            nb = cand
            break
    need = w_bytes + nb * per_n
    vmem_limit = None
    if need > 30 * 1024 * 1024:
        vmem_limit = min(int(need * 5 // 4), 96 * 1024 * 1024)

    kernel = functools.partial(_conv_bn_kernel, kh=kh, kw=kw, stride=stride,
                               ho=Ho, wo=Wo, kt=kt, relu=relu)
    scratch = [] if kt == 1 else [pltpu.VMEM((nb * Ho * Wo, cp), jnp.float32)]

    flops = 2 * N * To * Ho * Wo * cp * kt * Kc
    bytes_accessed = (xs.size * 2 + wf.size * 2 + (sp.size + bp.size) * 4
                      + N * To * Ho * Wo * cp * 2)

    return pl.pallas_call(
        kernel,
        out_shape=jax.ShapeDtypeStruct((N, To, Ho, Wo, cp), jnp.bfloat16),
        grid_spec=pltpu.PrefetchScalarGridSpec(
            num_scalar_prefetch=0,
            grid=(N // nb, To, kt),                # kt = reduction axis, last
            in_specs=[
                # one phase-split input frame per step, one batch tile
                pl.BlockSpec((nb, None, P, Hq, Wq, Cin),
                             lambda n, t, d: (n, t + d, 0, 0, 0, 0)),
                # full weight slab, constant block index -> fetched once, resident
                pl.BlockSpec((kt, Kc, cp), lambda n, t, d: (0, 0, 0)),
                pl.BlockSpec((1, cp), lambda n, t, d: (0, 0)),
                pl.BlockSpec((1, cp), lambda n, t, d: (0, 0)),
            ],
            out_specs=pl.BlockSpec((nb, None, Ho, Wo, cp),
                                   lambda n, t, d: (n, t, 0, 0, 0)),
            scratch_shapes=scratch,
        ),
        compiler_params=pltpu.CompilerParams(
            dimension_semantics=("parallel", "parallel", "arbitrary"),
            vmem_limit_bytes=vmem_limit),
        cost_estimate=pl.CostEstimate(
            flops=int(flops), transcendentals=0,
            bytes_accessed=int(bytes_accessed)),
    )(xs, wf, sp, bp)


# ----------------------------------------------------------------------------
# BasicTransform forward (Pallas)
# ----------------------------------------------------------------------------
def basic_transform_forward(x, params, *, temp_kernel_size, stride, eps=1e-5):
    """x: (N, C, T, H, W) f32 (PyTorch NCDHW layout)."""
    Cout = params["w_a"].shape[0]
    cp = max(128, ((Cout + 127) // 128) * 128)     # lane-dense output width

    def fold_bn(gamma, beta, mean, var):
        s = gamma / jnp.sqrt(var + eps)
        return s, beta - mean * s

    sa, ba = fold_bn(params["a_gamma"], params["a_beta"],
                     params["a_mean"], params["a_var"])
    sb, bb = fold_bn(params["b_gamma"], params["b_beta"],
                     params["b_mean"], params["b_var"])

    # Single layout change at entry: NCTHW -> channels-last, bf16 operands.
    x_cl = jnp.transpose(x, (0, 2, 3, 4, 1)).astype(jnp.bfloat16)

    # conv a: Tx3x3, stride [1,s,s], pad [kt//2,1,1]  + BN + ReLU   (fused)
    y = conv3d_bn_relu(x_cl, params["w_a"], sa, ba,
                       stride=stride, pad_t=temp_kernel_size // 2, pad_hw=1,
                       relu=True, cp=cp)

    # conv b: 1x3x3, stride 1, pad [0,1,1]            + BN          (fused)
    # Its input carries cp lane-padded channels, so zero-pad w_b's input-channel
    # dim to match (padded channels hit zero weights -> no effect).
    w_b = jnp.pad(params["w_b"],
                  ((0, 0), (0, cp - params["w_b"].shape[1]), (0, 0), (0, 0), (0, 0)))
    y = conv3d_bn_relu(y, w_b, sb, bb,
                       stride=1, pad_t=0, pad_hw=1, relu=False, cp=cp)

    # Single layout change at exit: strip channel padding, back to NCTHW, f32.
    return jnp.transpose(y[..., :Cout], (0, 4, 1, 2, 3)).astype(jnp.float32)


# ----------------------------------------------------------------------------
# Pure-JAX f32 reference (the module semantics)
# ----------------------------------------------------------------------------
def _ref_conv3d(x, w, stride_hw, pad_t, pad_hw):
    return jax.lax.conv_general_dilated(
        x, w, window_strides=(1, stride_hw, stride_hw),
        padding=((pad_t, pad_t), (pad_hw, pad_hw), (pad_hw, pad_hw)),
        dimension_numbers=("NCDHW", "OIDHW", "NCDHW"))


def _ref_bn(x, gamma, beta, mean, var, eps):
    sh = (1, -1, 1, 1, 1)
    return (x - mean.reshape(sh)) / jnp.sqrt(var.reshape(sh) + eps) \
        * gamma.reshape(sh) + beta.reshape(sh)


def basic_transform_ref(x, p, *, temp_kernel_size, stride, eps=1e-5):
    y = _ref_conv3d(x, p["w_a"], stride, temp_kernel_size // 2, 1)
    y = _ref_bn(y, p["a_gamma"], p["a_beta"], p["a_mean"], p["a_var"], eps)
    y = jnp.maximum(y, 0.0)
    y = _ref_conv3d(y, p["w_b"], 1, 0, 1)
    y = _ref_bn(y, p["b_gamma"], p["b_beta"], p["b_mean"], p["b_var"], eps)
    return y


# ----------------------------------------------------------------------------
if __name__ == "__main__":
    N, dim_in, dim_out = 2, 4, 16
    T, H, W = 4, 16, 16
    temp_kernel_size, stride = 3, 2

    key = jax.random.PRNGKey(0)
    ks = jax.random.split(key, 10)

    x = jax.random.normal(ks[0], (N, dim_in, T, H, W), jnp.float32)

    params = {
        "w_a": 0.1 * jax.random.normal(
            ks[1], (dim_out, dim_in, temp_kernel_size, 3, 3), jnp.float32),
        "a_gamma": jax.random.uniform(ks[2], (dim_out,), jnp.float32, 0.5, 1.5),
        "a_beta": 0.1 * jax.random.normal(ks[3], (dim_out,), jnp.float32),
        "a_mean": 0.1 * jax.random.normal(ks[4], (dim_out,), jnp.float32),
        "a_var": jax.random.uniform(ks[5], (dim_out,), jnp.float32, 0.5, 1.5),
        "w_b": 0.1 * jax.random.normal(
            ks[6], (dim_out, dim_out, 1, 3, 3), jnp.float32),
        "b_gamma": jax.random.uniform(ks[7], (dim_out,), jnp.float32, 0.5, 1.5),
        "b_beta": 0.1 * jax.random.normal(ks[8], (dim_out,), jnp.float32),
        "b_mean": 0.1 * jax.random.normal(ks[9], (dim_out,), jnp.float32),
        "b_var": jnp.linspace(0.5, 1.5, dim_out, dtype=jnp.float32),
    }

    fwd = jax.jit(functools.partial(
        basic_transform_forward,
        temp_kernel_size=temp_kernel_size, stride=stride))
    out = jax.block_until_ready(fwd(x, params))

    ref = jax.block_until_ready(basic_transform_ref(
        x, params, temp_kernel_size=temp_kernel_size, stride=stride))

    assert out.shape == (N, dim_out, T, H // stride, W // stride), out.shape
    max_diff = float(jnp.max(jnp.abs(out - ref)))
    # bf16 operands + f32 accumulation vs a pure-f32 reference => ~1e-2 scale
    # differences are expected; validate with a bf16-appropriate tolerance.
    assert bool(jnp.allclose(out, ref, rtol=5e-2, atol=5e-2)), (
        "mismatch vs reference, max abs diff = %f" % max_diff)

    print("KERNEL_OK")
</pallas_src>

<mosaic_0001>
module attributes {stable_mosaic.version = 11 : i64} {
  func.func @_conv_bn_kernel(%arg0: i32, %arg1: i32, %arg2: i32, %arg3: memref<2x1x4x9x9x4xbf16, #tpu.memory_space<vmem>>, %arg4: memref<3x36x128xbf16, #tpu.memory_space<vmem>>, %arg5: memref<1x128xf32, #tpu.memory_space<vmem>>, %arg6: memref<1x128xf32, #tpu.memory_space<vmem>>, %arg7: memref<2x1x8x8x128xbf16, #tpu.memory_space<vmem>>, %arg8: memref<128x128xf32, #tpu.memory_space<vmem>>) attributes {dimension_semantics = [#tpu.dimension_semantics<parallel>, #tpu.dimension_semantics<parallel>, #tpu.dimension_semantics<arbitrary>], iteration_bounds = array<i64: 1, 4, 3>, scalar_prefetch = 0 : i64, scratch_operands = 1 : i64, tpu.core_type = #tpu.core_type<tc>, window_params = [{transform_indices = @transform_0, window_bounds = array<i64: 2, 1, 4, 9, 9, 4>}, {pipeline_mode = #tpu.pipeline_mode<synchronous>, transform_indices = @transform_1, window_bounds = array<i64: 3, 36, 128>}, {pipeline_mode = #tpu.pipeline_mode<synchronous>, transform_indices = @transform_2, window_bounds = array<i64: 1, 128>}, {pipeline_mode = #tpu.pipeline_mode<synchronous>, transform_indices = @transform_3, window_bounds = array<i64: 1, 128>}, {transform_indices = @transform_4, window_bounds = array<i64: 2, 1, 8, 8, 128>}]} {
    %c0 = arith.constant 0 : index
    %c0_0 = arith.constant 0 : index
    %c0_1 = arith.constant 0 : index
    %c0_2 = arith.constant 0 : index
    %c0_3 = arith.constant 0 : index
    %c0_4 = arith.constant 0 : index
    %0 = vector.load %arg3[%c0, %c0_0, %c0_1, %c0_2, %c0_3, %c0_4] : memref<2x1x4x9x9x4xbf16, #tpu.memory_space<vmem>>, vector<2x1x1x8x8x4xbf16>
    %1 = vector.shape_cast %0 : vector<2x1x1x8x8x4xbf16> to vector<2x8x8x4xbf16>
    %2 = vector.shape_cast %1 : vector<2x8x8x4xbf16> to vector<128x4xbf16>
    %c0_5 = arith.constant 0 : index
    %c0_6 = arith.constant 0 : index
    %c1 = arith.constant 1 : index
    %c0_7 = arith.constant 0 : index
    %c0_8 = arith.constant 0 : index
    %c0_9 = arith.constant 0 : index
    %3 = vector.load %arg3[%c0_5, %c0_6, %c1, %c0_7, %c0_8, %c0_9] : memref<2x1x4x9x9x4xbf16, #tpu.memory_space<vmem>>, vector<2x1x1x8x8x4xbf16>
    %4 = vector.shape_cast %3 : vector<2x1x1x8x8x4xbf16> to vector<2x8x8x4xbf16>
    %5 = vector.shape_cast %4 : vector<2x8x8x4xbf16> to vector<128x4xbf16>
    %c0_10 = arith.constant 0 : index
    %c0_11 = arith.constant 0 : index
    %c0_12 = arith.constant 0 : index
    %c0_13 = arith.constant 0 : index
    %c1_14 = arith.constant 1 : index
    %c0_15 = arith.constant 0 : index
    %6 = vector.load %arg3[%c0_10, %c0_11, %c0_12, %c0_13, %c1_14, %c0_15] : memref<2x1x4x9x9x4xbf16, #tpu.memory_space<vmem>>, vector<2x1x1x8x8x4xbf16>
    %7 = vector.shape_cast %6 : vector<2x1x1x8x8x4xbf16> to vector<2x8x8x4xbf16>
    %8 = vector.shape_cast %7 : vector<2x8x8x4xbf16> to vector<128x4xbf16>
    %c0_16 = arith.constant 0 : index
    %c0_17 = arith.constant 0 : index
    %c2 = arith.constant 2 : index
    %c0_18 = arith.constant 0 : index
    %c0_19 = arith.constant 0 : index
    %c0_20 = arith.constant 0 : index
    %9 = vector.load %arg3[%c0_16, %c0_17, %c2, %c0_18, %c0_19, %c0_20] : memref<2x1x4x9x9x4xbf16, #tpu.memory_space<vmem>>, vector<2x1x1x8x8x4xbf16>
    %10 = vector.shape_cast %9 : vector<2x1x1x8x8x4xbf16> to vector<2x8x8x4xbf16>
    %11 = vector.shape_cast %10 : vector<2x8x8x4xbf16> to vector<128x4xbf16>
    %c0_21 = arith.constant 0 : index
    %c0_22 = arith.constant 0 : index
    %c3 = arith.constant 3 : index
    %c0_23 = arith.constant 0 : index
    %c0_24 = arith.constant 0 : index
    %c0_25 = arith.constant 0 : index
    %12 = vector.load %arg3[%c0_21, %c0_22, %c3, %c0_23, %c0_24, %c0_25] : memref<2x1x4x9x9x4xbf16, #tpu.memory_space<vmem>>, vector<2x1x1x8x8x4xbf16>
    %13 = vector.shape_cast %12 : vector<2x1x1x8x8x4xbf16> to vector<2x8x8x4xbf16>
    %14 = vector.shape_cast %13 : vector<2x8x8x4xbf16> to vector<128x4xbf16>
    %c0_26 = arith.constant 0 : index
    %c0_27 = arith.constant 0 : index
    %c2_28 = arith.constant 2 : index
    %c0_29 = arith.constant 0 : index
    %c1_30 = arith.constant 1 : index
    %c0_31 = arith.constant 0 : index
    %15 = vector.load %arg3[%c0_26, %c0_27, %c2_28, %c0_29, %c1_30, %c0_31] : memref<2x1x4x9x9x4xbf16, #tpu.memory_space<vmem>>, vector<2x1x1x8x8x4xbf16>
    %16 = vector.shape_cast %15 : vector<2x1x1x8x8x4xbf16> to vector<2x8x8x4xbf16>
    %17 = vector.shape_cast %16 : vector<2x8x8x4xbf16> to vector<128x4xbf16>
    %c0_32 = arith.constant 0 : index
    %c0_33 = arith.constant 0 : index
    %c0_34 = arith.constant 0 : index
    %c1_35 = arith.constant 1 : index
    %c0_36 = arith.constant 0 : index
    %c0_37 = arith.constant 0 : index
    %18 = vector.load %arg3[%c0_32, %c0_33, %c0_34, %c1_35, %c0_36, %c0_37] : memref<2x1x4x9x9x4xbf16, #tpu.memory_space<vmem>>, vector<2x1x1x8x8x4xbf16>
    %19 = vector.shape_cast %18 : vector<2x1x1x8x8x4xbf16> to vector<2x8x8x4xbf16>
    %20 = vector.shape_cast %19 : vector<2x8x8x4xbf16> to vector<128x4xbf16>
    %c0_38 = arith.constant 0 : index
    %c0_39 = arith.constant 0 : index
    %c1_40 = arith.constant 1 : index
    %c1_41 = arith.constant 1 : index
    %c0_42 = arith.constant 0 : index
    %c0_43 = arith.constant 0 : index
    %21 = vector.load %arg3[%c0_38, %c0_39, %c1_40, %c1_41, %c0_42, %c0_43] : memref<2x1x4x9x9x4xbf16, #tpu.memory_space<vmem>>, vector<2x1x1x8x8x4xbf16>
    %22 = vector.shape_cast %21 : vector<2x1x1x8x8x4xbf16> to vector<2x8x8x4xbf16>
    %23 = vector.shape_cast %22 : vector<2x8x8x4xbf16> to vector<128x4xbf16>
    %c0_44 = arith.constant 0 : index
    %c0_45 = arith.constant 0 : index
    %c0_46 = arith.constant 0 : index
    %c1_47 = arith.constant 1 : index
    %c1_48 = arith.constant 1 : index
    %c0_49 = arith.constant 0 : index
    %24 = vector.load %arg3[%c0_44, %c0_45, %c0_46, %c1_47, %c1_48, %c0_49] : memref<2x1x4x9x9x4xbf16, #tpu.memory_space<vmem>>, vector<2x1x1x8x8x4xbf16>
    %25 = vector.shape_cast %24 : vector<2x1x1x8x8x4xbf16> to vector<2x8x8x4xbf16>
    %26 = vector.shape_cast %25 : vector<2x8x8x4xbf16> to vector<128x4xbf16>
    %27 = tpu.concatenate %2, %5, %8, %11, %14, %17, %20, %23, %26 in 1 : vector<128x4xbf16>, vector<128x4xbf16>, vector<128x4xbf16>, vector<128x4xbf16>, vector<128x4xbf16>, vector<128x4xbf16>, vector<128x4xbf16>, vector<128x4xbf16>, vector<128x4xbf16> -> vector<128x36xbf16>
    %28 = arith.index_cast %arg2 : i32 to index
    %c0_50 = arith.constant 0 : index
    %c0_51 = arith.constant 0 : index
    %29 = vector.load %arg4[%28, %c0_50, %c0_51] : memref<3x36x128xbf16, #tpu.memory_space<vmem>>, vector<1x36x128xbf16>
    %30 = vector.shape_cast %29 : vector<1x36x128xbf16> to vector<36x128xbf16>
    %cst = arith.constant dense<0.000000e+00> : vector<128x128xf32>
    %31 = tpu.matmul %27, %30, %cst {dimension_numbers = #tpu.dot_dimension_numbers<[1], [0], [0], [1], [0, 0, 1, 1], [], []>} : vector<128x36xbf16>, vector<36x128xbf16>, vector<128x128xf32> -> vector<128x128xf32>
    %c0_i32 = arith.constant 0 : i32
    %32 = arith.cmpi eq, %arg2, %c0_i32 : i32
    %33 = arith.extui %32 : i1 to i32
    %c0_i32_52 = arith.constant 0 : i32
    %34 = arith.cmpi ne, %33, %c0_i32_52 : i32
    scf.if %34 {
      %cst_58 = arith.constant 0.000000e+00 : f32
      %41 = vector.broadcast %cst_58 : f32 to vector<128x128xf32>
      %c0_59 = arith.constant 0 : index
      %c0_60 = arith.constant 0 : index
      %42 = vector.load %arg8[%c0_59, %c0_60] : memref<128x128xf32, #tpu.memory_space<vmem>>, vector<128x128xf32>
      tpu.vector_store %arg8[%c0_59, %c0_60], %41 {strides = array<i32>} : memref<128x128xf32, #tpu.memory_space<vmem>>, vector<128x128xf32>,
    } else {
    }
    %c0_53 = arith.constant 0 : index
    %c0_54 = arith.constant 0 : index
    %35 = vector.load %arg8[%c0_53, %c0_54] : memref<128x128xf32, #tpu.memory_space<vmem>>, vector<128x128xf32>
    %36 = arith.addf %35, %31 : vector<128x128xf32>
    %c0_55 = arith.constant 0 : index
    %c0_56 = arith.constant 0 : index
    %37 = vector.load %arg8[%c0_55, %c0_56] : memref<128x128xf32, #tpu.memory_space<vmem>>, vector<128x128xf32>
    tpu.vector_store %arg8[%c0_55, %c0_56], %36 {strides = array<i32>} : memref<128x128xf32, #tpu.memory_space<vmem>>, vector<128x128xf32>,
    %c2_i32 = arith.constant 2 : i32
    %38 = arith.cmpi eq, %arg2, %c2_i32 : i32
    %39 = arith.extui %38 : i1 to i32
    %c0_i32_57 = arith.constant 0 : i32
    %40 = arith.cmpi ne, %39, %c0_i32_57 : i32
    scf.if %40 {
      %c0_58 = arith.constant 0 : index
      %c0_59 = arith.constant 0 : index
      %41 = vector.load %arg5[%c0_58, %c0_59] : memref<1x128xf32, #tpu.memory_space<vmem>>, vector<1x128xf32>
      %42 = vector.broadcast %41 : vector<1x128xf32> to vector<128x128xf32>
      %43 = arith.mulf %36, %42 : vector<128x128xf32>
      %c0_60 = arith.constant 0 : index
      %c0_61 = arith.constant 0 : index
      %44 = vector.load %arg6[%c0_60, %c0_61] : memref<1x128xf32, #tpu.memory_space<vmem>>, vector<1x128xf32>
      %45 = vector.broadcast %44 : vector<1x128xf32> to vector<128x128xf32>
      %46 = arith.addf %43, %45 : vector<128x128xf32>
      %cst_62 = arith.constant 0.000000e+00 : f32
      %47 = vector.broadcast %cst_62 : f32 to vector<128x128xf32>
      %48 = arith.maximumf %46, %47 : vector<128x128xf32>
      %49 = vector.shape_cast %48 : vector<128x128xf32> to vector<2x8x8x128xf32>
      %50 = arith.truncf %49 : vector<2x8x8x128xf32> to vector<2x8x8x128xbf16>
      %c0_63 = arith.constant 0 : index
      %c0_64 = arith.constant 0 : index
      %c0_65 = arith.constant 0 : index
      %c0_66 = arith.constant 0 : index
      %c0_67 = arith.constant 0 : index
      %51 = vector.load %arg7[%c0_63, %c0_64, %c0_65, %c0_66, %c0_67] : memref<2x1x8x8x128xbf16, #tpu.memory_space<vmem>>, vector<2x1x8x8x128xbf16>
      %52 = vector.shape_cast %51 : vector<2x1x8x8x128xbf16> to vector<2x8x8x128xbf16>
      %53 = vector.shape_cast %50 : vector<2x8x8x128xbf16> to vector<2x1x8x8x128xbf16>
      tpu.vector_store %arg7[%c0_63, %c0_64, %c0_65, %c0_66, %c0_67], %53 {strides = array<i32>} : memref<2x1x8x8x128xbf16, #tpu.memory_space<vmem>>, vector<2x1x8x8x128xbf16>,
    } else {
    }
    return
  }
  func.func @transform_0(%arg0: i32, %arg1: i32, %arg2: i32) -> (i32, i32, i32, i32, i32, i32) {
    %0 = arith.addi %arg1, %arg2 : i32
    %c0_i32 = arith.constant 0 : i32
    %c0_i32_0 = arith.constant 0 : i32
    %c0_i32_1 = arith.constant 0 : i32
    %c0_i32_2 = arith.constant 0 : i32
    %c0_i32_3 = arith.constant 0 : i32
    return %arg0, %0, %c0_i32, %c0_i32_0, %c0_i32_1, %c0_i32_2 : i32, i32, i32, i32, i32, i32
  }
  func.func @transform_1(%arg0: i32, %arg1: i32, %arg2: i32) -> (i32, i32, i32) {
    %c0_i32 = arith.constant 0 : i32
    %c0_i32_0 = arith.constant 0 : i32
    %c0_i32_1 = arith.constant 0 : i32
    %c0_i32_2 = arith.constant 0 : i32
    return %c0_i32, %c0_i32_0, %c0_i32_1 : i32, i32, i32
  }
  func.func @transform_2(%arg0: i32, %arg1: i32, %arg2: i32) -> (i32, i32) {
    %c0_i32 = arith.constant 0 : i32
    %c0_i32_0 = arith.constant 0 : i32
    %c0_i32_1 = arith.constant 0 : i32
    return %c0_i32, %c0_i32_0 : i32, i32
  }
  func.func @transform_3(%arg0: i32, %arg1: i32, %arg2: i32) -> (i32, i32) {
    %c0_i32 = arith.constant 0 : i32
    %c0_i32_0 = arith.constant 0 : i32
    %c0_i32_1 = arith.constant 0 : i32
    return %c0_i32, %c0_i32_0 : i32, i32
  }
  func.func @transform_4(%arg0: i32, %arg1: i32, %arg2: i32) -> (i32, i32, i32, i32, i32) {
    %c0_i32 = arith.constant 0 : i32
    %c0_i32_0 = arith.constant 0 : i32
    %c0_i32_1 = arith.constant 0 : i32
    %c0_i32_2 = arith.constant 0 : i32
    return %arg0, %arg1, %c0_i32, %c0_i32_0, %c0_i32_1 : i32, i32, i32, i32, i32
  }
}

module attributes {stable_mosaic.version = 11 : i64} {
  func.func @_conv_bn_kernel(%arg0: i32, %arg1: i32, %arg2: i32, %arg3: memref<2x1x1x10x10x128xbf16, #tpu.memory_space<vmem>>, %arg4: memref<1x1152x128xbf16, #tpu.memory_space<vmem>>, %arg5: memref<1x128xf32, #tpu.memory_space<vmem>>, %arg6: memref<1x128xf32, #tpu.memory_space<vmem>>, %arg7: memref<2x1x8x8x128xbf16, #tpu.memory_space<vmem>>) attributes {dimension_semantics = [#tpu.dimension_semantics<parallel>, #tpu.dimension_semantics<parallel>, #tpu.dimension_semantics<arbitrary>], iteration_bounds = array<i64: 1, 4, 1>, scalar_prefetch = 0 : i64, scratch_operands = 0 : i64, tpu.core_type = #tpu.core_type<tc>, window_params = [{transform_indices = @transform_0, window_bounds = array<i64: 2, 1, 1, 10, 10, 128>}, {pipeline_mode = #tpu.pipeline_mode<synchronous>, transform_indices = @transform_1, window_bounds = array<i64: 1, 1152, 128>}, {pipeline_mode = #tpu.pipeline_mode<synchronous>, transform_indices = @transform_2, window_bounds = array<i64: 1, 128>}, {pipeline_mode = #tpu.pipeline_mode<synchronous>, transform_indices = @transform_3, window_bounds = array<i64: 1, 128>}, {transform_indices = @transform_4, window_bounds = array<i64: 2, 1, 8, 8, 128>}]} {
    %c0 = arith.constant 0 : index
    %c0_0 = arith.constant 0 : index
    %c0_1 = arith.constant 0 : index
    %c0_2 = arith.constant 0 : index
    %c0_3 = arith.constant 0 : index
    %c0_4 = arith.constant 0 : index
    %0 = vector.load %arg3[%c0, %c0_0, %c0_1, %c0_2, %c0_3, %c0_4] : memref<2x1x1x10x10x128xbf16, #tpu.memory_space<vmem>>, vector<2x1x1x8x8x128xbf16>
    %1 = vector.shape_cast %0 : vector<2x1x1x8x8x128xbf16> to vector<2x8x8x128xbf16>
    %2 = vector.shape_cast %1 : vector<2x8x8x128xbf16> to vector<128x128xbf16>
    %c0_5 = arith.constant 0 : index
    %c0_6 = arith.constant 0 : index
    %c0_7 = arith.constant 0 : index
    %c0_8 = arith.constant 0 : index
    %c1 = arith.constant 1 : index
    %c0_9 = arith.constant 0 : index
    %3 = vector.load %arg3[%c0_5, %c0_6, %c0_7, %c0_8, %c1, %c0_9] : memref<2x1x1x10x10x128xbf16, #tpu.memory_space<vmem>>, vector<2x1x1x8x8x128xbf16>
    %4 = vector.shape_cast %3 : vector<2x1x1x8x8x128xbf16> to vector<2x8x8x128xbf16>
    %5 = vector.shape_cast %4 : vector<2x8x8x128xbf16> to vector<128x128xbf16>
    %c0_10 = arith.constant 0 : index
    %c0_11 = arith.constant 0 : index
    %c0_12 = arith.constant 0 : index
    %c0_13 = arith.constant 0 : index
    %c2 = arith.constant 2 : index
    %c0_14 = arith.constant 0 : index
    %6 = vector.load %arg3[%c0_10, %c0_11, %c0_12, %c0_13, %c2, %c0_14] : memref<2x1x1x10x10x128xbf16, #tpu.memory_space<vmem>>, vector<2x1x1x8x8x128xbf16>
    %7 = vector.shape_cast %6 : vector<2x1x1x8x8x128xbf16> to vector<2x8x8x128xbf16>
    %8 = vector.shape_cast %7 : vector<2x8x8x128xbf16> to vector<128x128xbf16>
    %c0_15 = arith.constant 0 : index
    %c0_16 = arith.constant 0 : index
    %c0_17 = arith.constant 0 : index
    %c1_18 = arith.constant 1 : index
    %c0_19 = arith.constant 0 : index
    %c0_20 = arith.constant 0 : index
    %9 = vector.load %arg3[%c0_15, %c0_16, %c0_17, %c1_18, %c0_19, %c0_20] : memref<2x1x1x10x10x128xbf16, #tpu.memory_space<vmem>>, vector<2x1x1x8x8x128xbf16>
    %10 = vector.shape_cast %9 : vector<2x1x1x8x8x128xbf16> to vector<2x8x8x128xbf16>
    %11 = vector.shape_cast %10 : vector<2x8x8x128xbf16> to vector<128x128xbf16>
    %c0_21 = arith.constant 0 : index
    %c0_22 = arith.constant 0 : index
    %c0_23 = arith.constant 0 : index
    %c1_24 = arith.constant 1 : index
    %c1_25 = arith.constant 1 : index
    %c0_26 = arith.constant 0 : index
    %12 = vector.load %arg3[%c0_21, %c0_22, %c0_23, %c1_24, %c1_25, %c0_26] : memref<2x1x1x10x10x128xbf16, #tpu.memory_space<vmem>>, vector<2x1x1x8x8x128xbf16>
    %13 = vector.shape_cast %12 : vector<2x1x1x8x8x128xbf16> to vector<2x8x8x128xbf16>
    %14 = vector.shape_cast %13 : vector<2x8x8x128xbf16> to vector<128x128xbf16>
    %c0_27 = arith.constant 0 : index
    %c0_28 = arith.constant 0 : index
    %c0_29 = arith.constant 0 : index
    %c1_30 = arith.constant 1 : index
    %c2_31 = arith.constant 2 : index
    %c0_32 = arith.constant 0 : index
    %15 = vector.load %arg3[%c0_27, %c0_28, %c0_29, %c1_30, %c2_31, %c0_32] : memref<2x1x1x10x10x128xbf16, #tpu.memory_space<vmem>>, vector<2x1x1x8x8x128xbf16>
    %16 = vector.shape_cast %15 : vector<2x1x1x8x8x128xbf16> to vector<2x8x8x128xbf16>
    %17 = vector.shape_cast %16 : vector<2x8x8x128xbf16> to vector<128x128xbf16>
    %c0_33 = arith.constant 0 : index
    %c0_34 = arith.constant 0 : index
    %c0_35 = arith.constant 0 : index
    %c2_36 = arith.constant 2 : index
    %c0_37 = arith.constant 0 : index
    %c0_38 = arith.constant 0 : index
    %18 = vector.load %arg3[%c0_33, %c0_34, %c0_35, %c2_36, %c0_37, %c0_38] : memref<2x1x1x10x10x128xbf16, #tpu.memory_space<vmem>>, vector<2x1x1x8x8x128xbf16>
    %19 = vector.shape_cast %18 : vector<2x1x1x8x8x128xbf16> to vector<2x8x8x128xbf16>
    %20 = vector.shape_cast %19 : vector<2x8x8x128xbf16> to vector<128x128xbf16>
    %c0_39 = arith.constant 0 : index
    %c0_40 = arith.constant 0 : index
    %c0_41 = arith.constant 0 : index
    %c2_42 = arith.constant 2 : index
    %c1_43 = arith.constant 1 : index
    %c0_44 = arith.constant 0 : index
    %21 = vector.load %arg3[%c0_39, %c0_40, %c0_41, %c2_42, %c1_43, %c0_44] : memref<2x1x1x10x10x128xbf16, #tpu.memory_space<vmem>>, vector<2x1x1x8x8x128xbf16>
    %22 = vector.shape_cast %21 : vector<2x1x1x8x8x128xbf16> to vector<2x8x8x128xbf16>
    %23 = vector.shape_cast %22 : vector<2x8x8x128xbf16> to vector<128x128xbf16>
    %c0_45 = arith.constant 0 : index
    %c0_46 = arith.constant 0 : index
    %c0_47 = arith.constant 0 : index
    %c2_48 = arith.constant 2 : index
    %c2_49 = arith.constant 2 : index
    %c0_50 = arith.constant 0 : index
    %24 = vector.load %arg3[%c0_45, %c0_46, %c0_47, %c2_48, %c2_49, %c0_50] : memref<2x1x1x10x10x128xbf16, #tpu.memory_space<vmem>>, vector<2x1x1x8x8x128xbf16>
    %25 = vector.shape_cast %24 : vector<2x1x1x8x8x128xbf16> to vector<2x8x8x128xbf16>
    %26 = vector.shape_cast %25 : vector<2x8x8x128xbf16> to vector<128x128xbf16>
    %27 = tpu.concatenate %2, %5, %8, %11, %14, %17, %20, %23, %26 in 1 : vector<128x128xbf16>, vector<128x128xbf16>, vector<128x128xbf16>, vector<128x128xbf16>, vector<128x128xbf16>, vector<128x128xbf16>, vector<128x128xbf16>, vector<128x128xbf16>, vector<128x128xbf16> -> vector<128x1152xbf16>
    %28 = arith.index_cast %arg2 : i32 to index
    %c0_51 = arith.constant 0 : index
    %c0_52 = arith.constant 0 : index
    %29 = vector.load %arg4[%28, %c0_51, %c0_52] : memref<1x1152x128xbf16, #tpu.memory_space<vmem>>, vector<1x1152x128xbf16>
    %30 = vector.shape_cast %29 : vector<1x1152x128xbf16> to vector<1152x128xbf16>
    %cst = arith.constant dense<0.000000e+00> : vector<128x128xf32>
    %31 = tpu.matmul %27, %30, %cst {dimension_numbers = #tpu.dot_dimension_numbers<[1], [0], [0], [1], [0, 0, 1, 1], [], []>} : vector<128x1152xbf16>, vector<1152x128xbf16>, vector<128x128xf32> -> vector<128x128xf32>
    %c0_i32 = arith.constant 0 : i32
    %32 = arith.cmpi eq, %arg2, %c0_i32 : i32
    %33 = arith.extui %32 : i1 to i32
    %c0_i32_53 = arith.constant 0 : i32
    %34 = arith.cmpi ne, %33, %c0_i32_53 : i32
    scf.if %34 {
      %c0_54 = arith.constant 0 : index
      %c0_55 = arith.constant 0 : index
      %35 = vector.load %arg5[%c0_54, %c0_55] : memref<1x128xf32, #tpu.memory_space<vmem>>, vector<1x128xf32>
      %36 = vector.broadcast %35 : vector<1x128xf32> to vector<128x128xf32>
      %37 = arith.mulf %31, %36 : vector<128x128xf32>
      %c0_56 = arith.constant 0 : index
      %c0_57 = arith.constant 0 : index
      %38 = vector.load %arg6[%c0_56, %c0_57] : memref<1x128xf32, #tpu.memory_space<vmem>>, vector<1x128xf32>
      %39 = vector.broadcast %38 : vector<1x128xf32> to vector<128x128xf32>
      %40 = arith.addf %37, %39 : vector<128x128xf32>
      %41 = vector.shape_cast %40 : vector<128x128xf32> to vector<2x8x8x128xf32>
      %42 = arith.truncf %41 : vector<2x8x8x128xf32> to vector<2x8x8x128xbf16>
      %c0_58 = arith.constant 0 : index
      %c0_59 = arith.constant 0 : index
      %c0_60 = arith.constant 0 : index
      %c0_61 = arith.constant 0 : index
      %c0_62 = arith.constant 0 : index
      %43 = vector.load %arg7[%c0_58, %c0_59, %c0_60, %c0_61, %c0_62] : memref<2x1x8x8x128xbf16, #tpu.memory_space<vmem>>, vector<2x1x8x8x128xbf16>
      %44 = vector.shape_cast %43 : vector<2x1x8x8x128xbf16> to vector<2x8x8x128xbf16>
      %45 = vector.shape_cast %42 : vector<2x8x8x128xbf16> to vector<2x1x8x8x128xbf16>
      tpu.vector_store %arg7[%c0_58, %c0_59, %c0_60, %c0_61, %c0_62], %45 {strides = array<i32>} : memref<2x1x8x8x128xbf16, #tpu.memory_space<vmem>>, vector<2x1x8x8x128xbf16>,
    } else {
    }
    return
  }
  func.func @transform_0(%arg0: i32, %arg1: i32, %arg2: i32) -> (i32, i32, i32, i32, i32, i32) {
    %0 = arith.addi %arg1, %arg2 : i32
    %c0_i32 = arith.constant 0 : i32
    %c0_i32_0 = arith.constant 0 : i32
    %c0_i32_1 = arith.constant 0 : i32
    %c0_i32_2 = arith.constant 0 : i32
    %c0_i32_3 = arith.constant 0 : i32
    return %arg0, %0, %c0_i32, %c0_i32_0, %c0_i32_1, %c0_i32_2 : i32, i32, i32, i32, i32, i32
  }
  func.func @transform_1(%arg0: i32, %arg1: i32, %arg2: i32) -> (i32, i32, i32) {
    %c0_i32 = arith.constant 0 : i32
    %c0_i32_0 = arith.constant 0 : i32
    %c0_i32_1 = arith.constant 0 : i32
    %c0_i32_2 = arith.constant 0 : i32
    return %c0_i32, %c0_i32_0, %c0_i32_1 : i32, i32, i32
  }
  func.func @transform_2(%arg0: i32, %arg1: i32, %arg2: i32) -> (i32, i32) {
    %c0_i32 = arith.constant 0 : i32
    %c0_i32_0 = arith.constant 0 : i32
    %c0_i32_1 = arith.constant 0 : i32
    return %c0_i32, %c0_i32_0 : i32, i32
  }
  func.func @transform_3(%arg0: i32, %arg1: i32, %arg2: i32) -> (i32, i32) {
    %c0_i32 = arith.constant 0 : i32
    %c0_i32_0 = arith.constant 0 : i32
    %c0_i32_1 = arith.constant 0 : i32
    return %c0_i32, %c0_i32_0 : i32, i32
  }
  func.func @transform_4(%arg0: i32, %arg1: i32, %arg2: i32) -> (i32, i32, i32, i32, i32) {
    %c0_i32 = arith.constant 0 : i32
    %c0_i32_0 = arith.constant 0 : i32
    %c0_i32_1 = arith.constant 0 : i32
    %c0_i32_2 = arith.constant 0 : i32
    return %arg0, %arg1, %c0_i32, %c0_i32_0, %c0_i32_1 : i32, i32, i32, i32, i32
  }
}

</mosaic_0001>

<bundles_post_ra>
// kernel: basic_transform_forward.2
= control target key start
LH: loop header
LB: loop body
LE: loop exit
PB: predicated region body
PF: predicated region fallthrough
CT: control target
= control target key end

     0   :  { %s3289_s15 = smov 0   ;;  %s3291_s16 = smov 0   ;;  %s4224_s0 = inlined_call_operand.vmem [shape: bf16[2,6,4,9,9,4], index: 0, kind: input, shape index: {}]   ;;  %s4225_s1 = inlined_call_operand.vmem [shape: bf16[3,36,128], index: 1, kind: input, shape index: {}]   ;;  %s4226_s2 = inlined_call_operand.vmem [shape: f32[1,128], index: 2, kind: input, shape index: {}]   ;;  %s4227_s3 = inlined_call_operand.vmem [shape: f32[1,128], index: 3, kind: input, shape index: {}]   ;;  %s4228_s4 = inlined_call_operand.vmem [shape: bf16[2,4,8,8,128], index: 4, kind: output, shape index: {}]  }
   0x1   :  { %s3293_s17 = smov 0   ;;  %s3295_s18 = smov 0  }
   0x2   :  { %s3297_s19 = smov 0   ;;  %s3299_s20 = smov 0  }
   0x3   :  { %s3301_s21 = smov 0   ;;  %s3303_s22 = smov 0  }
   0x4   :  { %s3305_s23 = smov 0  }
   0x5 LB: > { %s26_s24 = sadd.s32 1, %s3245_s21  ;;  %s29_s25 = sadd.s32 1, %s3249_s22  ;;  %s3253_s23 = sphi %s3305_s23, %s14_s23   ;;  %s3249_s22 = sphi %s3303_s22, %s4240_s22   ;;  %s3245_s21 = sphi %s3301_s21, %s4239_s21   ;;  %s3241_s20 = sphi %s3299_s20, %s4238_s20   ;;  %s3237_s19 = sphi %s3297_s19, %s4237_s19   ;;  %s3233_s18 = sphi %s3295_s18, %s4236_s18   ;;  %s3229_s17 = sphi %s3293_s17, %s4235_s17   ;;  %s3225_s16 = sphi %s3291_s16, %s4234_s16   ;;  %s3221_s15 = sphi %s3289_s15, %s4233_s15  }
   0x6   : > { %p27_p0 = scmp.ge.s32.totalorder %s26_s24, 3  ;;  %s2746_s26 = sadd.s32 4294967295, %s3253_s23  }
   0x7   : > { %s37_s27 = sadd.s32 %s3245_s21, %s3249_s22  ;;  %p51_p1 = scmp.ne.s32.totalorder %s3233_s18, %s3229_s17 }
   0x8   : > { %s4242_s24 = smov (%p27_p0, %s26_s24), 0  ;;  %s4244_s25 = smov (!%p27_p0, %s29_s25), %s3249_s22 }
   0x9   : > { %p52_p2 = scmp.eq.s32.totalorder %s3253_s23, 0  ;;  %p31_p3 = scmp.ge.s32.totalorder %s4244_s25, 4 }
   0xa   : > { %s44_s28 = sadd.s32 1, %s3233_s18  ;;  %p145_p5 = scmp.ne.s32.totalorder %s3225_s16, %s3221_s15 }
   0xb   : > { %p3346_p4 = por %p52_p2, %p51_p1  ;;  %s4246_s25 = smov (%p31_p3, %s4244_s25), 0 }
   0xc   : > { %s135_s30 = sadd.s32 1, %s3225_s16  ;;  %p146_p6 = scmp.eq.s32.totalorder %s2746_s26, 11 }
   0xd   : > { %s38_s5 = sadd.s32 %s4246_s25, %s4242_s24  ;;  %s131_s6 = ssub.s32 %s3249_s22, %s4246_s25 }
   0xe   : > { %s40_s7 = ssub.s32 %s37_s27, %s38_s5  ;;  %p133_p7 = scmp.eq.s32.totalorder %s131_s6, 0 }
   0xf   : > { %p42_p8 = scmp.eq.s32.totalorder %s40_s7, 0  ;;  %p3359_p9 = por %p146_p6, %p145_p5 }
  0x10   : > { %s3364_s9 = scalar_select %p133_p7, %s3225_s16, %s135_s30  }
  0x11   : > { %s3367_s10 = scalar_select %p42_p8, %s3233_s18, %s44_s28  }
  0x12   : > { %p2749_p10 = scmp.ge.s32.totalorder %s3253_s23, 12 }
  0x14   : > { %177 = sbr.rel (%p2749_p10) target bundleno = 68 (0x44), region = 28 }
  0x1b   : > { %180 = sbr.rel (!%p3346_p4) target bundleno = 68 (0x44), region = 32  ;;  %s182_s11 = sand.u32 (%p3346_p4), 1, %s3233_s18  }
  0x1c   : > { %s3049_s12 = smul.u32 (%p3346_p4), 288, %s37_s27 }
  0x1d   : > { %s3048_s13 = smul.u32 (%p3346_p4), 576, %s182_s11 }
  0x1e   : > { %s3376_s5 = scalar_lea.vmem (%p3346_p4), %s4224_s0, %s3049_s12 }
  0x1f   : > { %v207_v0 = vld [vmem:[%s3376_s5] sm:$0xff] (%p3346_p4)   ;;  %v211_v1 = vld [vmem:[%s3376_s5 + $0x8] sm:$0xff] (%p3346_p4)   ;;  %v215_v2 = vld [vmem:[%s3376_s5 + $0x10] sm:$0xff] (%p3346_p4)   ;;  %s3381_s28 = scalar_lea.vmem (%p3346_p4), [#allocation3], %s3048_s13 }
  0x20   : > { %208 = vst [vmem:[%s3381_s28] sm:$0xff] (%p3346_p4), %v207_v0   ;;  %212 = vst [vmem:[%s3381_s28 + $0x8] sm:$0xff] (%p3346_p4), %v211_v1   ;;  %v219_v3 = vld [vmem:[%s3376_s5 + $0x18] sm:$0xff] (%p3346_p4)   ;;  %v223_v4 = vld [vmem:[%s3376_s5 + $0x20] sm:$0xff] (%p3346_p4)  }
  0x21   : > { %216 = vst [vmem:[%s3381_s28 + $0x10] sm:$0xff] (%p3346_p4), %v215_v2   ;;  %v227_v5 = vld [vmem:[%s3376_s5 + $0x28] sm:$0xff] (%p3346_p4)   ;;  %220 = vst [vmem:[%s3381_s28 + $0x18] sm:$0xff] (%p3346_p4), %v219_v3   ;;  %v231_v6 = vld [vmem:[%s3376_s5 + $0x30] sm:$0xff] (%p3346_p4)  }
  0x22   : > { %224 = vst [vmem:[%s3381_s28 + $0x20] sm:$0xff] %v223_v4   ;;  %228 = vst [vmem:[%s3381_s28 + $0x28] sm:$0xff] %v227_v5   ;;  %v235_v7 = vld [vmem:[%s3376_s5 + $0x38] sm:$0xff]   ;;  %v239_v8 = vld [vmem:[%s3376_s5 + $0x40] sm:$0xff]  }
  0x23   : > { %232 = vst [vmem:[%s3381_s28 + $0x30] sm:$0xff] %v231_v6   ;;  %236 = vst [vmem:[%s3381_s28 + $0x38] sm:$0xff] %v235_v7   ;;  %v243_v9 = vld [vmem:[%s3376_s5 + $0x48] sm:$0xff]   ;;  %v247_v10 = vld [vmem:[%s3376_s5 + $0x50] sm:$0xff]  }
  0x24   : > { %240 = vst [vmem:[%s3381_s28 + $0x40] sm:$0xff] %v239_v8   ;;  %v251_v11 = vld [vmem:[%s3376_s5 + $0x58] sm:$0xff]   ;;  %244 = vst [vmem:[%s3381_s28 + $0x48] sm:$0xff] %v243_v9   ;;  %v255_v12 = vld [vmem:[%s3376_s5 + $0x60] sm:$0xff]  }
  0x25   : > { %248 = vst [vmem:[%s3381_s28 + $0x50] sm:$0xff] %v247_v10   ;;  %252 = vst [vmem:[%s3381_s28 + $0x58] sm:$0xff] %v251_v11   ;;  %v259_v13 = vld [vmem:[%s3376_s5 + $0x68] sm:$0xff]   ;;  %v263_v14 = vld [vmem:[%s3376_s5 + $0x70] sm:$0xff]  }
  0x26   : > { %256 = vst [vmem:[%s3381_s28 + $0x60] sm:$0xff] %v255_v12   ;;  %260 = vst [vmem:[%s3381_s28 + $0x68] sm:$0xff] %v259_v13   ;;  %v267_v15 = vld [vmem:[%s3376_s5 + $0x78] sm:$0xff]   ;;  %v271_v16 = vld [vmem:[%s3376_s5 + $0x80] sm:$0xff]  }
  0x27   : > { %264 = vst [vmem:[%s3381_s28 + $0x70] sm:$0xff] %v263_v14   ;;  %v275_v17 = vld [vmem:[%s3376_s5 + $0x88] sm:$0xff]   ;;  %268 = vst [vmem:[%s3381_s28 + $0x78] sm:$0xff] %v267_v15   ;;  %v279_v18 = vld [vmem:[%s3376_s5 + $0x90] sm:$0xff]  }
  0x28   : > { %272 = vst [vmem:[%s3381_s28 + $0x80] sm:$0xff] %v271_v16   ;;  %276 = vst [vmem:[%s3381_s28 + $0x88] sm:$0xff] %v275_v17   ;;  %v283_v19 = vld [vmem:[%s3376_s5 + $0x98] sm:$0xff]   ;;  %v287_v20 = vld [vmem:[%s3376_s5 + $0xa0] sm:$0xff]  }
  0x29   : > { %280 = vst [vmem:[%s3381_s28 + $0x90] sm:$0xff] %v279_v18   ;;  %284 = vst [vmem:[%s3381_s28 + $0x98] sm:$0xff] %v283_v19   ;;  %v291_v21 = vld [vmem:[%s3376_s5 + $0xa8] sm:$0xff]   ;;  %v295_v22 = vld [vmem:[%s3376_s5 + $0xb0] sm:$0xff]  }
  0x2a   : > { %288 = vst [vmem:[%s3381_s28 + $0xa0] sm:$0xff] %v287_v20   ;;  %v299_v23 = vld [vmem:[%s3376_s5 + $0xb8] sm:$0xff]   ;;  %292 = vst [vmem:[%s3381_s28 + $0xa8] sm:$0xff] %v291_v21   ;;  %v303_v24 = vld [vmem:[%s3376_s5 + $0xc0] sm:$0xff]  }
  0x2b   : > { %296 = vst [vmem:[%s3381_s28 + $0xb0] sm:$0xff] %v295_v22   ;;  %300 = vst [vmem:[%s3381_s28 + $0xb8] sm:$0xff] %v299_v23   ;;  %v307_v25 = vld [vmem:[%s3376_s5 + $0xc8] sm:$0xff]   ;;  %v311_v26 = vld [vmem:[%s3376_s5 + $0xd0] sm:$0xff]  }
  0x2c   : > { %304 = vst [vmem:[%s3381_s28 + $0xc0] sm:$0xff] %v303_v24   ;;  %308 = vst [vmem:[%s3381_s28 + $0xc8] sm:$0xff] %v307_v25   ;;  %v315_v27 = vld [vmem:[%s3376_s5 + $0xd8] sm:$0xff]   ;;  %v319_v28 = vld [vmem:[%s3376_s5 + $0xe0] sm:$0xff]  }
  0x2d   : > { %312 = vst [vmem:[%s3381_s28 + $0xd0] sm:$0xff] %v311_v26   ;;  %v323_v29 = vld [vmem:[%s3376_s5 + $0xe8] sm:$0xff]   ;;  %316 = vst [vmem:[%s3381_s28 + $0xd8] sm:$0xff] %v315_v27   ;;  %v327_v30 = vld [vmem:[%s3376_s5 + $0xf0] sm:$0xff]  }
  0x2e   : > { %320 = vst [vmem:[%s3381_s28 + $0xe0] sm:$0xff] %v319_v28   ;;  %324 = vst [vmem:[%s3381_s28 + $0xe8] sm:$0xff] %v323_v29   ;;  %v331_v31 = vld [vmem:[%s3376_s5 + $0xf8] sm:$0xff]   ;;  %v335_v32 = vld [vmem:[%s3376_s5 + $0x100] sm:$0xff]  }
  0x2f   : > { %328 = vst [vmem:[%s3381_s28 + $0xf0] sm:$0xff] %v327_v30   ;;  %332 = vst [vmem:[%s3381_s28 + $0xf8] sm:$0xff] %v331_v31   ;;  %v339_v33 = vld [vmem:[%s3376_s5 + $0x108] sm:$0xff]   ;;  %v343_v34 = vld [vmem:[%s3376_s5 + $0x110] sm:$0xff]  }
  0x30   : > { %336 = vst [vmem:[%s3381_s28 + $0x100] sm:$0xff] %v335_v32   ;;  %v347_v35 = vld [vmem:[%s3376_s5 + $0x118] sm:$0xff]   ;;  %340 = vst [vmem:[%s3381_s28 + $0x108] sm:$0xff] %v339_v33   ;;  %v351_v36 = vld [vmem:[%s3376_s5 + $0x6c0] sm:$0xff]  }
  0x31   : > { %344 = vst [vmem:[%s3381_s28 + $0x110] sm:$0xff] %v343_v34   ;;  %348 = vst [vmem:[%s3381_s28 + $0x118] sm:$0xff] %v347_v35   ;;  %v355_v37 = vld [vmem:[%s3376_s5 + $0x6c8] sm:$0xff]   ;;  %v359_v38 = vld [vmem:[%s3376_s5 + $0x6d0] sm:$0xff]  }
  0x32   : > { %352 = vst [vmem:[%s3381_s28 + $0x120] sm:$0xff] %v351_v36   ;;  %356 = vst [vmem:[%s3381_s28 + $0x128] sm:$0xff] %v355_v37   ;;  %v363_v39 = vld [vmem:[%s3376_s5 + $0x6d8] sm:$0xff]   ;;  %v367_v40 = vld [vmem:[%s3376_s5 + $0x6e0] sm:$0xff]  }
  0x33   : > { %360 = vst [vmem:[%s3381_s28 + $0x130] sm:$0xff] %v359_v38   ;;  %v371_v41 = vld [vmem:[%s3376_s5 + $0x6e8] sm:$0xff]   ;;  %364 = vst [vmem:[%s3381_s28 + $0x138] sm:$0xff] %v363_v39   ;;  %v375_v42 = vld [vmem:[%s3376_s5 + $0x6f0] sm:$0xff]  }
  0x34   : > { %368 = vst [vmem:[%s3381_s28 + $0x140] sm:$0xff] %v367_v40   ;;  %372 = vst [vmem:[%s3381_s28 + $0x148] sm:$0xff] %v371_v41   ;;  %v379_v43 = vld [vmem:[%s3376_s5 + $0x6f8] sm:$0xff]   ;;  %v383_v44 = vld [vmem:[%s3376_s5 + $0x700] sm:$0xff]  }
  0x35   : > { %376 = vst [vmem:[%s3381_s28 + $0x150] sm:$0xff] %v375_v42   ;;  %380 = vst [vmem:[%s3381_s28 + $0x158] sm:$0xff] %v379_v43   ;;  %v387_v45 = vld [vmem:[%s3376_s5 + $0x708] sm:$0xff]   ;;  %v391_v46 = vld [vmem:[%s3376_s5 + $0x710] sm:$0xff]  }
  0x36   : > { %384 = vst [vmem:[%s3381_s28 + $0x160] sm:$0xff] %v383_v44   ;;  %v395_v47 = vld [vmem:[%s3376_s5 + $0x718] sm:$0xff]   ;;  %388 = vst [vmem:[%s3381_s28 + $0x168] sm:$0xff] %v387_v45   ;;  %v399_v48 = vld [vmem:[%s3376_s5 + $0x720] sm:$0xff]  }
  0x37   : > { %392 = vst [vmem:[%s3381_s28 + $0x170] sm:$0xff] %v391_v46   ;;  %396 = vst [vmem:[%s3381_s28 + $0x178] sm:$0xff] %v395_v47   ;;  %v403_v49 = vld [vmem:[%s3376_s5 + $0x728] sm:$0xff]   ;;  %v407_v50 = vld [vmem:[%s3376_s5 + $0x730] sm:$0xff]  }
  0x38   : > { %400 = vst [vmem:[%s3381_s28 + $0x180] sm:$0xff] %v399_v48   ;;  %404 = vst [vmem:[%s3381_s28 + $0x188] sm:$0xff] %v403_v49   ;;  %v411_v51 = vld [vmem:[%s3376_s5 + $0x738] sm:$0xff]   ;;  %v415_v52 = vld [vmem:[%s3376_s5 + $0x740] sm:$0xff]  }
  0x39   : > { %408 = vst [vmem:[%s3381_s28 + $0x190] sm:$0xff] %v407_v50   ;;  %v419_v53 = vld [vmem:[%s3376_s5 + $0x748] sm:$0xff]   ;;  %412 = vst [vmem:[%s3381_s28 + $0x198] sm:$0xff] %v411_v51   ;;  %v423_v54 = vld [vmem:[%s3376_s5 + $0x750] sm:$0xff]  }
  0x3a   : > { %416 = vst [vmem:[%s3381_s28 + $0x1a0] sm:$0xff] %v415_v52   ;;  %420 = vst [vmem:[%s3381_s28 + $0x1a8] sm:$0xff] %v419_v53   ;;  %v427_v55 = vld [vmem:[%s3376_s5 + $0x758] sm:$0xff]   ;;  %v431_v56 = vld [vmem:[%s3376_s5 + $0x760] sm:$0xff]  }
  0x3b   : > { %424 = vst [vmem:[%s3381_s28 + $0x1b0] sm:$0xff] %v423_v54   ;;  %428 = vst [vmem:[%s3381_s28 + $0x1b8] sm:$0xff] %v427_v55   ;;  %v435_v57 = vld [vmem:[%s3376_s5 + $0x768] sm:$0xff]   ;;  %v439_v58 = vld [vmem:[%s3376_s5 + $0x770] sm:$0xff]  }
  0x3c   : > { %432 = vst [vmem:[%s3381_s28 + $0x1c0] sm:$0xff] %v431_v56   ;;  %v443_v59 = vld [vmem:[%s3376_s5 + $0x778] sm:$0xff]   ;;  %436 = vst [vmem:[%s3381_s28 + $0x1c8] sm:$0xff] %v435_v57   ;;  %v447_v60 = vld [vmem:[%s3376_s5 + $0x780] sm:$0xff]  }
  0x3d   : > { %440 = vst [vmem:[%s3381_s28 + $0x1d0] sm:$0xff] %v439_v58   ;;  %444 = vst [vmem:[%s3381_s28 + $0x1d8] sm:$0xff] %v443_v59   ;;  %v451_v61 = vld [vmem:[%s3376_s5 + $0x788] sm:$0xff]   ;;  %v455_v62 = vld [vmem:[%s3376_s5 + $0x790] sm:$0xff]  }
  0x3e   : > { %448 = vst [vmem:[%s3381_s28 + $0x1e0] sm:$0xff] %v447_v60   ;;  %452 = vst [vmem:[%s3381_s28 + $0x1e8] sm:$0xff] %v451_v61   ;;  %v459_v63 = vld [vmem:[%s3376_s5 + $0x798] sm:$0xff]   ;;  %v463_v0 = vld [vmem:[%s3376_s5 + $0x7a0] sm:$0xff]  }
  0x3f   : > { %456 = vst [vmem:[%s3381_s28 + $0x1f0] sm:$0xff] %v455_v62   ;;  %v467_v1 = vld [vmem:[%s3376_s5 + $0x7a8] sm:$0xff]   ;;  %460 = vst [vmem:[%s3381_s28 + $0x1f8] sm:$0xff] %v459_v63   ;;  %v471_v2 = vld [vmem:[%s3376_s5 + $0x7b0] sm:$0xff]  }
  0x40   : > { %464 = vst [vmem:[%s3381_s28 + $0x200] sm:$0xff] %v463_v0   ;;  %468 = vst [vmem:[%s3381_s28 + $0x208] sm:$0xff] %v467_v1   ;;  %v475_v3 = vld [vmem:[%s3376_s5 + $0x7b8] sm:$0xff]   ;;  %v479_v4 = vld [vmem:[%s3376_s5 + $0x7c0] sm:$0xff]  }
  0x41   : > { %472 = vst [vmem:[%s3381_s28 + $0x210] sm:$0xff] %v471_v2   ;;  %476 = vst [vmem:[%s3381_s28 + $0x218] sm:$0xff] %v475_v3   ;;  %v483_v5 = vld [vmem:[%s3376_s5 + $0x7c8] sm:$0xff]   ;;  %v487_v6 = vld [vmem:[%s3376_s5 + $0x7d0] sm:$0xff]  }
  0x42   : > { %480 = vst [vmem:[%s3381_s28 + $0x220] sm:$0xff] %v479_v4   ;;  %v491_v7 = vld [vmem:[%s3376_s5 + $0x7d8] sm:$0xff]   ;;  %484 = vst [vmem:[%s3381_s28 + $0x228] sm:$0xff] %v483_v5  }
  0x43   : > { %488 = vst [vmem:[%s3381_s28 + $0x230] sm:$0xff] %v487_v6   ;;  %492 = vst [vmem:[%s3381_s28 + $0x238] sm:$0xff] %v491_v7  }
  0x44 PF: > { %p2751_p11 = scmp.ge.s32.totalorder %s3253_s23, 1  ;;  %p804_p12 = scmp.lt.s32.totalorder %s3253_s23, 13 }
  0x46   : > { %p805_p13 = pnand %p2751_p11, %p804_p12 }
  0x47   : > { %s811_s27 = sand.u32 (!%p805_p13), 1, %s3229_s17   ;;  %s3255_s6 = smov (!%p805_p13), 4   ;;  %vm888_vm0 = vsmask.f32 (!%p805_p13), 3328  ;;  %vm889_vm1 = vsmask.f32 (!%p805_p13), 7440 }
  0x48   : > { %808 = sbr.rel (%p805_p13) target bundleno = 583 (0x247), region = 73  ;;  %s3256_s17 = smov (!%p805_p13), 12   ;;  %vm3584_vm2 = vmor (!%p805_p13), %vm888_vm0, %vm889_vm1  ;;  %vm2287_vm3 = vcmask (!%p805_p13), 1041408   ;;  %vm2128_vm4 = vcmask (!%p805_p13), 64512   ;;  %vm2103_vm5 = vcmask (!%p805_p13), 31744   ;;  %vm2145_vm6 = vcmask (!%p805_p13), 97280  }
  0x49   : > { %s3050_s29 = smul.u32 (!%p805_p13), 576, %s811_s27  ;;  %s3257_s7 = smov (!%p805_p13), 8   ;;  %vm2162_vm7 = vcmask (!%p805_p13), 130048   ;;  %vm2179_vm8 = vcmask (!%p805_p13), 162816   ;;  %vm2196_vm9 = vcmask (!%p805_p13), 195584   ;;  %vm2213_vm10 = vcmask (!%p805_p13), 228352  }
  0x4a   : > { %s3258_s11 = smov (!%p805_p13), 16   ;;  %s3259_s12 = smov (!%p805_p13), 20   ;;  %vm2230_vm11 = vcmask (!%p805_p13), 261120   ;;  %vm2270_vm12 = vcmask (!%p805_p13), 293888  }
  0x4b   : > { %s3527_s30 = scalar_lea.vmem (!%p805_p13), [#allocation3], %s3050_s29  ;;  %s3260_s13 = smov (!%p805_p13), 24  }
  0x4c   : > { %v3132_v8 = vld [vmem:[%s3527_s30 + $0x58] ss:$8 sps:$4 sm:$0xff] (!%p805_p13)   ;;  %v3133_v9 = vld [vmem:[%s3527_s30 + $0x48] ss:$8 sps:$4 sm:$0xff] (!%p805_p13)   ;;  %v880_v34 = vld [vmem:[%s3527_s30 + $0x124] sm:$0x1] (!%p805_p13) }
  0x4d   : > { %1745 = vrot.lane.b32.xlu1 (!%p805_p13), %v3132_v8, %s3255_s6  ;;  %v3134_v10 = vld [vmem:[%s3527_s30 + $0x178] ss:$8 sps:$4 sm:$0xff] (!%p805_p13)   ;;  %1743 = vrot.lane.b32.xlu0 (!%p805_p13), %v3133_v9, %s3255_s6  ;;  %v3135_v11 = vld [vmem:[%s3527_s30 + $0x168] ss:$8 sps:$4 sm:$0xff] (!%p805_p13)   ;;  %v1013_v39 = vshll.u32 (!%p805_p13), %v880_v34, 16  ;;  %s3261_s14 = smov (!%p805_p13), 28  }
  0x4e   : > { %v2777_v12 = vld [vmem:[%s3527_s30 + $0x1b0] sm:$0xf] (!%p805_p13)  ;;  %v2778_v13 = vld [vmem:[%s3527_s30 + $0x1b8] sm:$0xf] (!%p805_p13)  ;;  %v3541_v24 = vld [vmem:[%s3527_s30 + $0x120] sm:$0xf] (!%p805_p13) }
  0x4f   : > { %v2769_v14 = vld [vmem:[%s3527_s30 + $0x90] sm:$0xf]  ;;  %v1278_v15 = vshrl.u32 %v2777_v12, 16  ;;  %v1281_v16 = vshll.u32 %v2777_v12, 16  ;;  %v1292_v17 = vshrl.u32 %v2778_v13, 16  ;;  %v1295_v18 = vshll.u32 %v2778_v13, 16 }
  0x50   : > { %v2770_v19 = vld [vmem:[%s3527_s30 + $0x98] sm:$0xf]  ;;  %v2893_v20 = vcombine.low %v2777_v12, %v2778_v13  ;;  %v1166_v21 = vshrl.u32 %v2769_v14, 16  ;;  %v1169_v22 = vshll.u32 %v2769_v14, 16  ;;  %v3553_v29 = vld [vmem:[%s3527_s30 + $0x128] sm:$0xf] }
  0x51   : > { %1753 = vrot.lane.b32.xlu1 %v3134_v10, %s3255_s6  ;;  %v1180_v23 = vshrl.u32 %v2770_v19, 16  ;;  %1751 = vrot.lane.b32.xlu0 %v3135_v11, %s3255_s6  ;;  %v3544_v25 = vrot.slane %v1278_v15, 4  ;;  %v3546_v26 = vrot.slane %v1281_v16, 5  ;;  %v3548_v27 = vrot.slane %v1292_v17, 4  ;;  %v881_v36 = vld [vmem:[%s3527_s30 + $0x12c] sm:$0x1] }
  0x52   : > { %v3550_v28 = vrot.slane %v1295_v18, 5  ;;  %v3555_v30 = vrot.slane %v1166_v21, 4  ;;  %v3557_v31 = vrot.slane %v1169_v22, 5  ;;  %v1183_v33 = vshll.u32 %v2770_v19, 16  ;;  %v3571_v44 = vld [vmem:[%s3527_s30] sm:$0xf] }
  0x53   : > { %v3559_v32 = vrot.slane %v1180_v23, 4  ;;  %v2889_v35 = vcombine.low %v2769_v14, %v2770_v19  ;;  %v1004_v37 = vshrl.u32 %v3541_v24, 16  ;;  %v1007_v38 = vshll.u32 %v3541_v24, 16  ;;  %v3575_v48 = vld [vmem:[%s3527_s30 + $0x8] sm:$0xf]  ;;  %s832_s26 = sand.u32 1, %s3221_s15  }
  0x54   : > { %v3566_v40 = vrot.slane %v1183_v33, 5  ;;  %v1018_v41 = vshrl.u32 %v3553_v29, 16  ;;  %v1021_v42 = vshll.u32 %v3553_v29, 16  ;;  %v1027_v43 = vshll.u32 %v881_v36, 16  ;;  %v872_v53 = vld [vmem:[%s3527_s30 + $0x4] sm:$0x1] }
  0x55   : > { %1847 = vrot.lane.b32.xlu1 %v2893_v20, %s3256_s17  ;;  %1839 = vrot.lane.b32.xlu0 %v2889_v35, %s3256_s17  ;;  %v1006_v45 = vrot.slane %v1004_v37, 4  ;;  %v1009_v46 = vrot.slane %v1007_v38, 5  ;;  %v1015_v47 = vrot.slane %v1013_v39, 5  ;;  %v892_v49 = vshrl.u32 %v3571_v44, 16  ;;  %v873_v56 = vld [vmem:[%s3527_s30 + $0xc] sm:$0x1] }
  0x56   : > { %v1020_v50 = vrot.slane %v1018_v41, 4  ;;  %v1023_v51 = vrot.slane %v1021_v42, 5  ;;  %v1029_v52 = vrot.slane %v1027_v43, 5  ;;  %v895_v54 = vshll.u32 %v3571_v44, 16  ;;  %v3590_v1 = vld [vmem:[%s3527_s30 + $0x130] sm:$0xf] }
  0x57   : > { %v1010_v55 = vor.u32 %v1009_v46, %v1006_v45  ;;  %v894_v57 = vrot.slane %v892_v49, 4  ;;  %v901_v58 = vshll.u32 %v872_v53, 16  ;;  %v906_v59 = vshrl.u32 %v3575_v48, 16  ;;  %v3593_v5 = vld [vmem:[%s3527_s30 + $0x138] sm:$0xf]  ;;  %s2958_s5 = smul.u32 20, %s3237_s19 }
  0x58   : > { %v1024_v61 = vor.u32 %v1023_v51, %v1020_v50  ;;  %v897_v62 = vrot.slane %v895_v54, 5  ;;  %v909_v63 = vshll.u32 %v3575_v48, 16  ;;  %v915_v0 = vshll.u32 %v873_v56, 16  ;;  %v882_v11 = vld [vmem:[%s3527_s30 + $0x134] sm:$0x1]  ;;  %s3792_s15 = sshll.u32 %s832_s26, 6 }
  0x59   : > { %v1011_v2 = vrot.slane %v1010_v55, 4  ;;  %v903_v3 = vrot.slane %v901_v58, 5  ;;  %v908_v4 = vrot.slane %v906_v59, 4  ;;  %v1032_v6 = vshrl.u32 %v3590_v1, 16  ;;  %v883_v13 = vld [vmem:[%s3527_s30 + $0x13c] sm:$0x1]  ;;  %s3807_s29 = scalar_lea.vmem %s4225_s1, %s2958_s5 }
  0x5a   : > { %v1025_v7 = vrot.slane %v1024_v61, 4  ;;  %v898_v8 = vor.u32 %v897_v62, %v894_v57  ;;  %v911_v9 = vrot.slane %v909_v63, 5  ;;  %v917_v10 = vrot.slane %v915_v0, 5  ;;  %v3605_v21 = vld [vmem:[%s3527_s30 + $0x10] sm:$0xf]  ;;  %s3262_s26 = smov 32  }
  0x5b   : > { %v1016_v12 = vsel %vm3584_vm2, %v1011_v2, %v1015_v47  ;;  %v1034_v14 = vrot.slane %v1032_v6, 4  ;;  %v1035_v15 = vshll.u32 %v3590_v1, 16  ;;  %v1041_v16 = vshll.u32 %v882_v11, 16  ;;  %v3608_v22 = vld [vmem:[%s3527_s30 + $0x18] sm:$0xf]  ;;  %p2949_p0 = scmp.ne.s32.totalorder %s3237_s19, 0 }
  0x5c   : > { %v1030_v17 = vsel %vm3584_vm2, %v1025_v7, %v1029_v52  ;;  %v899_v18 = vrot.slane %v898_v8, 4  ;;  %v912_v19 = vor.u32 %v911_v9, %v908_v4  ;;  %v1046_v20 = vshrl.u32 %v3593_v5, 16  ;;  %v874_v36 = vld [vmem:[%s3527_s30 + $0x14] sm:$0x1]  ;;  %v875_v50 = vld [vmem:[%s3527_s30 + $0x1c] sm:$0x1] }
  0x5d   : > { %v2885_v23 = vcombine.low %v1016_v12, %v1030_v17  ;;  %v1037_v33 = vrot.slane %v1035_v15, 5  ;;  %v1043_v34 = vrot.slane %v1041_v16, 5  ;;  %v1049_v35 = vshll.u32 %v3593_v5, 16  ;;  %v2779_v57 = vld [vmem:[%s3527_s30 + $0x1c0] sm:$0xf] }
  0x5e   : > { %v904_v37 = vsel %vm3584_vm2, %v899_v18, %v903_v3  ;;  %v913_v38 = vrot.slane %v912_v19, 4  ;;  %v1048_v39 = vrot.slane %v1046_v20, 4  ;;  %v1055_v41 = vshll.u32 %v883_v13, 16  ;;  %v2780_v58 = vld [vmem:[%s3527_s30 + $0x1c8] sm:$0xf] }
  0x5f   : > { %1791 = vrot.lane.b32.xlu1 %v2885_v23, %s3257_s7  ;;  %v1038_v42 = vor.u32 %v1037_v33, %v1034_v14  ;;  %v1051_v43 = vrot.slane %v1049_v35, 5  ;;  %v920_v45 = vshrl.u32 %v3605_v21, 16  ;;  %v923_v46 = vshll.u32 %v3605_v21, 16  ;;  %v2772_v19 = vld [vmem:[%s3527_s30 + $0xa8] sm:$0xf] }
  0x60   : > { %v918_v47 = vsel %vm3584_vm2, %v913_v38, %v917_v10  ;;  %v1057_v49 = vrot.slane %v1055_v41, 5  ;;  %v929_v51 = vshll.u32 %v874_v36, 16  ;;  %v934_v52 = vshrl.u32 %v3608_v22, 16  ;;  %v3628_v10 = vld [vmem:[%s3527_s30 + $0xa0] sm:$0xf] }
  0x61   : > { %v2881_v53 = vcombine.low %v904_v37, %v918_v47  ;;  %v1039_v54 = vrot.slane %v1038_v42, 4  ;;  %v1052_v55 = vor.u32 %v1051_v43, %v1048_v39  ;;  %v922_v56 = vrot.slane %v920_v45, 4 }
  0x62   : > { %v925_v59 = vrot.slane %v923_v46, 5  ;;  %v931_v61 = vrot.slane %v929_v51, 5  ;;  %v936_v62 = vrot.slane %v934_v52, 4  ;;  %v937_v63 = vshll.u32 %v3608_v22, 16 }
  0x63   : > { %1783 = vrot.lane.b32.xlu0 %v2881_v53, %s3257_s7  ;;  %v1044_v0 = vsel %vm3584_vm2, %v1039_v54, %v1043_v34  ;;  %v1053_v2 = vrot.slane %v1052_v55, 4  ;;  %v943_v3 = vshll.u32 %v875_v50, 16  ;;  %v1306_v4 = vshrl.u32 %v2779_v57, 16  ;;  %v2809_v53 = vld [vmem:[%s3527_s30 + $0x1b4] sm:$0x1] }
  0x64   : > { %v926_v6 = vor.u32 %v925_v59, %v922_v56  ;;  %v939_v7 = vrot.slane %v937_v63, 5  ;;  %v1309_v8 = vshll.u32 %v2779_v57, 16  ;;  %v1320_v9 = vshrl.u32 %v2780_v58, 16  ;;  %v2810_v54 = vld [vmem:[%s3527_s30 + $0x1bc] sm:$0x1] }
  0x65   : > { %v1058_v11 = vsel %vm3584_vm2, %v1053_v2, %v1057_v49  ;;  %v945_v12 = vrot.slane %v943_v3, 5  ;;  %v1308_v13 = vrot.slane %v1306_v4, 4  ;;  %v1323_v14 = vshll.u32 %v2780_v58, 16  ;;  %v3140_v49 = vld [vmem:[%s3527_s30 + $0x1f8] ss:$8 sps:$4 sm:$0xff]  }
  0x66   : > { %v2886_v15 = vcombine.low %v1044_v0, %v1058_v11  ;;  %v927_v16 = vrot.slane %v926_v6, 4  ;;  %v940_v17 = vor.u32 %v939_v7, %v936_v62  ;;  %v1311_v18 = vrot.slane %v1309_v8, 5  ;;  %v2811_v62 = vld [vmem:[%s3527_s30 + $0x1c4] sm:$0x1]  ;;  %v2812_v4 = vld [vmem:[%s3527_s30 + $0x1cc] sm:$0x1] }
  0x67   : > { %v1322_v20 = vrot.slane %v1320_v9, 4  ;;  %v1325_v23 = vrot.slane %v1323_v14, 5  ;;  %v2894_v33 = vcombine.low %v2779_v57, %v2780_v58  ;;  %v1194_v34 = vshrl.u32 %v3628_v10, 16  ;;  %v2801_v58 = vld [vmem:[%s3527_s30 + $0x94] sm:$0x1] }
  0x68   : > { %1793 = vrot.lane.b32.xlu1 %v2886_v15, %s3257_s7  ;;  %v932_v35 = vsel %vm3584_vm2, %v927_v16, %v931_v61  ;;  %v941_v36 = vrot.slane %v940_v17, 4  ;;  %v1197_v37 = vshll.u32 %v3628_v10, 16  ;;  %v1208_v38 = vshrl.u32 %v2772_v19, 16  ;;  %v2803_v8 = vld [vmem:[%s3527_s30 + $0xa4] sm:$0x1] }
  0x69   : > { %v1196_v39 = vrot.slane %v1194_v34, 4  ;;  %v1211_v41 = vshll.u32 %v2772_v19, 16  ;;  %v2890_v42 = vcombine.low %v3628_v10, %v2772_v19  ;;  %v1284_v43 = vor.u32 %v3546_v26, %v3544_v25  ;;  %v3142_v9 = vld [vmem:[%s3527_s30 + $0x208] ss:$8 sps:$4 sm:$0xff]   ;;  %v2804_v14 = vld [vmem:[%s3527_s30 + $0xac] sm:$0x1] }
  0x6a   : > { %v946_v45 = vsel %vm3584_vm2, %v941_v36, %v945_v12  ;;  %v1199_v46 = vrot.slane %v1197_v37, 5  ;;  %v1210_v47 = vrot.slane %v1208_v38, 4  ;;  %v1298_v50 = vor.u32 %v3550_v28, %v3548_v27  ;;  %v2802_v27 = vld [vmem:[%s3527_s30 + $0x9c] sm:$0x1]  ;;  %v3141_v15 = vld [vmem:[%s3527_s30 + $0xd8] ss:$8 sps:$4 sm:$0xff]  }
  0x6b   : > { %v2882_v51 = vcombine.low %v932_v35, %v946_v45  ;;  %v1213_v52 = vrot.slane %v1211_v41, 5  ;;  %v1285_v55 = vrot.slane %v1284_v43, 4  ;;  %v1172_v25 = vor.u32 %v3557_v31, %v3555_v30  ;;  %v3143_v34 = vld [vmem:[%s3527_s30 + $0xe8] ss:$8 sps:$4 sm:$0xff]  }
  0x6c   : > { %1849 = vrot.lane.b32.xlu1 %v2894_v33, %s3256_s17  ;;  %v1287_v26 = vshll.u32 %v2809_v53, 16  ;;  %v1299_v56 = vrot.slane %v1298_v50, 4  ;;  %v1301_v57 = vshll.u32 %v2810_v54, 16  ;;  %v1186_v59 = vor.u32 %v3566_v40, %v3559_v32  ;;  %v3676_v41 = vld [vmem:[%s3527_s30 + $0x128] sm:$0xf] }
  0x6d   : > { %1785 = vrot.lane.b32.xlu0 %v2882_v51, %s3257_s7  ;;  %v1173_v28 = vrot.slane %v1172_v25, 4  ;;  %v1175_v61 = vshll.u32 %v2801_v58, 16  ;;  %v1312_v63 = vor.u32 %v1311_v18, %v1308_v13  ;;  %v1326_v30 = vor.u32 %v1325_v23, %v1322_v20  ;;  %v3689_v54 = vld [vmem:[%s3527_s30 + $0x10] sm:$0xf] }
  0x6e   : > { %v1289_v31 = vrot.slane %v1287_v26, 5  ;;  %v1303_v0 = vrot.slane %v1301_v57, 5  ;;  %v1187_v2 = vrot.slane %v1186_v59, 4  ;;  %v1189_v3 = vshll.u32 %v2802_v27, 16  ;;  %v3695_v57 = vld [vmem:[%s3527_s30 + $0x138] sm:$0xf] }
  0x6f   : > { %v1177_v6 = vrot.slane %v1175_v61, 5  ;;  %v1313_v7 = vrot.slane %v1312_v63, 4  ;;  %v1315_v32 = vshll.u32 %v2811_v62, 16  ;;  %v1327_v40 = vrot.slane %v1326_v30, 4  ;;  %v2828_v61 = vld [vmem:[%s3527_s30 + $0x140] sm:$0xf] }
  0x70   : > { %1903 = vrot.lane.b32.xlu1 %v3140_v49, %s3258_s11  ;;  %v1290_v10 = vsel %vm3584_vm2, %v1285_v55, %v1289_v31  ;;  %v1304_v11 = vsel %vm3584_vm2, %v1299_v56, %v1303_v0  ;;  %v1191_v12 = vrot.slane %v1189_v3, 5  ;;  %v1329_v13 = vshll.u32 %v2812_v4, 16  ;;  %v3708_v0 = vld [vmem:[%s3527_s30 + $0x18] sm:$0xf] }
  0x71   : > { %1841 = vrot.lane.b32.xlu0 %v2890_v42, %s3256_s17  ;;  %v2909_v16 = vcombine.low %v1290_v10, %v1304_v11  ;;  %v1317_v17 = vrot.slane %v1315_v32, 5  ;;  %v1200_v18 = vor.u32 %v1199_v46, %v1196_v39  ;;  %v1178_v19 = vsel %vm3584_vm2, %v1173_v28, %v1177_v6  ;;  %v2826_v39 = vld [vmem:[%s3527_s30 + $0x130] sm:$0xf]  ;;  %v3715_v11 = vld [vmem:[%s3527_s30 + $0x20] sm:$0xf] }
  0x72   : > { %v1331_v20 = vrot.slane %v1329_v13, 5  ;;  %v1203_v23 = vshll.u32 %v2803_v8, 16  ;;  %v1214_v33 = vor.u32 %v1213_v52, %v1210_v47  ;;  %v1192_v35 = vsel %vm3584_vm2, %v1187_v2, %v1191_v12  ;;  %v3684_v47 = vld [vmem:[%s3527_s30 + $0x8] sm:$0xf] }
  0x73   : > { %v1318_v36 = vsel %vm3584_vm2, %v1313_v7, %v1317_v17  ;;  %v1201_v37 = vrot.slane %v1200_v18, 4  ;;  %v1217_v38 = vshll.u32 %v2804_v14, 16  ;;  %v1552_v46 = vshrl.u32 %v3676_v41, 16 }
  0x74   : > { %1905 = vrot.lane.b32.xlu1 %v3142_v9, %s3258_s11  ;;  %v1332_v42 = vsel %vm3584_vm2, %v1327_v40, %v1331_v20  ;;  %v1205_v43 = vrot.slane %v1203_v23, 5  ;;  %v1215_v45 = vrot.slane %v1214_v33, 4  ;;  %v1555_v50 = vshll.u32 %v3676_v41, 16 }
  0x75   : > { %1895 = vrot.lane.b32.xlu0 %v3141_v15, %s3258_s11  ;;  %v1219_v49 = vrot.slane %v1217_v38, 5  ;;  %v1566_v51 = vshrl.u32 %v2826_v39, 16  ;;  %v2905_v52 = vcombine.low %v1178_v19, %v1192_v35  ;;  %v1569_v53 = vshll.u32 %v2826_v39, 16  ;;  %v2857_v35 = vld [vmem:[%s3527_s30 + $0x12c] sm:$0x1] }
  0x76   : > { %v2910_v55 = vcombine.low %v1318_v36, %v1332_v42  ;;  %v1206_v25 = vsel %vm3584_vm2, %v1201_v37, %v1205_v43  ;;  %v1554_v26 = vrot.slane %v1552_v46, 4  ;;  %v1440_v56 = vshrl.u32 %v3684_v47, 16  ;;  %v2858_v36 = vld [vmem:[%s3527_s30 + $0x134] sm:$0x1] }
  0x77   : > { %v1220_v58 = vsel %vm3584_vm2, %v1215_v45, %v1219_v49  ;;  %v2917_v59 = vcombine.low %v3676_v41, %v2826_v39  ;;  %v1443_v27 = vshll.u32 %v3684_v47, 16  ;;  %v1454_v28 = vshrl.u32 %v3689_v54, 16  ;;  %v2849_v45 = vld [vmem:[%s3527_s30 + $0xc] sm:$0x1]  ;;  %v2850_v49 = vld [vmem:[%s3527_s30 + $0x14] sm:$0x1] }
  0x78   : > { %1943 = vrot.lane.b32.xlu1 %v2909_v16, %s3259_s12  ;;  %v1557_v62 = vrot.slane %v1555_v50, 5  ;;  %v1568_v63 = vrot.slane %v1566_v51, 4  ;;  %v1457_v30 = vshll.u32 %v3689_v54, 16  ;;  %v1580_v31 = vshrl.u32 %v3695_v57, 16 }
  0x79   : > { %1897 = vrot.lane.b32.xlu0 %v3143_v34, %s3258_s11  ;;  %v1571_v2 = vrot.slane %v1569_v53, 5  ;;  %v1442_v3 = vrot.slane %v1440_v56, 4  ;;  %v1583_v4 = vshll.u32 %v3695_v57, 16  ;;  %v1594_v6 = vshrl.u32 %v2828_v61, 16 }
  0x7a   : > { %v1445_v7 = vrot.slane %v1443_v27, 5  ;;  %v1456_v32 = vrot.slane %v1454_v28, 4  ;;  %v1459_v40 = vrot.slane %v1457_v30, 5  ;;  %v1597_v8 = vshll.u32 %v2828_v61, 16 }
  0x7b   : > { %v2906_v9 = vcombine.low %v1206_v25, %v1220_v58  ;;  %v2913_v10 = vcombine.low %v3684_v47, %v3689_v54  ;;  %v1468_v12 = vshrl.u32 %v3708_v0, 16  ;;  %v1471_v13 = vshll.u32 %v3708_v0, 16 }
  0x7c   : > { %1945 = vrot.lane.b32.xlu1 %v2910_v55, %s3259_s12  ;;  %v1582_v14 = vrot.slane %v1580_v31, 4  ;;  %v1585_v15 = vrot.slane %v1583_v4, 5  ;;  %v1482_v16 = vshrl.u32 %v3715_v11, 16  ;;  %v1485_v17 = vshll.u32 %v3715_v11, 16 }
  0x7d   : > { %1935 = vrot.lane.b32.xlu0 %v2905_v52, %s3259_s12  ;;  %v1596_v18 = vrot.slane %v1594_v6, 4  ;;  %v1599_v19 = vrot.slane %v1597_v8, 5  ;;  %v1558_v20 = vor.u32 %v1557_v62, %v1554_v26  ;;  %v1572_v23 = vor.u32 %v1571_v2, %v1568_v63  ;;  %v3148_v52 = vld [vmem:[%s3527_s30 + $0x170] ss:$8 sps:$4 sm:$0xff]   ;;  %v2859_v62 = vld [vmem:[%s3527_s30 + $0x13c] sm:$0x1] }
  0x7e   : > { %v2918_v33 = vcombine.low %v3695_v57, %v2828_v61  ;;  %v1470_v34 = vrot.slane %v1468_v12, 4  ;;  %v1446_v37 = vor.u32 %v1445_v7, %v1442_v3  ;;  %v1460_v38 = vor.u32 %v1459_v40, %v1456_v32  ;;  %v2860_v63 = vld [vmem:[%s3527_s30 + $0x144] sm:$0x1]  ;;  %v2851_v7 = vld [vmem:[%s3527_s30 + $0x1c] sm:$0x1] }
  0x7f   : > { %v1473_v41 = vrot.slane %v1471_v13, 5  ;;  %v1484_v39 = vrot.slane %v1482_v16, 4  ;;  %v1561_v42 = vshll.u32 %v2857_v35, 16  ;;  %v1575_v43 = vshll.u32 %v2858_v36, 16  ;;  %v2852_v32 = vld [vmem:[%s3527_s30 + $0x24] sm:$0x1] }
  0x80   : > { %1999 = vrot.lane.b32.xlu1 %v2917_v59, %s3260_s13  ;;  %v1487_v46 = vrot.slane %v1485_v17, 5  ;;  %v1559_v47 = vrot.slane %v1558_v20, 4  ;;  %v1449_v50 = vshll.u32 %v2849_v45, 16  ;;  %v1586_v51 = vor.u32 %v1585_v15, %v1582_v14  ;;  %v3149_v8 = vld [vmem:[%s3527_s30 + $0x50] ss:$8 sps:$4 sm:$0xff]  }
  0x81   : > { %1937 = vrot.lane.b32.xlu0 %v2906_v9, %s3259_s12  ;;  %v1563_v53 = vrot.slane %v1561_v42, 5  ;;  %v1573_v54 = vrot.slane %v1572_v23, 4  ;;  %v1463_v55 = vshll.u32 %v2850_v49, 16  ;;  %v1600_v25 = vor.u32 %v1599_v19, %v1596_v18  ;;  %v3150_v9 = vld [vmem:[%s3527_s30 + $0x180] ss:$8 sps:$4 sm:$0xff]  }
  0x82   : > { %v1577_v26 = vrot.slane %v1575_v43, 5  ;;  %v1447_v56 = vrot.slane %v1446_v37, 4  ;;  %v1451_v57 = vrot.slane %v1449_v50, 5  ;;  %v1461_v58 = vrot.slane %v1460_v38, 4  ;;  %v3151_v35 = vld [vmem:[%s3527_s30 + $0x60] ss:$8 sps:$4 sm:$0xff]  }
  0x83   : > { %v2914_v59 = vcombine.low %v3708_v0, %v3715_v11  ;;  %v1465_v27 = vrot.slane %v1463_v55, 5  ;;  %v1587_v28 = vrot.slane %v1586_v51, 4  ;;  %v1474_v61 = vor.u32 %v1473_v41, %v1470_v34  ;;  %v3778_v41 = vld [vmem:[%s3527_s30 + $0x140] sm:$0xf]  ;;  %v884_v42 = vld [vmem:[%s3527_s30 + $0x144] sm:$0x1] }
  0x84   : > { %2001 = vrot.lane.b32.xlu1 %v2918_v33, %s3260_s13  ;;  %v1601_v30 = vrot.slane %v1600_v25, 4  ;;  %v1488_v31 = vor.u32 %v1487_v46, %v1484_v39  ;;  %v2866_v2 = vcombine.low %v3605_v21, %v3608_v22  ;;  %v2865_v3 = vcombine.low %v3571_v44, %v3575_v48  ;;  %v3781_v39 = vld [vmem:[%s3527_s30 + $0x148] sm:$0xf]  ;;  %v885_v45 = vld [vmem:[%s3527_s30 + $0x14c] sm:$0x1] }
  0x85   : > { %1991 = vrot.lane.b32.xlu0 %v2913_v10, %s3260_s13  ;;  %v1564_v0 = vsel %vm3584_vm2, %v1559_v47, %v1563_v53  ;;  %v1589_v4 = vshll.u32 %v2859_v62, 16  ;;  %v1603_v6 = vshll.u32 %v2860_v63, 16  ;;  %v2870_v40 = vcombine.low %v3590_v1, %v3593_v5  ;;  %v3152_v55 = vld [vmem:[%s3527_s30 + $0x188] ss:$8 sps:$4 sm:$0xff]  }
  0x86   : > { %v1578_v10 = vsel %vm3584_vm2, %v1573_v54, %v1577_v26  ;;  %v1452_v11 = vsel %vm3584_vm2, %v1447_v56, %v1451_v57  ;;  %v1466_v12 = vsel %vm3584_vm2, %v1461_v58, %v1465_v27  ;;  %v1477_v13 = vshll.u32 %v2851_v7, 16  ;;  %v3802_v54 = vld [vmem:[%s3527_s30 + $0x20] sm:$0xf]  ;;  %v3811_v57 = vld [vmem:[%s3527_s30 + $0x28] sm:$0xf] }
  0x87   : > { %v1591_v14 = vrot.slane %v1589_v4, 5  ;;  %v1605_v15 = vrot.slane %v1603_v6, 5  ;;  %v3755_v16 = vrot.slane %v1474_v61, 4  ;;  %v1491_v17 = vshll.u32 %v2852_v32, 16  ;;  %v876_v61 = vld [vmem:[%s3527_s30 + $0x24] sm:$0x1] }
  0x88   : > { %2055 = vrot.lane.b32.xlu1 %v3148_v52, %s3261_s14  ;;  %v3758_v18 = vrot.slane %v1477_v13, 5  ;;  %v3760_v19 = vrot.slane %v1488_v31, 4  ;;  %v2869_v20 = vcombine.low %v3541_v24, %v3553_v29  ;;  %v2933_v36 = vcombine.low %v1564_v0, %v1578_v10  ;;  %v3176_v6 = vld [vmem:[%s3807_s29] sm:$0xff]   ;;  %v3823_v10 = vld [vmem:[%s3527_s30 + $0x150] sm:$0xf] }
  0x89   : > { %1993 = vrot.lane.b32.xlu0 %v2914_v59, %s3260_s13  ;;  %v1592_v23 = vsel %vm3584_vm2, %v1587_v28, %v1591_v14  ;;  %v1606_v33 = vsel %vm3584_vm2, %v1601_v30, %v1605_v15  ;;  %v3770_v34 = vrot.slane %v1491_v17, 5  ;;  %v3773_v37 = vcombine.low %v1452_v11, %v1466_v12  ;;  %v877_v30 = vld [vmem:[%s3527_s30 + $0x2c] sm:$0x1]  ;;  %v3829_v15 = vld [vmem:[%s3527_s30 + $0x158] sm:$0xf]  ;;  %3018 = vmatprep.subr.bf16.mxu0 %v3176_v6 }
  0x8a   : > { %v3775_v38 = vcombine.low %v1592_v23, %v1606_v33  ;;  %v1480_v43 = vsel %vm3584_vm2, %v3755_v16, %v3758_v18  ;;  %v1060_v46 = vshrl.u32 %v3778_v41, 16  ;;  %v1063_v47 = vshll.u32 %v3778_v41, 16  ;;  %v3177_v11 = vld [vmem:[%s3807_s29 + $0x8] sm:$0xff]   ;;  %3040 = vmatprep.subr.bf16.mxu1 %v3176_v6  ;;  %3019 = vmatpush3.bf16.msra.mxu0 %v3176_v6 }
  0x8b   : > { %v1069_v49 = vshll.u32 %v884_v42, 16  ;;  %v1494_v50 = vsel %vm3584_vm2, %v3760_v19, %v3770_v34  ;;  %v1074_v51 = vshrl.u32 %v3781_v39, 16  ;;  %v1077_v52 = vshll.u32 %v3781_v39, 16  ;;  %3043 = vmatpush3.bf16.msra.mxu1 %v3176_v6  ;;  %v887_v42 = vld [vmem:[%s3527_s30 + $0x15c] sm:$0x1]  ;;  %3020 = vmatprep.subr.bf16.mxu0 %v3177_v11 }
  0x8c   : > { %2057 = vrot.lane.b32.xlu1 %v3150_v9, %s3261_s14  ;;  %v1083_v53 = vshll.u32 %v885_v45, 16  ;;  %v1062_v25 = vrot.slane %v1060_v46, 4  ;;  %v1065_v26 = vrot.slane %v1063_v47, 5  ;;  %v948_v58 = vshrl.u32 %v3802_v54, 16  ;;  %3041 = vmatprep.subr.bf16.mxu1 %v3177_v11 }
  0x8d   : > { %2047 = vrot.lane.b32.xlu0 %v3149_v8, %s3261_s14  ;;  %v1071_v56 = vrot.slane %v1069_v49, 5  ;;  %v1076_v59 = vrot.slane %v1074_v51, 4  ;;  %v1079_v27 = vrot.slane %v1077_v52, 5  ;;  %v951_v62 = vshll.u32 %v3802_v54, 16  ;;  %v3153_v49 = vld [vmem:[%s3527_s30 + $0x68] ss:$8 sps:$4 sm:$0xff]  }
  0x8e   : > { %v1085_v28 = vrot.slane %v1083_v53, 5  ;;  %v1066_v63 = vor.u32 %v1065_v26, %v1062_v25  ;;  %v950_v31 = vrot.slane %v948_v58, 4  ;;  %v957_v0 = vshll.u32 %v876_v61, 16  ;;  %v3847_v25 = vld [vmem:[%s3527_s30 + $0x30] sm:$0xf]  ;;  %3021 = vmatpush3.bf16.msra.mxu0 %v3177_v11 }
  0x8f   : > { %v962_v4 = vshrl.u32 %v3811_v57, 16  ;;  %v1080_v7 = vor.u32 %v1079_v27, %v1076_v59  ;;  %v953_v32 = vrot.slane %v951_v62, 5  ;;  %v965_v8 = vshll.u32 %v3811_v57, 16  ;;  %v3856_v58 = vld [vmem:[%s3527_s30 + $0x38] sm:$0xf]  ;;  %3044 = vmatpush3.bf16.msra.mxu1 %v3177_v11 }
  0x90   : > { %2095 = vrot.lane.b32.xlu1 %v2933_v36, %s3262_s26  ;;  %v971_v9 = vshll.u32 %v877_v30, 16  ;;  %v1067_v12 = vrot.slane %v1066_v63, 4  ;;  %v3826_v13 = vrot.slane %v957_v0, 5  ;;  %v1088_v17 = vshrl.u32 %v3823_v10, 16  ;;  %v878_v59 = vld [vmem:[%s3527_s30 + $0x34] sm:$0x1] }
  0x91   : > { %2049 = vrot.lane.b32.xlu0 %v3151_v35, %s3261_s14  ;;  %v964_v14 = vrot.slane %v962_v4, 4  ;;  %v1081_v19 = vrot.slane %v1080_v7, 4  ;;  %v954_v23 = vor.u32 %v953_v32, %v950_v31  ;;  %v967_v33 = vrot.slane %v965_v8, 5  ;;  %v886_v35 = vld [vmem:[%s3527_s30 + $0x154] sm:$0x1] }
  0x92   : > { %v3832_v34 = vrot.slane %v971_v9, 5  ;;  %v1072_v36 = vsel %vm3584_vm2, %v1067_v12, %v1071_v56  ;;  %v1090_v45 = vrot.slane %v1088_v17, 4  ;;  %v1091_v46 = vshll.u32 %v3823_v10, 16  ;;  %v3154_v63 = vld [vmem:[%s3527_s30 + $0x198] ss:$8 sps:$4 sm:$0xff]  }
  0x93   : > { %v1097_v47 = vshll.u32 %v886_v35, 16  ;;  %v1086_v51 = vsel %vm3584_vm2, %v1081_v19, %v1085_v28  ;;  %v955_v52 = vrot.slane %v954_v23, 4  ;;  %v968_v53 = vor.u32 %v967_v33, %v964_v14  ;;  %v879_v0 = vld [vmem:[%s3527_s30 + $0x3c] sm:$0x1]  ;;  %v3155_v35 = vld [vmem:[%s3527_s30 + $0x78] ss:$8 sps:$4 sm:$0xff]  }
  0x94   : > { %1755 = vrot.lane.b32.xlu1 %v3152_v55, %s3255_s6  ;;  %v1102_v55 = vshrl.u32 %v3829_v15, 16  ;;  %v2930_v26 = vcombine.low %v1480_v43, %v1494_v50  ;;  %v1093_v56 = vrot.slane %v1091_v46, 5  ;;  %v2887_v27 = vcombine.low %v1072_v36, %v1086_v51 }
  0x95   : > { %2087 = vrot.lane.b32.xlu0 %v3773_v37, %s3262_s26  ;;  %v1105_v37 = vshll.u32 %v3829_v15, 16  ;;  %v969_v28 = vrot.slane %v968_v53, 4  ;;  %v1111_v62 = vshll.u32 %v887_v42, 16  ;;  %v976_v18 = vshrl.u32 %v3847_v25, 16  ;;  %v3887_v53 = vld [vmem:[%s3527_s30 + $0xb8] sm:$0xf] }
  0x96   : > { %v1104_v61 = vrot.slane %v1102_v55, 4  ;;  %v1094_v30 = vor.u32 %v1093_v56, %v1090_v45  ;;  %v979_v43 = vshll.u32 %v3847_v25, 16  ;;  %v960_v50 = vsel %vm3584_vm2, %v955_v52, %v3826_v13  ;;  %v2781_v13 = vld [vmem:[%s3527_s30 + $0x1d0] sm:$0xf]  ;;  %v2782_v45 = vld [vmem:[%s3527_s30 + $0x1d8] sm:$0xf] }
  0x97   : > { %v1107_v16 = vrot.slane %v1105_v37, 5  ;;  %v1099_v31 = vrot.slane %v1097_v47, 5  ;;  %v985_v4 = vshll.u32 %v878_v59, 16  ;;  %v990_v6 = vshrl.u32 %v3856_v58, 16  ;;  %v3884_v52 = vld [vmem:[%s3527_s30 + $0xb0] sm:$0xf] }
  0x98   : > { %2097 = vrot.lane.b32.xlu1 %v3775_v38, %s3262_s26  ;;  %v1095_v38 = vrot.slane %v1094_v30, 4  ;;  %v1113_v32 = vrot.slane %v1111_v62, 5  ;;  %v978_v8 = vrot.slane %v976_v18, 4  ;;  %v974_v9 = vsel %vm3584_vm2, %v969_v28, %v3832_v34 }
  0x99   : > { %1747 = vrot.lane.b32.xlu0 %v3153_v49, %s3255_s6  ;;  %v1108_v7 = vor.u32 %v1107_v16, %v1104_v61  ;;  %v981_v11 = vrot.slane %v979_v43, 5  ;;  %v992_v12 = vrot.slane %v990_v6, 4  ;;  %v993_v14 = vshll.u32 %v3856_v58, 16 }
  0x9a   : > { %v987_v19 = vrot.slane %v985_v4, 5  ;;  %v999_v23 = vshll.u32 %v879_v0, 16  ;;  %v1334_v33 = vshrl.u32 %v2781_v13, 16  ;;  %v1100_v36 = vsel %vm3584_vm2, %v1095_v38, %v1099_v31 }
  0x9b   : > { %v1109_v17 = vrot.slane %v1108_v7, 4  ;;  %v982_v34 = vor.u32 %v981_v11, %v978_v8  ;;  %v995_v42 = vrot.slane %v993_v14, 5  ;;  %v1337_v46 = vshll.u32 %v2781_v13, 16  ;;  %v3902_v8 = vld [vmem:[%s3527_s30 + $0xc0] sm:$0xf] }
  0x9c   : > { %1757 = vrot.lane.b32.xlu1 %v3154_v63, %s3255_s6  ;;  %v1348_v49 = vshrl.u32 %v2782_v45, 16  ;;  %v1351_v51 = vshll.u32 %v2782_v45, 16  ;;  %v2883_v55 = vcombine.low %v960_v50, %v974_v9  ;;  %v1001_v37 = vrot.slane %v999_v23, 5  ;;  %v2783_v63 = vld [vmem:[%s3527_s30 + $0x1e0] sm:$0xf] }
  0x9d   : > { %2089 = vrot.lane.b32.xlu0 %v2930_v26, %s3262_s26  ;;  %v1114_v47 = vsel %vm3584_vm2, %v1109_v17, %v1113_v32  ;;  %v983_v26 = vrot.slane %v982_v34, 4  ;;  %v996_v56 = vor.u32 %v995_v42, %v992_v12  ;;  %v1336_v28 = vrot.slane %v1334_v33, 4  ;;  %v2784_v50 = vld [vmem:[%s3527_s30 + $0x1e8] sm:$0xf] }
  0x9e   : > { %v2888_v59 = vcombine.low %v1100_v36, %v1114_v47  ;;  %v1339_v61 = vrot.slane %v1337_v46, 5  ;;  %v1222_v62 = vshrl.u32 %v3884_v52, 16  ;;  %v1225_v18 = vshll.u32 %v3884_v52, 16  ;;  %v3905_v9 = vld [vmem:[%s3527_s30 + $0xc8] sm:$0xf] }
  0x9f   : > { %v988_v30 = vsel %vm3584_vm2, %v983_v26, %v987_v19  ;;  %v997_v16 = vrot.slane %v996_v56, 4  ;;  %v1236_v43 = vshrl.u32 %v3887_v53, 16  ;;  %v1353_v31 = vrot.slane %v1351_v51, 5 }
  0xa0   : > { %1795 = vrot.lane.b32.xlu1 %v2887_v27, %s3257_s7  ;;  %v1350_v27 = vrot.slane %v1348_v49, 4  ;;  %v1239_v0 = vshll.u32 %v3887_v53, 16  ;;  %v1362_v4 = vshrl.u32 %v2783_v63, 16  ;;  %v2895_v38 = vcombine.low %v2781_v13, %v2782_v45 }
  0xa1   : > { %1749 = vrot.lane.b32.xlu0 %v3155_v35, %s3255_s6  ;;  %v1002_v6 = vsel %vm3584_vm2, %v997_v16, %v1001_v37  ;;  %v1224_v7 = vrot.slane %v1222_v62, 4  ;;  %v1365_v32 = vshll.u32 %v2783_v63, 16  ;;  %v1227_v12 = vrot.slane %v1225_v18, 5  ;;  %v2814_v62 = vld [vmem:[%s3527_s30 + $0x1dc] sm:$0x1] }
  0xa2   : > { %v2884_v11 = vcombine.low %v988_v30, %v1002_v6  ;;  %v1238_v14 = vrot.slane %v1236_v43, 4  ;;  %v1376_v17 = vshrl.u32 %v2784_v50, 16  ;;  %v1241_v19 = vrot.slane %v1239_v0, 5  ;;  %v2805_v0 = vld [vmem:[%s3527_s30 + $0xb4] sm:$0x1] }
  0xa3   : > { %v1364_v23 = vrot.slane %v1362_v4, 4  ;;  %v1379_v33 = vshll.u32 %v2784_v50, 16  ;;  %v1250_v35 = vshrl.u32 %v3902_v8, 16  ;;  %v1367_v13 = vrot.slane %v1365_v32, 5  ;;  %v2815_v32 = vld [vmem:[%s3527_s30 + $0x1e4] sm:$0x1] }
  0xa4   : > { %1797 = vrot.lane.b32.xlu1 %v2888_v59, %s3257_s7  ;;  %v1253_v36 = vshll.u32 %v3902_v8, 16  ;;  %v1264_v34 = vshrl.u32 %v3905_v9, 16  ;;  %v1267_v42 = vshll.u32 %v3905_v9, 16  ;;  %v1378_v45 = vrot.slane %v1376_v17, 4  ;;  %v2813_v59 = vld [vmem:[%s3527_s30 + $0x1d4] sm:$0x1] }
  0xa5   : > { %1787 = vrot.lane.b32.xlu0 %v2883_v55, %s3257_s7  ;;  %v1381_v46 = vrot.slane %v1379_v33, 5  ;;  %v1340_v47 = vor.u32 %v1339_v61, %v1336_v28  ;;  %v2891_v49 = vcombine.low %v3884_v52, %v3887_v53  ;;  %v2896_v51 = vcombine.low %v2783_v63, %v2784_v50  ;;  %v3160_v28 = vld [vmem:[%s3527_s30 + $0x218] ss:$8 sps:$4 sm:$0xff]   ;;  %v2806_v50 = vld [vmem:[%s3527_s30 + $0xbc] sm:$0x1] }
  0xa6   : > { %v1252_v55 = vrot.slane %v1250_v35, 4  ;;  %v1354_v26 = vor.u32 %v1353_v31, %v1350_v27  ;;  %v1255_v56 = vrot.slane %v1253_v36, 5  ;;  %v1266_v37 = vrot.slane %v1264_v34, 4 }
  0xa7   : > { %v1228_v30 = vor.u32 %v1227_v12, %v1224_v7  ;;  %v1242_v16 = vor.u32 %v1241_v19, %v1238_v14  ;;  %v1269_v18 = vrot.slane %v1267_v42, 5  ;;  %v1343_v61 = vshll.u32 %v2813_v59, 16  ;;  %v2816_v14 = vld [vmem:[%s3527_s30 + $0x1ec] sm:$0x1]  ;;  %v2807_v19 = vld [vmem:[%s3527_s30 + $0xc4] sm:$0x1] }
  0xa8   : > { %1851 = vrot.lane.b32.xlu1 %v2895_v38, %s3256_s17  ;;  %v1357_v43 = vshll.u32 %v2814_v62, 16  ;;  %v1368_v52 = vor.u32 %v1367_v13, %v1364_v23  ;;  %v1341_v53 = vrot.slane %v1340_v47, 4  ;;  %v1355_v63 = vrot.slane %v1354_v26, 4  ;;  %v2808_v13 = vld [vmem:[%s3527_s30 + $0xcc] sm:$0x1] }
  0xa9   : > { %1789 = vrot.lane.b32.xlu0 %v2884_v11, %s3257_s7  ;;  %v1231_v27 = vshll.u32 %v2805_v0, 16  ;;  %v1382_v31 = vor.u32 %v1381_v46, %v1378_v45  ;;  %v1345_v4 = vrot.slane %v1343_v61, 5  ;;  %v1229_v38 = vrot.slane %v1228_v30, 4  ;;  %v3163_v0 = vld [vmem:[%s3527_s30 + $0x108] ss:$8 sps:$4 sm:$0xff]  }
  0xaa   : > { %v1359_v6 = vrot.slane %v1357_v43, 5  ;;  %v1245_v7 = vshll.u32 %v2806_v50, 16  ;;  %v2892_v11 = vcombine.low %v3902_v8, %v3905_v9  ;;  %v1243_v12 = vrot.slane %v1242_v16, 4  ;;  %v3162_v8 = vld [vmem:[%s3527_s30 + $0x228] ss:$8 sps:$4 sm:$0xff]  }
  0xab   : > { %v1371_v17 = vshll.u32 %v2815_v32, 16  ;;  %v1233_v23 = vrot.slane %v1231_v27, 5  ;;  %v1369_v33 = vrot.slane %v1368_v52, 4  ;;  %v1385_v35 = vshll.u32 %v2816_v14, 16  ;;  %v2829_v16 = vld [vmem:[%s3527_s30 + $0x148] sm:$0xf] }
  0xac   : > { %1853 = vrot.lane.b32.xlu1 %v2896_v51, %s3256_s17  ;;  %v1256_v36 = vor.u32 %v1255_v56, %v1252_v55  ;;  %v1346_v34 = vsel %vm3584_vm2, %v1341_v53, %v1345_v4  ;;  %v1360_v42 = vsel %vm3584_vm2, %v1355_v63, %v1359_v6  ;;  %v1247_v45 = vrot.slane %v1245_v7, 5  ;;  %v3161_v55 = vld [vmem:[%s3527_s30 + $0xf8] ss:$8 sps:$4 sm:$0xff]   ;;  %v2830_v52 = vld [vmem:[%s3527_s30 + $0x150] sm:$0xf] }
  0xad   : > { %1843 = vrot.lane.b32.xlu0 %v2891_v49, %s3256_s17  ;;  %v1270_v46 = vor.u32 %v1269_v18, %v1266_v37  ;;  %v1373_v9 = vrot.slane %v1371_v17, 5  ;;  %v1383_v47 = vrot.slane %v1382_v31, 4  ;;  %v1387_v49 = vrot.slane %v1385_v35, 5  ;;  %v3952_v6 = vld [vmem:[%s3527_s30 + $0x28] sm:$0xf] }
  0xae   : > { %v1259_v51 = vshll.u32 %v2807_v19, 16  ;;  %v1273_v26 = vshll.u32 %v2808_v13, 16  ;;  %v2911_v56 = vcombine.low %v1346_v34, %v1360_v42  ;;  %v1234_v59 = vsel %vm3584_vm2, %v1229_v38, %v1233_v23  ;;  %v3955_v38 = vld [vmem:[%s3527_s30 + $0x30] sm:$0xf]  ;;  %v3958_v7 = vld [vmem:[%s3527_s30 + $0x158] sm:$0xf] }
  0xaf   : > { %v1248_v37 = vsel %vm3584_vm2, %v1243_v12, %v1247_v45  ;;  %v1257_v62 = vrot.slane %v1256_v36, 4  ;;  %v1271_v30 = vrot.slane %v1270_v46, 4  ;;  %v1374_v18 = vsel %vm3584_vm2, %v1369_v33, %v1373_v9  ;;  %v2832_v17 = vld [vmem:[%s3527_s30 + $0x160] sm:$0xf]  ;;  %v3974_v45 = vld [vmem:[%s3527_s30 + $0x38] sm:$0xf] }
  0xb0   : > { %1907 = vrot.lane.b32.xlu1 %v3160_v28, %s3258_s11  ;;  %v1388_v28 = vsel %vm3584_vm2, %v1383_v47, %v1387_v49  ;;  %v1261_v61 = vrot.slane %v1259_v51, 5  ;;  %v1275_v43 = vrot.slane %v1273_v26, 5  ;;  %v1608_v53 = vshrl.u32 %v2829_v16, 16  ;;  %v2861_v26 = vld [vmem:[%s3527_s30 + $0x14c] sm:$0x1] }
  0xb1   : > { %1845 = vrot.lane.b32.xlu0 %v2892_v11, %s3256_s17  ;;  %v1611_v63 = vshll.u32 %v2829_v16, 16  ;;  %v1622_v50 = vshrl.u32 %v2830_v52, 16  ;;  %v1625_v27 = vshll.u32 %v2830_v52, 16  ;;  %v2907_v31 = vcombine.low %v1234_v59, %v1248_v37 }
  0xb2   : > { %v2912_v4 = vcombine.low %v1374_v18, %v1388_v28  ;;  %v1262_v32 = vsel %vm3584_vm2, %v1257_v62, %v1261_v61  ;;  %v1276_v11 = vsel %vm3584_vm2, %v1271_v30, %v1275_v43  ;;  %v1496_v12 = vshrl.u32 %v3952_v6, 16  ;;  %v2862_v62 = vld [vmem:[%s3527_s30 + $0x154] sm:$0x1] }
  0xb3   : > { %v1499_v14 = vshll.u32 %v3952_v6, 16  ;;  %v1610_v19 = vrot.slane %v1608_v53, 4  ;;  %v1613_v23 = vrot.slane %v1611_v63, 5  ;;  %v1510_v33 = vshrl.u32 %v3955_v38, 16  ;;  %v2824_v53 = vld [vmem:[%s3527_s30 + $0x40] sm:$0xf] }
  0xb4   : > { %1909 = vrot.lane.b32.xlu1 %v3162_v8, %s3258_s11  ;;  %v1513_v35 = vshll.u32 %v3955_v38, 16  ;;  %v1624_v13 = vrot.slane %v1622_v50, 4  ;;  %v1627_v36 = vrot.slane %v1625_v27, 5  ;;  %v1636_v34 = vshrl.u32 %v3958_v7, 16  ;;  %v2853_v50 = vld [vmem:[%s3527_s30 + $0x2c] sm:$0x1] }
  0xb5   : > { %1899 = vrot.lane.b32.xlu0 %v3161_v55, %s3258_s11  ;;  %v1639_v42 = vshll.u32 %v3958_v7, 16  ;;  %v2908_v46 = vcombine.low %v1262_v32, %v1276_v11  ;;  %v2919_v8 = vcombine.low %v2829_v16, %v2830_v52  ;;  %v1650_v9 = vshrl.u32 %v2832_v17, 16  ;;  %v2854_v11 = vld [vmem:[%s3527_s30 + $0x34] sm:$0x1] }
  0xb6   : > { %v1498_v47 = vrot.slane %v1496_v12, 4  ;;  %v1501_v49 = vrot.slane %v1499_v14, 5  ;;  %v1653_v51 = vshll.u32 %v2832_v17, 16  ;;  %v1524_v55 = vshrl.u32 %v3974_v45, 16  ;;  %v2863_v14 = vld [vmem:[%s3527_s30 + $0x15c] sm:$0x1] }
  0xb7   : > { %v1515_v59 = vrot.slane %v1513_v35, 5  ;;  %v1527_v37 = vshll.u32 %v3974_v45, 16  ;;  %v1614_v30 = vor.u32 %v1613_v23, %v1610_v19  ;;  %v1638_v16 = vrot.slane %v1636_v34, 4  ;;  %v3168_v19 = vld [vmem:[%s3527_s30 + $0x190] ss:$8 sps:$4 sm:$0xff]  }
  0xb8   : > { %1947 = vrot.lane.b32.xlu1 %v2911_v56, %s3259_s12  ;;  %v1512_v56 = vrot.slane %v1510_v33, 4  ;;  %v1641_v18 = vrot.slane %v1639_v42, 5  ;;  %v1617_v28 = vshll.u32 %v2861_v26, 16  ;;  %v1628_v61 = vor.u32 %v1627_v36, %v1624_v13 }
  0xb9   : > { %1901 = vrot.lane.b32.xlu0 %v3163_v0, %s3258_s11  ;;  %v2915_v43 = vcombine.low %v3952_v6, %v3955_v38  ;;  %v1652_v0 = vrot.slane %v1650_v9, 4  ;;  %v2920_v52 = vcombine.low %v3958_v7, %v2832_v17  ;;  %v1631_v63 = vshll.u32 %v2862_v62, 16  ;;  %v2864_v17 = vld [vmem:[%s3527_s30 + $0x164] sm:$0x1] }
  0xba   : > { %v1655_v27 = vrot.slane %v1653_v51, 5  ;;  %v1541_v32 = vshll.u32 %v2824_v53, 16  ;;  %v3992_v6 = vrot.slane %v1527_v37, 5  ;;  %v1615_v38 = vrot.slane %v1614_v30, 4  ;;  %v2855_v37 = vld [vmem:[%s3527_s30 + $0x3c] sm:$0x1] }
  0xbb   : > { %v1502_v12 = vor.u32 %v1501_v49, %v1498_v47  ;;  %v1516_v7 = vor.u32 %v1515_v59, %v1512_v56  ;;  %v1619_v33 = vrot.slane %v1617_v28, 5  ;;  %v1629_v35 = vrot.slane %v1628_v61, 4  ;;  %v2856_v28 = vld [vmem:[%s3527_s30 + $0x44] sm:$0x1] }
  0xbc   : > { %1949 = vrot.lane.b32.xlu1 %v2912_v4, %s3259_s12  ;;  %v1538_v4 = vshrl.u32 %v2824_v53, 16  ;;  %v1505_v13 = vshll.u32 %v2853_v50, 16  ;;  %v1642_v36 = vor.u32 %v1641_v18, %v1638_v16  ;;  %v1633_v34 = vrot.slane %v1631_v63, 5  ;;  %v3180_v61 = vld [vmem:[%s3807_s29 + $0x10] ss:$0 sps:$4 sm:$0x33]  }
  0xbd   : > { %1939 = vrot.lane.b32.xlu0 %v2907_v31, %s3259_s12  ;;  %v3988_v31 = vrot.slane %v1524_v55, 4  ;;  %v1519_v42 = vshll.u32 %v2854_v11, 16  ;;  %v1659_v9 = vshll.u32 %v2864_v17, 16  ;;  %v1543_v49 = vrot.slane %v1541_v32, 5  ;;  %v3169_v50 = vld [vmem:[%s3527_s30 + $0x70] ss:$8 sps:$4 sm:$0xff]   ;;  %3046 = vmatprep.subr.msk.bf16.mxu0 %vm2287_vm3, %v3180_v61 }
  0xbe   : > { %v1540_v47 = vrot.slane %v1538_v4, 4  ;;  %v2916_v51 = vcombine.low %v3974_v45, %v2824_v53  ;;  %v1503_v55 = vrot.slane %v1502_v12, 4  ;;  %v1507_v26 = vrot.slane %v1505_v13, 5  ;;  %v3172_v45 = vld [vmem:[%s3527_s30 + $0x1a0] ss:$8 sps:$4 sm:$0xff]   ;;  %3047 = vmatprep.subr.msk.bf16.mxu1 %vm2287_vm3, %v3180_v61 }
  0xbf   : > { %v3997_v23 = vpop.permute.xlu1 %1745  ;;  %v1517_v56 = vrot.slane %v1516_v7, 4  ;;  %v1643_v59 = vrot.slane %v1642_v36, 4  ;;  %v4003_v62 = vpop.permute.xlu0 %1743  ;;  %v1620_v30 = vsel %vm3584_vm2, %v1615_v38, %v1619_v33  ;;  %v1634_v16 = vsel %vm3584_vm2, %v1629_v35, %v1633_v34  ;;  %v3173_v17 = vld [vmem:[%s3527_s30 + $0x80] ss:$8 sps:$4 sm:$0xff]   ;;  %s4159_s30 = scalar_lea.vmem [#allocation4], %s3792_s15 }
  0xc0   : > { %2003 = vrot.lane.b32.xlu1 %v2919_v8, %s3260_s13  ;;  %v1656_v8 = vor.u32 %v1655_v27, %v1652_v0  ;;  %v1521_v18 = vrot.slane %v1519_v42, 5  ;;  %v1661_v53 = vrot.slane %v1659_v9, 5  ;;  %v1530_v63 = vor.u32 %v3992_v6, %v3988_v31 }
  0xc1   : > { %1941 = vrot.lane.b32.xlu0 %v2908_v46, %s3259_s12  ;;  %v1645_v46 = vshll.u32 %v2863_v14, 16  ;;  %v1533_v27 = vshll.u32 %v2855_v37, 16  ;;  %v1544_v4 = vor.u32 %v1543_v49, %v1540_v47  ;;  %v2871_v32 = vcombine.low %v3778_v41, %v3781_v39 }
  0xc2   : > { %v2867_v11 = vcombine.low %v3802_v54, %v3811_v57  ;;  %v1547_v38 = vshll.u32 %v2856_v28, 16  ;;  %v2872_v12 = vcombine.low %v3823_v10, %v3829_v15  ;;  %v2868_v31 = vcombine.low %v3847_v25, %v3856_v58 }
  0xc3   : > { %v1647_v0 = vrot.slane %v1645_v46, 5  ;;  %v2289_v6 = vsel %vm2287_vm3, %v3180_v61, 0  ;;  %v2935_v7 = vcombine.low %v1620_v30, %v1634_v16  ;;  %v1508_v14 = vsel %vm3584_vm2, %v1503_v55, %v1507_v26 }
  0xc4   : > { %2005 = vrot.lane.b32.xlu1 %v2920_v52, %s3260_s13  ;;  %v1657_v52 = vrot.slane %v1656_v8, 4  ;;  %3023 = vmatpush3.bf16.msra.mxu0 %v2289_v6  ;;  %v1522_v33 = vsel %vm3584_vm2, %v1517_v56, %v1521_v18  ;;  %v1531_v34 = vrot.slane %v1530_v63, 4  ;;  %v1535_v42 = vrot.slane %v1533_v27, 5 }
  0xc5   : > { %1995 = vrot.lane.b32.xlu0 %v2915_v43, %s3260_s13  ;;  %v4013_v43 = vpop.permute.xlu1 %1753  ;;  %v1648_v35 = vsel %vm3584_vm2, %v1643_v59, %v1647_v0  ;;  %3045 = vmatpush3.bf16.msra.mxu1 %v2289_v6  ;;  %v1545_v46 = vrot.slane %v1544_v4, 4  ;;  %v1549_v8 = vrot.slane %v1547_v38, 5  ;;  %v2931_v47 = vcombine.low %v1508_v14, %v1522_v33 }
  0xc6   : > { %v1662_v13 = vsel %vm3584_vm2, %v1657_v52, %v1661_v53  ;;  %v1536_v49 = vsel %vm3584_vm2, %v1531_v34, %v1535_v42 }
  0xc7   : > { %v2936_v9 = vcombine.low %v1648_v35, %v1662_v13  ;;  %v2106_v35 = vsel %vm2103_vm5, %v2865_v3, %v4003_v62  ;;  %v2121_v3 = vsel %vm2103_vm5, %v2870_v40, %v4013_v43  ;;  %v2109_v43 = vsel %vm2103_vm5, %v2866_v2, %v3997_v23 }
  0xc8   : > { %2059 = vrot.lane.b32.xlu1 %v3168_v19, %s3261_s14  ;;  %v1752_v19 = vpop.permute.xlu0 %1751 }
  0xc9   : > { %1997 = vrot.lane.b32.xlu0 %v2916_v51, %s3260_s13  ;;  %v1848_v36 = vpop.permute.xlu1 %1847  ;;  %v1550_v51 = vsel %vm3584_vm2, %v1545_v46, %v1549_v8  ;;  %v2118_v38 = vsel %vm2103_vm5, %v2869_v20, %v1752_v19 }
  0xca   : > { %v2932_v56 = vcombine.low %v1536_v49, %v1550_v51 }
  0xcc   : > { %2061 = vrot.lane.b32.xlu1 %v3172_v45, %s3261_s14  ;;  %v1840_v55 = vpop.permute.xlu0 %1839 }
  0xcd   : > { %2051 = vrot.lane.b32.xlu0 %v3169_v50, %s3261_s14 }
  0xd0   : > { %2099 = vrot.lane.b32.xlu1 %v2935_v7, %s3262_s26 }
  0xd1   : > { %2053 = vrot.lane.b32.xlu0 %v3173_v17, %s3261_s14  ;;  %v1792_v26 = vpop.permute.xlu1 %1791 }
  0xd2   : > { %v2138_v7 = vsel %vm2128_vm4, %v2118_v38, %v1792_v26 }
  0xd3   : > { %v2155_v17 = vsel %vm2145_vm6, %v2138_v7, %v1848_v36 }
  0xd4   : > { %2101 = vrot.lane.b32.xlu1 %v2936_v9, %s3262_s26 }
  0xd5   : > { %2091 = vrot.lane.b32.xlu0 %v2931_v47, %s3262_s26  ;;  %v1784_v59 = vpop.permute.xlu0 %1783 }
  0xd6   : > { %v2130_v20 = vsel %vm2128_vm4, %v2106_v35, %v1784_v59 }
  0xd7   : > { %v2147_v42 = vsel %vm2145_vm6, %v2130_v20, %v1840_v55 }
  0xd9   : > { %2093 = vrot.lane.b32.xlu0 %v2932_v56, %s3262_s26 }
  0xda   : > { %v1794_v37 = vpop.permute.xlu1 %1793 }
  0xdb   : > { %v2140_v46 = vsel %vm2128_vm4, %v2121_v3, %v1794_v37 }
  0xde   : > { %v1850_v30 = vpop.permute.xlu1 %1849 }
  0xdf   : > { %v1786_v16 = vpop.permute.xlu0 %1785  ;;  %v2157_v9 = vsel %vm2145_vm6, %v2140_v46, %v1850_v30 }
  0xe0   : > { %v2132_v56 = vsel %vm2128_vm4, %v2109_v43, %v1786_v16 }
  0xe2   : > { %v1904_v18 = vpop.permute.xlu1 %1903 }
  0xe3   : > { %v1842_v28 = vpop.permute.xlu0 %1841  ;;  %v2172_v24 = vsel %vm2162_vm7, %v2155_v17, %v1904_v18 }
  0xe4   : > { %v2149_v30 = vsel %vm2145_vm6, %v2132_v56, %v1842_v28 }
  0xe6   : > { %v1906_v61 = vpop.permute.xlu1 %1905 }
  0xe7   : > { %v1896_v45 = vpop.permute.xlu0 %1895  ;;  %v2174_v51 = vsel %vm2162_vm7, %v2157_v9, %v1906_v61 }
  0xe8   : > { %v2164_v62 = vsel %vm2162_vm7, %v2147_v42, %v1896_v45 }
  0xea   : > { %v1944_v0 = vpop.permute.xlu1 %1943 }
  0xeb   : > { %v1898_v60 = vpop.permute.xlu0 %1897  ;;  %v2189_v19 = vsel %vm2179_vm8, %v2172_v24, %v1944_v0 }
  0xec   : > { %v2166_v45 = vsel %vm2162_vm7, %v2149_v30, %v1898_v60 }
  0xee   : > { %v1946_v52 = vpop.permute.xlu1 %1945 }
  0xef   : > { %v1936_v53 = vpop.permute.xlu0 %1935  ;;  %v2191_v5 = vsel %vm2179_vm8, %v2174_v51, %v1946_v52 }
  0xf0   : > { %v2181_v8 = vsel %vm2179_vm8, %v2164_v62, %v1936_v53 }
  0xf2   : > { %v2000_v63 = vpop.permute.xlu1 %1999 }
  0xf3   : > { %v1938_v50 = vpop.permute.xlu0 %1937  ;;  %v2206_v13 = vsel %vm2196_vm9, %v2189_v19, %v2000_v63 }
  0xf4   : > { %v2183_v21 = vsel %vm2179_vm8, %v2166_v45, %v1938_v50 }
  0xf6   : > { %v2002_v27 = vpop.permute.xlu1 %2001 }
  0xf7   : > { %v1992_v4 = vpop.permute.xlu0 %1991  ;;  %v2208_v26 = vsel %vm2196_vm9, %v2191_v5, %v2002_v27 }
  0xf8   : > { %v2198_v47 = vsel %vm2196_vm9, %v2181_v8, %v1992_v4 }
  0xfa   : > { %v2056_v6 = vpop.permute.xlu1 %2055 }
  0xfb   : > { %v1994_v14 = vpop.permute.xlu0 %1993  ;;  %v2223_v36 = vsel %vm2213_vm10, %v2206_v13, %v2056_v6 }
  0xfc   : > { %v2200_v22 = vsel %vm2196_vm9, %v2183_v21, %v1994_v14 }
  0xfe   : > { %v2058_v33 = vpop.permute.xlu1 %2057 }
  0xff   : > { %v2048_v29 = vpop.permute.xlu0 %2047  ;;  %v2225_v59 = vsel %vm2213_vm10, %v2208_v26, %v2058_v33 }
 0x100   : > { %v2215_v55 = vsel %vm2213_vm10, %v2198_v47, %v2048_v29 }
 0x102   : > { %v2096_v34 = vpop.permute.xlu1 %2095 }
 0x103   : > { %v2050_v44 = vpop.permute.xlu0 %2049  ;;  %v2240_v48 = vsel %vm2230_vm11, %v2223_v36, %v2096_v34 }
 0x104   : > { %3032 = vmatprep.mubr.msk.bf16.mxu1 %vm2270_vm12, %v2240_v48  ;;  %v2217_v23 = vsel %vm2213_vm10, %v2200_v22, %v2050_v44 }
 0x106   : > { %v1756_v49 = vpop.permute.xlu1 %1755 }
 0x107   : > { %v2088_v1 = vpop.permute.xlu0 %2087  ;;  %v2124_v42 = vsel %vm2103_vm5, %v2871_v32, %v1756_v49 }
 0x108   : > { %v2232_v40 = vsel %vm2230_vm11, %v2215_v55, %v2088_v1 }
 0x109   : > { %3024 = vmatprep.mubr.msk.bf16.mxu0 %vm2270_vm12, %v2232_v40 }
 0x10a   : > { %v2098_v37 = vpop.permute.xlu1 %2097 }
 0x10b   : > { %v1748_v18 = vpop.permute.xlu0 %1747  ;;  %v2242_v61 = vsel %vm2230_vm11, %v2225_v59, %v2098_v37 }
 0x10c   : > { %3033 = vmatmul.mubr.msk.bf16.vlgmr.msra.gmra.mrb[0].mxu1 %vm2270_vm12, %v2242_v61  ;;  %v2112_v41 = vsel %vm2103_vm5, %v2867_v11, %v1748_v18 }
 0x10e   : > { %v1758_v2 = vpop.permute.xlu1 %1757 }
 0x10f   : > { %v2090_v16 = vpop.permute.xlu0 %2089  ;;  %v2127_v8 = vsel %vm2103_vm5, %v2872_v12, %v1758_v2 }
 0x110   : > { %v2234_v0 = vsel %vm2230_vm11, %v2217_v23, %v2090_v16 }
 0x111   : > { %3025 = vmatmul.mubr.msk.bf16.vlgmr.msra.gmra.mrb[0].mxu0 %vm2270_vm12, %v2234_v0 }
 0x112   : > { %v1796_v28 = vpop.permute.xlu1 %1795 }
 0x113   : > { %v1750_v52 = vpop.permute.xlu0 %1749  ;;  %v2142_v44 = vsel %vm2128_vm4, %v2124_v42, %v1796_v28 }
 0x114   : > { %v2115_v1 = vsel %vm2103_vm5, %v2868_v31, %v1750_v52 }
 0x116   : > { %v1798_v53 = vpop.permute.xlu1 %1797 }
 0x117   : > { %v1788_v63 = vpop.permute.xlu0 %1787  ;;  %v2144_v39 = vsel %vm2128_vm4, %v2127_v8, %v1798_v53 }
 0x118   : > { %v2134_v47 = vsel %vm2128_vm4, %v2112_v41, %v1788_v63 }
 0x11a   : > { %v1852_v27 = vpop.permute.xlu1 %1851 }
 0x11b   : > { %v1790_v60 = vpop.permute.xlu0 %1789  ;;  %v2159_v48 = vsel %vm2145_vm6, %v2142_v44, %v1852_v27 }
 0x11c   : > { %v2136_v43 = vsel %vm2128_vm4, %v2115_v1, %v1790_v60 }
 0x11e   : > { %v1854_v4 = vpop.permute.xlu1 %1853 }
 0x11f   : > { %v1844_v38 = vpop.permute.xlu0 %1843  ;;  %v2161_v49 = vsel %vm2145_vm6, %v2144_v39, %v1854_v4 }
 0x120   : > { %v2151_v15 = vsel %vm2145_vm6, %v2134_v47, %v1844_v38 }
 0x122   : > { %v1908_v6 = vpop.permute.xlu1 %1907 }
 0x123   : > { %v1846_v50 = vpop.permute.xlu0 %1845  ;;  %v2176_v62 = vsel %vm2162_vm7, %v2159_v48, %v1908_v6 }
 0x124   : > { %v2153_v37 = vsel %vm2145_vm6, %v2136_v43, %v1846_v50 }
 0x126   : > { %v1910_v7 = vpop.permute.xlu1 %1909 }
 0x127   : > { %v1900_v14 = vpop.permute.xlu0 %1899  ;;  %v2178_v12 = vsel %vm2162_vm7, %v2161_v49, %v1910_v7 }
 0x128   : > { %v2168_v57 = vsel %vm2162_vm7, %v2151_v15, %v1900_v14 }
 0x12a   : > { %v1948_v17 = vpop.permute.xlu1 %1947 }
 0x12b   : > { %v1902_v33 = vpop.permute.xlu0 %1901  ;;  %v2193_v9 = vsel %vm2179_vm8, %v2176_v62, %v1948_v17 }
 0x12c   : > { %v2170_v58 = vsel %vm2162_vm7, %v2153_v37, %v1902_v33  ;;  %v3263_v33 = vmov (!%p2949_p0), 0.0  }
 0x12d   : > { %2392 = vst [vmem:[#allocation2] sm:$0xff] (!%p2949_p0), %v3263_v33  ;;  %2393 = vst [vmem:[#allocation2 + $0x8] sm:$0xff] (!%p2949_p0), %v3263_v33 }
 0x12e   : > { %v1950_v35 = vpop.permute.xlu1 %1949  ;;  %2394 = vst [vmem:[#allocation2 + $0x10] sm:$0xff] (!%p2949_p0), %v3263_v33  ;;  %2395 = vst [vmem:[#allocation2 + $0x18] sm:$0xff] (!%p2949_p0), %v3263_v33 }
 0x12f   : > { %v1940_v24 = vpop.permute.xlu0 %1939  ;;  %v2195_v11 = vsel %vm2179_vm8, %v2178_v12, %v1950_v35  ;;  %2396 = vst [vmem:[#allocation2 + $0x20] sm:$0xff] (!%p2949_p0), %v3263_v33  ;;  %2397 = vst [vmem:[#allocation2 + $0x28] sm:$0xff] (!%p2949_p0), %v3263_v33 }
 0x130   : > { %v2185_v5 = vsel %vm2179_vm8, %v2168_v57, %v1940_v24  ;;  %2398 = vst [vmem:[#allocation2 + $0x30] sm:$0xff] (!%p2949_p0), %v3263_v33  ;;  %2399 = vst [vmem:[#allocation2 + $0x38] sm:$0xff] (!%p2949_p0), %v3263_v33 }
 0x131   : > { %2400 = vst [vmem:[#allocation2 + $0x40] sm:$0xff] (!%p2949_p0), %v3263_v33  ;;  %2401 = vst [vmem:[#allocation2 + $0x48] sm:$0xff] (!%p2949_p0), %v3263_v33 }
 0x132   : > { %v2004_v29 = vpop.permute.xlu1 %2003  ;;  %2402 = vst [vmem:[#allocation2 + $0x50] sm:$0xff] (!%p2949_p0), %v3263_v33  ;;  %2403 = vst [vmem:[#allocation2 + $0x58] sm:$0xff] (!%p2949_p0), %v3263_v33 }
 0x133   : > { %v1942_v20 = vpop.permute.xlu0 %1941  ;;  %v2210_v32 = vsel %vm2196_vm9, %v2193_v9, %v2004_v29  ;;  %2404 = vst [vmem:[#allocation2 + $0x60] sm:$0xff] (!%p2949_p0), %v3263_v33  ;;  %2405 = vst [vmem:[#allocation2 + $0x68] sm:$0xff] (!%p2949_p0), %v3263_v33 }
 0x134   : > { %v2187_v61 = vsel %vm2179_vm8, %v2170_v58, %v1942_v20  ;;  %2406 = vst [vmem:[#allocation2 + $0x70] sm:$0xff] (!%p2949_p0), %v3263_v33  ;;  %2407 = vst [vmem:[#allocation2 + $0x78] sm:$0xff] (!%p2949_p0), %v3263_v33 }
 0x136   : > { %v2006_v19 = vpop.permute.xlu1 %2005 }
 0x137   : > { %v1996_v13 = vpop.permute.xlu0 %1995  ;;  %v2212_v40 = vsel %vm2196_vm9, %v2195_v11, %v2006_v19 }
 0x138   : > { %v2202_v26 = vsel %vm2196_vm9, %v2185_v5, %v1996_v13 }
 0x13a   : > { %v2060_v36 = vpop.permute.xlu1 %2059 }
 0x13b   : > { %v1998_v34 = vpop.permute.xlu0 %1997  ;;  %v2227_v51 = vsel %vm2213_vm10, %v2210_v32, %v2060_v36 }
 0x13c   : > { %v2204_v45 = vsel %vm2196_vm9, %v2187_v61, %v1998_v34 }
 0x13e   : > { %v2062_v3 = vpop.permute.xlu1 %2061 }
 0x13f   : > { %v2052_v46 = vpop.permute.xlu0 %2051  ;;  %v2229_v56 = vsel %vm2213_vm10, %v2212_v40, %v2062_v3 }
 0x140   : > { %v2219_v30 = vsel %vm2213_vm10, %v2202_v26, %v2052_v46 }
 0x142   : > { %v2100_v10 = vpop.permute.xlu1 %2099 }
 0x143   : > { %v2054_v55 = vpop.permute.xlu0 %2053  ;;  %v2244_v54 = vsel %vm2230_vm11, %v2227_v51, %v2100_v10 }
 0x144   : > { %3036 = vmatprep.mubr.msk.bf16.mxu1 %vm2270_vm12, %v2244_v54  ;;  %v2221_v21 = vsel %vm2213_vm10, %v2204_v45, %v2054_v55 }
 0x146   : > { %v2102_v59 = vpop.permute.xlu1 %2101 }
 0x147   : > { %v2092_v18 = vpop.permute.xlu0 %2091  ;;  %v2246_v25 = vsel %vm2230_vm11, %v2229_v56, %v2102_v59 }
 0x148   : > { %v2236_v31 = vsel %vm2230_vm11, %v2219_v30, %v2092_v18  ;;  %3037 = vmatmul.mubr.msk.bf16.gmra.mrb[4].mxu1 %vm2270_vm12, %v2246_v25 }
 0x149   : > { %3028 = vmatprep.mubr.msk.bf16.mxu0 %vm2270_vm12, %v2236_v31 }
 0x14b   : > { %v2094_v22 = vpop.permute.xlu0 %2093 }
 0x14c   : > { %v2238_v2 = vsel %vm2230_vm11, %v2221_v21, %v2094_v22 }
 0x14d   : > { %3029 = vmatmul.mubr.msk.bf16.gmra.mrb[4].mxu0 %vm2270_vm12, %v2238_v2 }
 0x1df   : > { %v4146_v23 = vpop.f32.mrb[0].mxu1 }
 0x1e0   : > { %v2357_v16 = vpop.f32.mrb[1].mxu1 }
 0x1e1   : > { %v4148_v0 = vpop.f32.mrb[2].mxu1 }
 0x1e2   : > { %v2360_v28 = vpop.f32.mrb[3].mxu1 }
 0x1e4   : > { %v3026_v52 = vpop.f32.mrb[0].mxu0 }
 0x1e5   : > { %v2325_v53 = vpop.f32.mrb[1].mxu0 }
 0x1e6   : > { %v3027_v63 = vpop.f32.mrb[2].mxu0 }
 0x1e7   : > { %v2328_v27 = vpop.f32.mrb[3].mxu0 }
 0x21b   : > { %v4150_v60 = vpop.f32.mrb[4].mxu1 }
 0x21c   : > { %v4152_v4 = vpop.f32.mrb[5].mxu1 }
 0x21d   : > { %v4154_v38 = vpop.f32.mrb[6].mxu1  ;;  %2391 = sbr.rel (%p2949_p0) target bundleno = 548 (0x224), region = 81 }
 0x21e   : > { %v4156_v6 = vpop.f32.mrb[7].mxu1 }
 0x220   : > { %v3030_v50 = vpop.f32.mrb[4].mxu0 }
 0x221   : > { %v2341_v7 = vpop.f32.mrb[5].mxu0 }
 0x222   : > { %v3031_v14 = vpop.f32.mrb[6].mxu0 }
 0x223   : > { %v2344_v17 = vpop.f32.mrb[7].mxu0 }
 0x224 PF: > { %v2408_v35 = vld [vmem:[#allocation2] sm:$0xff]  ;;  %v2409_v24 = vld [vmem:[#allocation2 + $0x8] sm:$0xff]  ;;  %v2410_v29 = vld [vmem:[#allocation2 + $0x10] sm:$0xff]  ;;  %p2950_p1 = scmp.ne.s32.totalorder %s3237_s19, 2 }
 0x225   : > { %v2424_v20 = vadd.f32 %v2408_v35, %v2325_v53  ;;  %v2425_v19 = vadd.f32 %v2409_v24, %v2328_v27  ;;  %v2426_v13 = vadd.f32 %v3026_v52, %v2410_v29  ;;  %v2411_v36 = vld [vmem:[#allocation2 + $0x18] sm:$0xff]  ;;  %v2412_v34 = vld [vmem:[#allocation2 + $0x20] sm:$0xff]  ;;  %v2413_v42 = vld [vmem:[#allocation2 + $0x28] sm:$0xff] }
 0x226   : > { %v2427_v44 = vadd.f32 %v3027_v63, %v2411_v36  ;;  %v2428_v48 = vadd.f32 %v2412_v34, %v2341_v7  ;;  %v2429_v3 = vadd.f32 %v2413_v42, %v2344_v17  ;;  %v2414_v62 = vld [vmem:[#allocation2 + $0x30] sm:$0xff]  ;;  %v2415_v46 = vld [vmem:[#allocation2 + $0x38] sm:$0xff]  ;;  %v2416_v8 = vld [vmem:[#allocation2 + $0x40] sm:$0xff] }
 0x227   : > { %2440 = vst [vmem:[#allocation2] sm:$0xff] %v2424_v20  ;;  %2441 = vst [vmem:[#allocation2 + $0x8] sm:$0xff] %v2425_v19  ;;  %v2430_v9 = vadd.f32 %v3030_v50, %v2414_v62  ;;  %v2431_v41 = vadd.f32 %v3031_v14, %v2415_v46  ;;  %v2432_v39 = vadd.f32 %v2416_v8, %v2357_v16  ;;  %v2417_v32 = vld [vmem:[#allocation2 + $0x48] sm:$0xff]  ;;  %v2418_v47 = vld [vmem:[#allocation2 + $0x50] sm:$0xff] }
 0x228   : > { %2442 = vst [vmem:[#allocation2 + $0x10] sm:$0xff] %v2426_v13  ;;  %v2419_v49 = vld [vmem:[#allocation2 + $0x58] sm:$0xff]  ;;  %2443 = vst [vmem:[#allocation2 + $0x18] sm:$0xff] %v2427_v44  ;;  %v2433_v51 = vadd.f32 %v2417_v32, %v2360_v28  ;;  %v2434_v10 = vadd.f32 %v4146_v23, %v2418_v47  ;;  %v2420_v12 = vld [vmem:[#allocation2 + $0x60] sm:$0xff]  ;;  %2459 = sbr.rel (%p2950_p1) target bundleno = 575 (0x23f), region = 85 }
 0x229   : > { %2444 = vst [vmem:[#allocation2 + $0x20] sm:$0xff] %v2428_v48  ;;  %2445 = vst [vmem:[#allocation2 + $0x28] sm:$0xff] %v2429_v3  ;;  %v2435_v15 = vadd.f32 %v4148_v0, %v2419_v49  ;;  %v2421_v55 = vld [vmem:[#allocation2 + $0x68] sm:$0xff]  ;;  %v2422_v54 = vld [vmem:[#allocation2 + $0x70] sm:$0xff]  ;;  %v2436_v57 = vadd.f32 %v2420_v12, %v4152_v4 }
 0x22a   : > { %2446 = vst [vmem:[#allocation2 + $0x30] sm:$0xff] %v2430_v9  ;;  %2447 = vst [vmem:[#allocation2 + $0x38] sm:$0xff] %v2431_v41  ;;  %v2437_v11 = vadd.f32 %v2421_v55, %v4156_v6  ;;  %v2438_v1 = vadd.f32 %v4150_v60, %v2422_v54  ;;  %v2423_v5 = vld [vmem:[#allocation2 + $0x78] sm:$0xff]  ;;  %v2951_v43 = vld [vmem:[%s4226_s2] ss:$0 sm:$0xff] (!%p2950_p1) }
 0x22b   : > { %2448 = vst [vmem:[#allocation2 + $0x40] sm:$0xff] %v2432_v39  ;;  %2449 = vst [vmem:[#allocation2 + $0x48] sm:$0xff] %v2433_v51  ;;  %v2439_v40 = vadd.f32 %v4154_v38, %v2423_v5  ;;  %v2952_v26 = vld [vmem:[%s4227_s3] ss:$0 sm:$0xff] (!%p2950_p1)  ;;  %v2467_v56 = vmul.f32 (!%p2950_p1), %v2951_v43, %v2424_v20  ;;  %v2468_v59 = vmul.f32 (!%p2950_p1), %v2951_v43, %v2425_v19 }
 0x22c   : > { %2450 = vst [vmem:[#allocation2 + $0x50] sm:$0xff] %v2434_v10  ;;  %2451 = vst [vmem:[#allocation2 + $0x58] sm:$0xff] %v2435_v15  ;;  %v2469_v37 = vmul.f32 (!%p2950_p1), %v2951_v43, %v2426_v13  ;;  %v2470_v30 = vmul.f32 (!%p2950_p1), %v2951_v43, %v2427_v44  ;;  %v2471_v18 = vmul.f32 (!%p2950_p1), %v2951_v43, %v2428_v48 }
 0x22d   : > { %2452 = vst [vmem:[#allocation2 + $0x60] sm:$0xff] %v2436_v57  ;;  %2453 = vst [vmem:[#allocation2 + $0x68] sm:$0xff] %v2437_v11  ;;  %v2472_v25 = vmul.f32 (!%p2950_p1), %v2951_v43, %v2429_v3  ;;  %v2473_v58 = vmul.f32 (!%p2950_p1), %v2951_v43, %v2430_v9  ;;  %v2474_v31 = vmul.f32 (!%p2950_p1), %v2951_v43, %v2431_v41 }
 0x22e   : > { %2454 = vst [vmem:[#allocation2 + $0x70] sm:$0xff] %v2438_v1  ;;  %2455 = vst [vmem:[#allocation2 + $0x78] sm:$0xff] %v2439_v40  ;;  %v2490_v61 = vadd.f32 (!%p2950_p1), %v2952_v26, %v2467_v56  ;;  %v2491_v45 = vadd.f32 (!%p2950_p1), %v2952_v26, %v2468_v59  ;;  %v2492_v21 = vadd.f32 (!%p2950_p1), %v2952_v26, %v2469_v37 }
 0x22f   : > { %v2493_v22 = vadd.f32 %v2952_v26, %v2470_v30  ;;  %v2494_v2 = vadd.f32 %v2952_v26, %v2471_v18  ;;  %v2495_v23 = vadd.f32 %v2952_v26, %v2472_v25  ;;  %v2496_v16 = vadd.f32 %v2952_v26, %v2473_v58 }
 0x230   : > { %v2497_v0 = vadd.f32 %v2952_v26, %v2474_v31  ;;  %v2506_v28 = vmax.f32 %v2490_v61, 0.0  ;;  %v2507_v52 = vmax.f32 %v2491_v45, 0.0  ;;  %v2508_v53 = vmax.f32 %v2492_v21, 0.0 }
 0x231   : > { %v2509_v63 = vmax.f32 %v2493_v22, 0.0  ;;  %v2510_v27 = vmax.f32 %v2494_v2, 0.0  ;;  %v2511_v60 = vmax.f32 %v2495_v23, 0.0  ;;  %v2512_v4 = vmax.f32 %v2496_v16, 0.0 }
 0x232   : > { %v2513_v38 = vmax.f32 %v2497_v0, 0.0  ;;  %v2963_v6 = vpack.c.bf16 %v2507_v52, %v2506_v28  ;;  %v2475_v7 = vmul.f32 %v2951_v43, %v2432_v39  ;;  %v2476_v14 = vmul.f32 %v2951_v43, %v2433_v51 }
 0x233   : > { %v2968_v50 = vpack.c.bf16 %v2509_v63, %v2508_v53  ;;  %v2973_v17 = vpack.c.bf16 %v2511_v60, %v2510_v27  ;;  %v2477_v35 = vmul.f32 %v2951_v43, %v2434_v10  ;;  %v2478_v24 = vmul.f32 %v2951_v43, %v2435_v15 }
 0x234   : > { %v2978_v33 = vpack.c.bf16 %v2513_v38, %v2512_v4  ;;  %2964 = vst [vmem:[%s4159_s30] sm:$0xff] %v2963_v6   ;;  %v2498_v29 = vadd.f32 %v2952_v26, %v2475_v7  ;;  %v2499_v20 = vadd.f32 %v2952_v26, %v2476_v14  ;;  %v2479_v19 = vmul.f32 %v2951_v43, %v2436_v57 }
 0x235   : > { %3000 = vst [vmem:[%s4159_s30 + $0x8] sm:$0xff] %v2968_v50   ;;  %v2480_v13 = vmul.f32 %v2951_v43, %v2437_v11  ;;  %3001 = vst [vmem:[%s4159_s30 + $0x10] sm:$0xff] %v2973_v17   ;;  %v2500_v36 = vadd.f32 %v2952_v26, %v2477_v35  ;;  %v2501_v34 = vadd.f32 %v2952_v26, %v2478_v24 }
 0x236   : > { %3002 = vst [vmem:[%s4159_s30 + $0x18] sm:$0xff] %v2978_v33   ;;  %v2481_v42 = vmul.f32 %v2951_v43, %v2438_v1  ;;  %v2482_v44 = vmul.f32 %v2951_v43, %v2439_v40  ;;  %v2514_v48 = vmax.f32 %v2498_v29, 0.0  ;;  %v2515_v3 = vmax.f32 %v2499_v20, 0.0 }
 0x237   : > { %v2502_v62 = vadd.f32 %v2952_v26, %v2479_v19  ;;  %v2503_v46 = vadd.f32 %v2952_v26, %v2480_v13  ;;  %v2516_v8 = vmax.f32 %v2500_v36, 0.0  ;;  %v2517_v9 = vmax.f32 %v2501_v34, 0.0 }
 0x238   : > { %v2504_v41 = vadd.f32 %v2952_v26, %v2481_v42  ;;  %v2505_v39 = vadd.f32 %v2952_v26, %v2482_v44  ;;  %v2983_v32 = vpack.c.bf16 %v2515_v3, %v2514_v48 }
 0x239   : > { %v2518_v47 = vmax.f32 %v2502_v62, 0.0  ;;  %v2519_v49 = vmax.f32 %v2503_v46, 0.0  ;;  %v2988_v51 = vpack.c.bf16 %v2517_v9, %v2516_v8 }
 0x23a   : > { %v2520_v10 = vmax.f32 %v2504_v41, 0.0  ;;  %v2521_v15 = vmax.f32 %v2505_v39, 0.0  ;;  %3003 = vst [vmem:[%s4159_s30 + $0x20] sm:$0xff] %v2983_v32  }
 0x23b   : > { %v2993_v12 = vpack.c.bf16 %v2519_v49, %v2518_v47  ;;  %3004 = vst [vmem:[%s4159_s30 + $0x28] sm:$0xff] %v2988_v51  }
 0x23c   : > { %v2998_v55 = vpack.c.bf16 %v2521_v15, %v2520_v10 }
 0x23d   : > { %3005 = vst [vmem:[%s4159_s30 + $0x30] sm:$0xff] %v2993_v12  }
 0x23e   : > { %3006 = vst [vmem:[%s4159_s30 + $0x38] sm:$0xff] %v2998_v55  }
 0x23f PF: > { %2560 = sbr.rel (!%p3359_p9) target bundleno = 583 (0x247), region = 89  ;;  %s2959_s19 = sshll.u32 (%p3359_p9), %s3241_s20, 5  ;;  %v2582_v54 = vld [vmem:[%s4159_s30] sm:$0xff] (%p3359_p9)   ;;  %v2586_v57 = vld [vmem:[%s4159_s30 + $0x8] sm:$0xff] (%p3359_p9)   ;;  %v2590_v11 = vld [vmem:[%s4159_s30 + $0x10] sm:$0xff] (%p3359_p9)  }
 0x240   : > { %s2566_s14 = scalar_lea.vmem (%p3359_p9), %s4228_s4, %s2959_s19  ;;  %v2594_v1 = vld [vmem:[%s4159_s30 + $0x18] sm:$0xff] (%p3359_p9)  }
 0x241   : > { %v2598_v5 = vld [vmem:[%s4159_s30 + $0x20] sm:$0xff] (%p3359_p9)   ;;  %2583 = vst [vmem:[%s2566_s14] sm:$0xff] (%p3359_p9), %v2582_v54   ;;  %2587 = vst [vmem:[%s2566_s14 + $0x8] sm:$0xff] (%p3359_p9), %v2586_v57  }
 0x242   : > { %v2602_v40 = vld [vmem:[%s4159_s30 + $0x28] sm:$0xff] (%p3359_p9)   ;;  %2591 = vst [vmem:[%s2566_s14 + $0x10] sm:$0xff] (%p3359_p9), %v2590_v11   ;;  %2595 = vst [vmem:[%s2566_s14 + $0x18] sm:$0xff] (%p3359_p9), %v2594_v1  }
 0x243   : > { %2599 = vst [vmem:[%s2566_s14 + $0x80] sm:$0xff] (%p3359_p9), %v2598_v5   ;;  %2603 = vst [vmem:[%s2566_s14 + $0x88] sm:$0xff] (%p3359_p9), %v2602_v40  }
 0x244   : > { %v2606_v43 = vld [vmem:[%s4159_s30 + $0x30] sm:$0xff] (%p3359_p9)  }
 0x245   : > { %v2610_v26 = vld [vmem:[%s4159_s30 + $0x38] sm:$0xff] (%p3359_p9)   ;;  %2607 = vst [vmem:[%s2566_s14 + $0x90] sm:$0xff] (%p3359_p9), %v2606_v43  }
 0x246   : > { %2611 = vst [vmem:[%s2566_s14 + $0x98] sm:$0xff] %v2610_v26  }
 0x247 PF: > { %s14_s23 = sadd.s32 1, %s3253_s23   ;;  %s4233_s15 = smov %s3225_s16 }
 0x248   : > { %p11_p2 = scmp.ge.s32.totalorder %s14_s23, 14   ;;  %s4234_s16 = smov %s3364_s9 }
 0x249   : > { %s4235_s17 = smov %s3233_s18  ;;  %s4236_s18 = smov %s3367_s10 }
 0x24a   : > { %s4237_s19 = smov %s3245_s21  ;;  %s4238_s20 = smov %s3249_s22 }
 0x24b   : > { %s4239_s21 = smov %s4242_s24  ;;  %s4240_s22 = smov %s4246_s25 }
 0x24c   :  { %13 = sbr.rel (!%p11_p2) target bundleno = 5 (0x5), region = 167 }

// kernel: basic_transform_forward.3
= control target key start
LH: loop header
LB: loop body
LE: loop exit
PB: predicated region body
PF: predicated region fallthrough
CT: control target
= control target key end

     0   :  { %s4080_s15 = smov 0   ;;  %s4082_s16 = smov 0   ;;  %s5372_s0 = inlined_call_operand.vmem [shape: bf16[2,4,1,10,10,128], index: 0, kind: input, shape index: {}]   ;;  %s5373_s1 = inlined_call_operand.vmem [shape: bf16[1,1152,128], index: 1, kind: input, shape index: {}]   ;;  %s5374_s2 = inlined_call_operand.vmem [shape: f32[1,128], index: 2, kind: input, shape index: {}]   ;;  %s5375_s3 = inlined_call_operand.vmem [shape: f32[1,128], index: 3, kind: input, shape index: {}]   ;;  %s5376_s4 = inlined_call_operand.vmem [shape: bf16[2,4,8,8,128], index: 4, kind: output, shape index: {}]  }
   0x1   :  { %s4084_s17 = smov 0   ;;  %s4086_s18 = smov 0  }
   0x2   :  { %s4088_s19 = smov 0  }
   0x3 LB: > { %s29_s20 = sadd.s32 1, %s4049_s18  ;;  %s3206_s21 = sadd.s32 4294967295, %s4053_s19   ;;  %s4053_s19 = sphi %s4088_s19, %s14_s19   ;;  %s4049_s18 = sphi %s4086_s18, %s5385_s18   ;;  %s4045_s17 = sphi %s4084_s17, %s5384_s17   ;;  %s4041_s16 = sphi %s4082_s16, %s5383_s16   ;;  %s4037_s15 = sphi %s4080_s15, %s5382_s15  }
   0x4   : > { %p31_p0 = scmp.ge.s32.totalorder %s29_s20, 4  ;;  %p51_p1 = scmp.ne.s32.totalorder %s4041_s16, %s4037_s15 }
   0x5   : > { %p52_p2 = scmp.eq.s32.totalorder %s4053_s19, 0  ;;  %p146_p4 = scmp.eq.s32.totalorder %s3206_s21, 3 }
   0x6   : > { %s5387_s20 = smov (%p31_p0, %s29_s20), 0  ;;  %s44_s23 = sadd.s32 1, %s4041_s16 }
   0x7   : > { %p53_p3 = por %p52_p2, %p51_p1  ;;  %s40_s22 = ssub.s32 %s4049_s18, %s5387_s20 }
   0x8   : > { %p42_p5 = scmp.eq.s32.totalorder %s40_s22, 0  ;;  %p4115_p6 = por %p146_p4, %p51_p1 }
   0x9   : > { %p3209_p7 = scmp.ge.s32.totalorder %s4053_s19, 4 }
   0xa   : > { %s4120_s25 = scalar_select %p42_p5, %s4041_s16, %s44_s23  }
   0xb   : > { %177 = sbr.rel (%p3209_p7) target bundleno = 33 (0x21), region = 28 }
  0x12   : > { %180 = sbr.rel (!%p53_p3) target bundleno = 33 (0x21), region = 32  ;;  %s182_s26 = sand.u32 (%p53_p3), 1, %s4041_s16  }
  0x13   : > { %s3877_s27 = smul.u32 (%p53_p3), 80, %s4049_s18 }
  0x14   : > { %s3876_s28 = smul.u32 (%p53_p3), 160, %s182_s26 }
  0x15   : > { %s4128_s5 = scalar_lea.vmem (%p53_p3), %s5372_s0, %s3877_s27 }
  0x16   : > { %v207_v0 = vld [vmem:[%s4128_s5] sm:$0xff] (%p53_p3)   ;;  %v211_v1 = vld [vmem:[%s4128_s5 + $0x8] sm:$0xff] (%p53_p3)   ;;  %v215_v2 = vld [vmem:[%s4128_s5 + $0x10] sm:$0xff] (%p53_p3)   ;;  %s4133_s6 = scalar_lea.vmem (%p53_p3), [#allocation2], %s3876_s28 }
  0x17   : > { %208 = vst [vmem:[%s4133_s6] sm:$0xff] (%p53_p3), %v207_v0   ;;  %212 = vst [vmem:[%s4133_s6 + $0x8] sm:$0xff] (%p53_p3), %v211_v1   ;;  %v219_v3 = vld [vmem:[%s4128_s5 + $0x18] sm:$0xff] (%p53_p3)   ;;  %v223_v4 = vld [vmem:[%s4128_s5 + $0x20] sm:$0xff] (%p53_p3)  }
  0x18   : > { %216 = vst [vmem:[%s4133_s6 + $0x10] sm:$0xff] (%p53_p3), %v215_v2   ;;  %v227_v5 = vld [vmem:[%s4128_s5 + $0x28] sm:$0xff] (%p53_p3)   ;;  %220 = vst [vmem:[%s4133_s6 + $0x18] sm:$0xff] (%p53_p3), %v219_v3   ;;  %v231_v6 = vld [vmem:[%s4128_s5 + $0x30] sm:$0xff] (%p53_p3)  }
  0x19   : > { %224 = vst [vmem:[%s4133_s6 + $0x20] sm:$0xff] %v223_v4   ;;  %228 = vst [vmem:[%s4133_s6 + $0x28] sm:$0xff] %v227_v5   ;;  %v235_v7 = vld [vmem:[%s4128_s5 + $0x38] sm:$0xff]   ;;  %v239_v8 = vld [vmem:[%s4128_s5 + $0x40] sm:$0xff]  }
  0x1a   : > { %232 = vst [vmem:[%s4133_s6 + $0x30] sm:$0xff] %v231_v6   ;;  %236 = vst [vmem:[%s4133_s6 + $0x38] sm:$0xff] %v235_v7   ;;  %v243_v9 = vld [vmem:[%s4128_s5 + $0x48] sm:$0xff]   ;;  %v247_v10 = vld [vmem:[%s4128_s5 + $0x140] sm:$0xff]  }
  0x1b   : > { %240 = vst [vmem:[%s4133_s6 + $0x40] sm:$0xff] %v239_v8   ;;  %v251_v11 = vld [vmem:[%s4128_s5 + $0x148] sm:$0xff]   ;;  %244 = vst [vmem:[%s4133_s6 + $0x48] sm:$0xff] %v243_v9   ;;  %v255_v12 = vld [vmem:[%s4128_s5 + $0x150] sm:$0xff]  }
  0x1c   : > { %248 = vst [vmem:[%s4133_s6 + $0x50] sm:$0xff] %v247_v10   ;;  %252 = vst [vmem:[%s4133_s6 + $0x58] sm:$0xff] %v251_v11   ;;  %v259_v13 = vld [vmem:[%s4128_s5 + $0x158] sm:$0xff]   ;;  %v263_v14 = vld [vmem:[%s4128_s5 + $0x160] sm:$0xff]  }
  0x1d   : > { %256 = vst [vmem:[%s4133_s6 + $0x60] sm:$0xff] %v255_v12   ;;  %260 = vst [vmem:[%s4133_s6 + $0x68] sm:$0xff] %v259_v13   ;;  %v267_v15 = vld [vmem:[%s4128_s5 + $0x168] sm:$0xff]   ;;  %v271_v16 = vld [vmem:[%s4128_s5 + $0x170] sm:$0xff]  }
  0x1e   : > { %264 = vst [vmem:[%s4133_s6 + $0x70] sm:$0xff] %v263_v14   ;;  %v275_v17 = vld [vmem:[%s4128_s5 + $0x178] sm:$0xff]   ;;  %268 = vst [vmem:[%s4133_s6 + $0x78] sm:$0xff] %v267_v15   ;;  %v279_v18 = vld [vmem:[%s4128_s5 + $0x180] sm:$0xff]  }
  0x1f   : > { %272 = vst [vmem:[%s4133_s6 + $0x80] sm:$0xff] %v271_v16   ;;  %276 = vst [vmem:[%s4133_s6 + $0x88] sm:$0xff] %v275_v17   ;;  %v283_v19 = vld [vmem:[%s4128_s5 + $0x188] sm:$0xff]  }
  0x20   : > { %280 = vst [vmem:[%s4133_s6 + $0x90] sm:$0xff] %v279_v18   ;;  %284 = vst [vmem:[%s4133_s6 + $0x98] sm:$0xff] %v283_v19  }
  0x21 PF: > { %p3211_p8 = scmp.ge.s32.totalorder %s4053_s19, 1  ;;  %p388_p9 = scmp.lt.s32.totalorder %s4053_s19, 5 }
  0x23   : > { %p389_p10 = pnand %p3211_p8, %p388_p9 }
  0x24   : > { %v3919_v20 = vld [vmem:[%s5373_s1 + $0x40] sm:$0xff] (!%p389_p10)   ;;  %v3923_v24 = vld [vmem:[%s5373_s1 + $0x48] sm:$0xff] (!%p389_p10)   ;;  %v3927_v28 = vld [vmem:[%s5373_s1 + $0x50] sm:$0xff] (!%p389_p10)   ;;  %s395_s23 = sand.u32 (!%p389_p10), 1, %s4037_s15   ;;  %vm730_vm0 = vcmask (!%p389_p10), 1042432   ;;  %vm731_vm1 = vcmask (!%p389_p10), 1046532  }
  0x25   : > { %392 = sbr.rel (%p389_p10) target bundleno = 454 (0x1c6), region = 73  ;;  %v3920_v21 = vld [vmem:[%s5373_s1 + $0xc0] sm:$0xff] (!%p389_p10)   ;;  %3556 = vmatprep.subr.bf16.mxu0 (!%p389_p10), %v3919_v20  ;;  %v3924_v25 = vld [vmem:[%s5373_s1 + $0xc8] sm:$0xff] (!%p389_p10)   ;;  %v3928_v29 = vld [vmem:[%s5373_s1 + $0xd0] sm:$0xff] (!%p389_p10)   ;;  %vm455_vm2 = vsmask.f32 (!%p389_p10), 3328 }
  0x26   : > { %v3921_v22 = vld [vmem:[%s5373_s1] sm:$0xff] (!%p389_p10)   ;;  %3620 = vmatprep.subr.bf16.mxu1 (!%p389_p10), %v3920_v21  ;;  %v3925_v26 = vld [vmem:[%s5373_s1 + $0x8] sm:$0xff] (!%p389_p10)   ;;  %v3929_v30 = vld [vmem:[%s5373_s1 + $0x10] sm:$0xff] (!%p389_p10)   ;;  %s3878_s6 = smul.u32 (!%p389_p10), 160, %s395_s23  ;;  %vm456_vm3 = vsmask.f32 (!%p389_p10), 7440 }
  0x27   : > { %v3922_v23 = vld [vmem:[%s5373_s1 + $0x80] sm:$0xff] (!%p389_p10)   ;;  %3557 = vmatpush3.bf16.msra.mxu0 (!%p389_p10), %v3921_v22  ;;  %v3926_v27 = vld [vmem:[%s5373_s1 + $0x88] sm:$0xff] (!%p389_p10)   ;;  %v3930_v31 = vld [vmem:[%s5373_s1 + $0x90] sm:$0xff] (!%p389_p10)  }
  0x28   : > { %3621 = vmatpush3.bf16.msra.mxu1 (!%p389_p10), %v3922_v23  ;;  %3558 = vmatprep.subr.bf16.mxu0 (!%p389_p10), %v3923_v24  ;;  %v3931_v32 = vld [vmem:[%s5373_s1 + $0x58] sm:$0xff] (!%p389_p10)   ;;  %v3935_v36 = vld [vmem:[%s5373_s1 + $0x60] sm:$0xff] (!%p389_p10)   ;;  %v3939_v40 = vld [vmem:[%s5373_s1 + $0x68] sm:$0xff] (!%p389_p10)   ;;  %s4273_s28 = scalar_lea.vmem (!%p389_p10), [#allocation2], %s3878_s6  ;;  %s3212_s6 = sshll.u32 (!%p389_p10), %s395_s23, 6 }
  0x29   : > { %3622 = vmatprep.subr.bf16.mxu1 (!%p389_p10), %v3924_v25  ;;  %v3932_v33 = vld [vmem:[%s5373_s1 + $0xd8] sm:$0xff] (!%p389_p10)   ;;  %v3936_v37 = vld [vmem:[%s5373_s1 + $0xe0] sm:$0xff] (!%p389_p10)   ;;  %v3940_v41 = vld [vmem:[%s5373_s1 + $0xe8] sm:$0xff] (!%p389_p10)   ;;  %s5313_s15 = scalar_lea.vmem (!%p389_p10), [#allocation3], %s3212_s6 }
  0x2a   : > { %v3933_v34 = vld [vmem:[%s5373_s1 + $0x18] sm:$0xff] (!%p389_p10)   ;;  %v3937_v38 = vld [vmem:[%s5373_s1 + $0x20] sm:$0xff] (!%p389_p10)   ;;  %v3941_v42 = vld [vmem:[%s5373_s1 + $0x28] sm:$0xff] (!%p389_p10)  }
  0x2b   : > { %3559 = vmatpush3.bf16.msra.mxu0 (!%p389_p10), %v3925_v26  ;;  %v3934_v35 = vld [vmem:[%s5373_s1 + $0x98] sm:$0xff] (!%p389_p10)   ;;  %v3938_v39 = vld [vmem:[%s5373_s1 + $0xa0] sm:$0xff] (!%p389_p10)   ;;  %v3942_v43 = vld [vmem:[%s5373_s1 + $0xa8] sm:$0xff] (!%p389_p10)  }
  0x2c   : > { %3623 = vmatpush3.bf16.msra.mxu1 %v3926_v27  ;;  %3560 = vmatprep.subr.bf16.mxu0 %v3927_v28  ;;  %v3943_v44 = vld [vmem:[%s5373_s1 + $0x70] sm:$0xff]   ;;  %v3947_v48 = vld [vmem:[%s5373_s1 + $0x78] sm:$0xff]   ;;  %v4276_v52 = vld [vmem:[%s4273_s28] sm:$0xf]  ;;  %s3508_s23 = sshll.u32 (%p4115_p6), %s4045_s17, 5 }
  0x2d   : > { %3624 = vmatprep.subr.bf16.mxu1 %v3928_v29  ;;  %v3944_v45 = vld [vmem:[%s5373_s1 + $0xf0] sm:$0xff]   ;;  %v3948_v49 = vld [vmem:[%s5373_s1 + $0xf8] sm:$0xff]   ;;  %v4279_v53 = vld [vmem:[%s4273_s28 + $0x8] sm:$0xf]  ;;  %v459_v56 = vshrl.u32 %v4276_v52, 16  ;;  %v462_v57 = vshll.u32 %v4276_v52, 16  ;;  %s3029_s9 = scalar_lea.vmem (%p4115_p6), %s5376_s4, %s3508_s23 }
  0x2e   : > { %v3945_v46 = vld [vmem:[%s5373_s1 + $0x30] sm:$0xff]   ;;  %v3949_v50 = vld [vmem:[%s5373_s1 + $0x38] sm:$0xff]   ;;  %v439_v54 = vld [vmem:[%s4273_s28 + $0x4] sm:$0x1]  ;;  %v473_v59 = vshrl.u32 %v4279_v53, 16  ;;  %v476_v61 = vshll.u32 %v4279_v53, 16 }
  0x2f   : > { %3561 = vmatpush3.bf16.msra.mxu0 %v3929_v30  ;;  %v3946_v47 = vld [vmem:[%s5373_s1 + $0xb0] sm:$0xff]   ;;  %v3950_v51 = vld [vmem:[%s5373_s1 + $0xb8] sm:$0xff]   ;;  %v440_v55 = vld [vmem:[%s4273_s28 + $0xc] sm:$0x1]  ;;  %v468_v58 = vshll.u32 %v439_v54, 16  ;;  %v735_v63 = vrot.slane %v439_v54, 5 }
  0x30   : > { %3625 = vmatpush3.bf16.msra.mxu1 %v3930_v31  ;;  %3562 = vmatprep.subr.bf16.mxu0 %v3931_v32  ;;  %v3229_v60 = vld [vmem:[%s4273_s28 + $0x8] sm:$0xf]  ;;  %v482_v62 = vshll.u32 %v440_v55, 16  ;;  %v739_v0 = vrot.slane %v440_v55, 5  ;;  %v3230_v1 = vld [vmem:[%s4273_s28 + $0x10] sm:$0xf]  ;;  %vm4293_vm4 = vmor %vm730_vm0, %vm731_vm1 }
  0x31   : > { %3626 = vmatprep.subr.bf16.mxu1 %v3932_v33  ;;  %v461_v2 = vrot.slane %v459_v56, 4  ;;  %v464_v3 = vrot.slane %v462_v57, 5  ;;  %v470_v4 = vrot.slane %v468_v58, 5  ;;  %v475_v5 = vrot.slane %v473_v59, 4  ;;  %v682_v6 = vld [vmem:[%s4273_s28] sm:$0xe]  ;;  %vm4299_vm5 = vmor %vm455_vm2, %vm456_vm3 }
  0x32   : > { %v478_v7 = vrot.slane %v476_v61, 5  ;;  %v484_v8 = vrot.slane %v482_v62, 5  ;;  %v831_v9 = vshrl.u32 %v3229_v60, 16  ;;  %v834_v10 = vshll.u32 %v3229_v60, 16  ;;  %v683_v11 = vld [vmem:[%s4273_s28 + $0x8] sm:$0xe] }
  0x33   : > { %3563 = vmatpush3.bf16.msra.mxu0 %v3933_v34  ;;  %v465_v12 = vor.u32 %v464_v3, %v461_v2  ;;  %v845_v13 = vshrl.u32 %v3230_v1, 16  ;;  %v848_v14 = vshll.u32 %v3230_v1, 16  ;;  %v3381_v15 = vcombine.low %v3229_v60, %v3230_v1  ;;  %v3953_v22 = vld [vmem:[%s5373_s1 + $0x140] sm:$0xff]   ;;  %v684_v60 = vld [vmem:[%s4273_s28 + $0x10] sm:$0xe] }
  0x34   : > { %3627 = vmatpush3.bf16.msra.mxu1 %v3934_v35  ;;  %3564 = vmatprep.subr.bf16.mxu0 %v3935_v36  ;;  %v479_v18 = vor.u32 %v478_v7, %v475_v5  ;;  %v833_v19 = vrot.slane %v831_v9, 4  ;;  %v836_v20 = vrot.slane %v834_v10, 5  ;;  %v3213_v21 = vrot.slane %v682_v6, 9  ;;  %v3954_v30 = vld [vmem:[%s5373_s1 + $0x1c0] sm:$0xff]   ;;  %v685_v1 = vld [vmem:[%s4273_s28 + $0x18] sm:$0xe] }
  0x35   : > { %3628 = vmatprep.subr.bf16.mxu1 %v3936_v37  ;;  %v466_v23 = vrot.slane %v465_v12, 4  ;;  %v4306_v24 = vrot.slane %v845_v13, 4  ;;  %v4308_v25 = vrot.slane %v848_v14, 5  ;;  %2579 = vmatprep.mubr.bf16.mxu1 %v3381_v15  ;;  %v3214_v26 = vrot.slane %v683_v11, 9  ;;  %v3955_v33 = vld [vmem:[%s5373_s1 + $0x100] sm:$0xff]   ;;  %v3959_v6 = vld [vmem:[%s5373_s1 + $0x148] sm:$0xff]  }
  0x36   : > { %v480_v27 = vrot.slane %v479_v18, 4  ;;  %v837_v28 = vor.u32 %v836_v20, %v833_v19  ;;  %v736_v29 = vsel %vm4293_vm4, %v3213_v21, %v735_v63  ;;  %v3357_v35 = vcombine.low %v4276_v52, %v4279_v53  ;;  %v3956_v37 = vld [vmem:[%s5373_s1 + $0x180] sm:$0xff]   ;;  %v3960_v19 = vld [vmem:[%s5373_s1 + $0x1c8] sm:$0xff]  }
  0x37   : > { %3565 = vmatpush3.bf16.msra.mxu0 %v3937_v38  ;;  %v471_v31 = vsel %vm4299_vm5, %v466_v23, %v470_v4  ;;  %v740_v32 = vsel %vm4293_vm4, %v3214_v26, %v739_v0  ;;  %v4330_v38 = vld [vmem:[%s4273_s28 + $0x10] sm:$0xf]  ;;  %v3232_v53 = vld [vmem:[%s4273_s28 + $0x20] sm:$0xf]  ;;  %v3216_v10 = vrot.slane %v685_v1, 9 }
  0x38   : > { %3629 = vmatpush3.bf16.msra.mxu1 %v3938_v39  ;;  %3566 = vmatprep.subr.bf16.mxu0 %v3939_v40  ;;  %v485_v34 = vsel %vm4299_vm5, %v480_v27, %v484_v8  ;;  %v3373_v36 = vcombine.low %v736_v29, %v740_v32  ;;  %v4333_v39 = vld [vmem:[%s4273_s28 + $0x18] sm:$0xf]  ;;  %v873_v0 = vshrl.u32 %v3232_v53, 16  ;;  %v876_v4 = vshll.u32 %v3232_v53, 16  ;;  %v4378_v29 = vld [vmem:[%s4273_s28 + $0x20] sm:$0xf] }
  0x39   : > { %3630 = vmatprep.subr.bf16.mxu1 %v3940_v41  ;;  %v3365_v40 = vcombine.low %v471_v31, %v485_v34  ;;  %v4335_v41 = vrot.slane %v837_v28, 4  ;;  %v3215_v8 = vrot.slane %v684_v60, 9  ;;  %v3358_v23 = vcombine.low %v4330_v38, %v4333_v39  ;;  %v3962_v28 = vld [vmem:[%s5373_s1 + $0x188] sm:$0xff]   ;;  %v443_v32 = vld [vmem:[%s4273_s28 + $0x24] sm:$0x1] }
  0x3a   : > { %v4352_v7 = vrot.slane %v873_v0, 4  ;;  %v4354_v13 = vrot.slane %v876_v4, 5  ;;  %v515_v34 = vshrl.u32 %v4378_v29, 16  ;;  %v751_v1 = vrot.slane %v443_v32, 5 }
  0x3b   : > { %3567 = vmatpush3.bf16.msra.mxu0 %v3941_v42  ;;  %v851_v42 = vor.u32 %v4308_v25, %v4306_v24  ;;  %2482 = vmatprep.mubr.bf16.mxu0 %v3365_v40  ;;  %v3961_v25 = vld [vmem:[%s5373_s1 + $0x108] sm:$0xff]  }
  0x3c   : > { %3631 = vmatpush3.bf16.msra.mxu1 %v3942_v43  ;;  %3568 = vmatprep.subr.bf16.mxu0 %v3943_v44  ;;  %v441_v43 = vld [vmem:[%s4273_s28 + $0x14] sm:$0x1]  ;;  %v442_v44 = vld [vmem:[%s4273_s28 + $0x1c] sm:$0x1] }
  0x3d   : > { %3632 = vmatprep.subr.bf16.mxu1 %v3944_v45  ;;  %v487_v45 = vshrl.u32 %v4330_v38, 16  ;;  %v510_v52 = vshll.u32 %v442_v44, 16  ;;  %v743_v9 = vrot.slane %v441_v43, 5  ;;  %v747_v14 = vrot.slane %v442_v44, 5 }
  0x3e   : > { %v4356_v15 = vrot.slane %v851_v42, 4  ;;  %v3233_v42 = vld [vmem:[%s4273_s28 + $0x28] sm:$0xf] }
  0x3f   : > { %3569 = vmatpush3.bf16.msra.mxu0 %v3945_v46  ;;  %v490_v46 = vshll.u32 %v4330_v38, 16  ;;  %v512_v61 = vrot.slane %v510_v52, 5  ;;  %v744_v18 = vsel %vm4293_vm4, %v3215_v8, %v743_v9  ;;  %v748_v24 = vsel %vm4293_vm4, %v3216_v10, %v747_v14  ;;  %v686_v52 = vld [vmem:[%s4273_s28 + $0x20] sm:$0xe]  ;;  %v3967_v10 = vld [vmem:[%s5373_s1 + $0x110] sm:$0xff]  }
  0x40   : > { %3633 = vmatpush3.bf16.msra.mxu1 %v3946_v47  ;;  %3570 = vmatprep.subr.bf16.mxu0 %v3947_v48  ;;  %v496_v47 = vshll.u32 %v441_v43, 16  ;;  %v501_v48 = vshrl.u32 %v4333_v39, 16  ;;  %v3374_v27 = vcombine.low %v744_v18, %v748_v24  ;;  %v517_v43 = vrot.slane %v515_v34, 4  ;;  %v3968_v18 = vld [vmem:[%s5373_s1 + $0x190] sm:$0xff]   ;;  %v3236_v34 = vld [vmem:[%s4273_s28 + $0x40] sm:$0xf] }
  0x41   : > { %3634 = vmatprep.subr.bf16.mxu1 %v3948_v49  ;;  %v504_v49 = vshll.u32 %v4333_v39, 16  ;;  %v492_v56 = vrot.slane %v490_v46, 5  ;;  %v887_v46 = vshrl.u32 %v3233_v42, 16  ;;  %v445_v24 = vld [vmem:[%s4273_s28 + $0x34] sm:$0x1] }
  0x42   : > { %v498_v57 = vrot.slane %v496_v47, 5  ;;  %v503_v58 = vrot.slane %v501_v48, 4  ;;  %v890_v47 = vshll.u32 %v3233_v42, 16 }
  0x43   : > { %3571 = vmatpush3.bf16.msra.mxu0 %v3949_v50  ;;  %v3231_v50 = vld [vmem:[%s4273_s28 + $0x18] sm:$0xf]  ;;  %v506_v59 = vrot.slane %v504_v49, 5 }
  0x44   : > { %3635 = vmatpush3.bf16.msra.mxu1 %v3950_v51  ;;  %3684 = vmatprep.subr.bf16.mxu0 %v3953_v22  ;;  %v489_v51 = vrot.slane %v487_v45, 4  ;;  %v859_v54 = vshrl.u32 %v3231_v50, 16  ;;  %v862_v55 = vshll.u32 %v3231_v50, 16  ;;  %v3382_v5 = vcombine.low %v3231_v50, %v3232_v53  ;;  %v3234_v45 = vld [vmem:[%s4273_s28 + $0x30] sm:$0xf] }
  0x45   : > { %3748 = vmatprep.subr.bf16.mxu1 %v3954_v30  ;;  %v507_v3 = vor.u32 %v506_v59, %v503_v58  ;;  %v4381_v30 = vld [vmem:[%s4273_s28 + $0x28] sm:$0xf]  ;;  %v3965_v58 = vld [vmem:[%s5373_s1 + $0x150] sm:$0xff]   ;;  %v904_v60 = vshll.u32 %v3234_v45, 16 }
  0x46   : > { %2483 = vmatmul.mubr.bf16.vlgmr.msra.gmra.mrb[0].mxu0 %v3357_v35  ;;  %v861_v62 = vrot.slane %v859_v54, 4  ;;  %v864_v63 = vrot.slane %v862_v55, 5  ;;  %v493_v2 = vor.u32 %v492_v56, %v489_v51  ;;  %v518_v35 = vshll.u32 %v4378_v29, 16 }
  0x47   : > { %2580 = vmatmul.mubr.bf16.vlgmr.msra.gmra.mrb[0].mxu1 %v3373_v36  ;;  %3685 = vmatpush3.bf16.msra.mxu0 %v3955_v33  ;;  %v508_v12 = vrot.slane %v507_v3, 4  ;;  %v444_v33 = vld [vmem:[%s4273_s28 + $0x2c] sm:$0x1]  ;;  %v879_v36 = vor.u32 %v4354_v13, %v4352_v7  ;;  %v529_v38 = vshrl.u32 %v4381_v30, 16  ;;  %v532_v39 = vshll.u32 %v4381_v30, 16 }
  0x48   : > { %3749 = vmatpush3.bf16.msra.mxu1 %v3956_v37  ;;  %v494_v11 = vrot.slane %v493_v2, 4  ;;  %2587 = vmatprep.mubr.bf16.mxu1 %v3382_v5  ;;  %v865_v20 = vor.u32 %v864_v63, %v861_v62  ;;  %v524_v37 = vshll.u32 %v443_v32, 16  ;;  %v538_v40 = vshll.u32 %v444_v33, 16 }
  0x49   : > { %3686 = vmatprep.subr.bf16.mxu0 %v3959_v6  ;;  %v513_v22 = vsel %vm4299_vm5, %v508_v12, %v512_v61  ;;  %3750 = vmatprep.subr.bf16.mxu1 %v3960_v19  ;;  %v520_v44 = vrot.slane %v518_v35, 5  ;;  %v531_v49 = vrot.slane %v529_v38, 4  ;;  %v534_v50 = vrot.slane %v532_v39, 5  ;;  %v3966_v6 = vld [vmem:[%s5373_s1 + $0x1d0] sm:$0xff]  }
  0x4a   : > { %v499_v21 = vsel %vm4299_vm5, %v494_v11, %v498_v57  ;;  %v4383_v31 = vrot.slane %v865_v20, 4  ;;  %v526_v48 = vrot.slane %v524_v37, 5  ;;  %v540_v51 = vrot.slane %v538_v40, 5  ;;  %v687_v57 = vld [vmem:[%s4273_s28 + $0x28] sm:$0xe] }
  0x4b   : > { %v3366_v26 = vcombine.low %v499_v21, %v513_v22  ;;  %3687 = vmatpush3.bf16.msra.mxu0 %v3961_v25  ;;  %v521_v53 = vor.u32 %v520_v44, %v517_v43  ;;  %v889_v54 = vrot.slane %v887_v46, 4  ;;  %v892_v55 = vrot.slane %v890_v47, 5  ;;  %v4428_v22 = vld [vmem:[%s4273_s28 + $0x30] sm:$0xf]  ;;  %v446_v25 = vld [vmem:[%s4273_s28 + $0x3c] sm:$0x1] }
  0x4c   : > { %3751 = vmatpush3.bf16.msra.mxu1 %v3962_v28  ;;  %v901_v56 = vshrl.u32 %v3234_v45, 16  ;;  %v535_v59 = vor.u32 %v534_v50, %v531_v49  ;;  %v3383_v61 = vcombine.low %v3233_v42, %v3234_v45  ;;  %v3217_v62 = vrot.slane %v686_v52, 9  ;;  %3688 = vmatprep.subr.bf16.mxu0 %v3965_v58  ;;  %v688_v38 = vld [vmem:[%s4273_s28 + $0x30] sm:$0xe]  ;;  %v689_v45 = vld [vmem:[%s4273_s28 + $0x38] sm:$0xe] }
  0x4d   : > { %2490 = vmatprep.mubr.bf16.mxu0 %v3366_v26  ;;  %v522_v63 = vrot.slane %v521_v53, 4  ;;  %v3218_v2 = vrot.slane %v687_v57, 9  ;;  %v4402_v4 = vrot.slane %v904_v60, 5  ;;  %v755_v5 = vrot.slane %v444_v33, 5  ;;  %3752 = vmatprep.subr.bf16.mxu1 %v3966_v6  ;;  %v3235_v33 = vld [vmem:[%s4273_s28 + $0x38] sm:$0xf] }
  0x4e   : > { %2491 = vmatmul.mubr.bf16.gmra.mrb[4].mxu0 %v3358_v23  ;;  %v4400_v0 = vrot.slane %v901_v56, 4  ;;  %v536_v3 = vrot.slane %v535_v59, 4  ;;  %v893_v7 = vor.u32 %v892_v55, %v889_v54  ;;  %v752_v9 = vsel %vm4293_vm4, %v3217_v62, %v751_v1  ;;  %v4431_v23 = vld [vmem:[%s4273_s28 + $0x38] sm:$0xf] }
  0x4f   : > { %2588 = vmatmul.mubr.bf16.gmra.mrb[4].mxu1 %v3374_v27  ;;  %v527_v8 = vsel %vm4299_vm5, %v522_v63, %v526_v48  ;;  %v4414_v11 = vrot.slane %v879_v36, 4  ;;  %v3359_v13 = vcombine.low %v4378_v29, %v4381_v30  ;;  %v756_v14 = vsel %vm4293_vm4, %v3218_v2, %v755_v5  ;;  %3689 = vmatpush3.bf16.msra.mxu0 %v3967_v10  ;;  %v3971_v54 = vld [vmem:[%s5373_s1 + $0x158] sm:$0xff]  }
  0x50   : > { %2595 = vmatprep.mubr.bf16.mxu1 %v3383_v61  ;;  %v541_v12 = vsel %vm4299_vm5, %v536_v3, %v540_v51  ;;  %v4425_v19 = vrot.slane %v893_v7, 4  ;;  %v3375_v21 = vcombine.low %v752_v9, %v756_v14  ;;  %3753 = vmatpush3.bf16.msra.mxu1 %v3968_v18  ;;  %v543_v26 = vshrl.u32 %v4428_v22, 16  ;;  %v3972_v62 = vld [vmem:[%s5373_s1 + $0x1d8] sm:$0xff]   ;;  %v4476_v7 = vld [vmem:[%s4273_s28 + $0x50] sm:$0xf] }
  0x51   : > { %v3367_v20 = vcombine.low %v527_v8, %v541_v12  ;;  %v546_v27 = vshll.u32 %v4428_v22, 16  ;;  %v552_v28 = vshll.u32 %v445_v24, 16  ;;  %v557_v29 = vshrl.u32 %v4431_v23, 16  ;;  %3690 = vmatprep.subr.bf16.mxu0 %v3971_v54  ;;  %v3973_v2 = vld [vmem:[%s5373_s1 + $0x118] sm:$0xff]   ;;  %3754 = vmatprep.subr.bf16.mxu1 %v3972_v62  ;;  %v3979_v62 = vld [vmem:[%s5373_s1 + $0x120] sm:$0xff]  }
  0x52   : > { %v560_v30 = vshll.u32 %v4431_v23, 16  ;;  %v566_v32 = vshll.u32 %v446_v25, 16  ;;  %v545_v35 = vrot.slane %v543_v26, 4  ;;  %v907_v39 = vor.u32 %v4402_v4, %v4400_v0  ;;  %v3974_v6 = vld [vmem:[%s5373_s1 + $0x198] sm:$0xff]  }
  0x53   : > { %2498 = vmatprep.mubr.bf16.mxu0 %v3367_v20  ;;  %v548_v36 = vrot.slane %v546_v27, 5  ;;  %v559_v37 = vrot.slane %v557_v29, 4  ;;  %v554_v40 = vrot.slane %v552_v28, 5  ;;  %v915_v43 = vshrl.u32 %v3235_v33, 16  ;;  %3691 = vmatpush3.bf16.msra.mxu0 %v3973_v2  ;;  %v4481_v12 = vld [vmem:[%s4273_s28 + $0x58] sm:$0xf] }
  0x54   : > { %v562_v42 = vrot.slane %v560_v30, 5  ;;  %v918_v44 = vshll.u32 %v3235_v33, 16  ;;  %v929_v47 = vshrl.u32 %v3236_v34, 16  ;;  %v932_v48 = vshll.u32 %v3236_v34, 16  ;;  %v448_v14 = vld [vmem:[%s4273_s28 + $0x5c] sm:$0x1]  ;;  %3755 = vmatpush3.bf16.msra.mxu1 %v3974_v6 }
  0x55   : > { %v549_v46 = vor.u32 %v548_v36, %v545_v35  ;;  %v3384_v49 = vcombine.low %v3235_v33, %v3236_v34  ;;  %v568_v51 = vrot.slane %v566_v32, 5  ;;  %v4445_v52 = vrot.slane %v915_v43, 4  ;;  %v3238_v27 = vld [vmem:[%s4273_s28 + $0x60] sm:$0xf]  ;;  %v690_v35 = vld [vmem:[%s4273_s28 + $0x50] sm:$0xe] }
  0x56   : > { %2499 = vmatmul.mubr.bf16.gmra.mrb[8].mxu0 %v3359_v13  ;;  %v563_v50 = vor.u32 %v562_v42, %v559_v37  ;;  %v3219_v53 = vrot.slane %v688_v38, 9  ;;  %v4450_v56 = vrot.slane %v918_v44, 5  ;;  %v4452_v57 = vrot.slane %v929_v47, 4  ;;  %v447_v13 = vld [vmem:[%s4273_s28 + $0x54] sm:$0x1] }
  0x57   : > { %2596 = vmatmul.mubr.bf16.gmra.mrb[8].mxu1 %v3375_v21  ;;  %v550_v55 = vrot.slane %v549_v46, 4  ;;  %v759_v58 = vrot.slane %v445_v24, 5  ;;  %v3220_v60 = vrot.slane %v689_v45, 9  ;;  %v763_v61 = vrot.slane %v446_v25, 5  ;;  %v3237_v24 = vld [vmem:[%s4273_s28 + $0x58] sm:$0xf] }
  0x58   : > { %2603 = vmatprep.mubr.bf16.mxu1 %v3384_v49  ;;  %v564_v59 = vrot.slane %v563_v50, 4  ;;  %v4459_v0 = vrot.slane %v932_v48, 5  ;;  %v3360_v4 = vcombine.low %v4428_v22, %v4431_v23  ;;  %v4478_v8 = vrot.slane %v907_v39, 4  ;;  %v3977_v49 = vld [vmem:[%s5373_s1 + $0x160] sm:$0xff]  }
  0x59   : > { %v555_v63 = vsel %vm4299_vm5, %v550_v55, %v554_v40  ;;  %v760_v1 = vsel %vm4293_vm4, %v3219_v53, %v759_v58  ;;  %v764_v5 = vsel %vm4293_vm4, %v3220_v60, %v763_v61  ;;  %v921_v18 = vor.u32 %v4450_v56, %v4445_v52  ;;  %v691_v40 = vld [vmem:[%s4273_s28 + $0x58] sm:$0xe]  ;;  %v3978_v50 = vld [vmem:[%s5373_s1 + $0x1e0] sm:$0xff]   ;;  %3692 = vmatprep.subr.bf16.mxu0 %v3977_v49 }
  0x5a   : > { %v569_v3 = vsel %vm4299_vm5, %v564_v59, %v568_v51  ;;  %v3376_v10 = vcombine.low %v760_v1, %v764_v5  ;;  %v571_v20 = vshrl.u32 %v4476_v7, 16  ;;  %v574_v21 = vshll.u32 %v4476_v7, 16  ;;  %3756 = vmatprep.subr.bf16.mxu1 %v3978_v50  ;;  %v3980_v1 = vld [vmem:[%s5373_s1 + $0x1a0] sm:$0xff]   ;;  %3693 = vmatpush3.bf16.msra.mxu0 %v3979_v62  ;;  %v3986_v62 = vld [vmem:[%s5373_s1 + $0x1a8] sm:$0xff]  }
  0x5b   : > { %v3368_v9 = vcombine.low %v555_v63, %v569_v3  ;;  %v580_v22 = vshll.u32 %v447_v13, 16  ;;  %v585_v23 = vshrl.u32 %v4481_v12, 16  ;;  %v588_v25 = vshll.u32 %v4481_v12, 16  ;;  %v4526_v2 = vld [vmem:[%s4273_s28 + $0x60] sm:$0xf]  ;;  %3757 = vmatpush3.bf16.msra.mxu1 %v3980_v1 }
  0x5c   : > { %v594_v26 = vshll.u32 %v448_v14, 16  ;;  %v943_v28 = vshrl.u32 %v3237_v24, 16  ;;  %v946_v29 = vshll.u32 %v3237_v24, 16  ;;  %v573_v30 = vrot.slane %v571_v20, 4  ;;  %v4529_v3 = vld [vmem:[%s4273_s28 + $0x68] sm:$0xf] }
  0x5d   : > { %2506 = vmatprep.mubr.bf16.mxu0 %v3368_v9  ;;  %v576_v32 = vrot.slane %v574_v21, 5  ;;  %v582_v33 = vrot.slane %v580_v22, 5  ;;  %v587_v34 = vrot.slane %v585_v23, 4  ;;  %v590_v36 = vrot.slane %v588_v25, 5  ;;  %v449_v9 = vld [vmem:[%s4273_s28 + $0x64] sm:$0x1] }
  0x5e   : > { %2507 = vmatmul.mubr.bf16.gmra.mrb[12].mxu0 %v3360_v4  ;;  %v596_v37 = vrot.slane %v594_v26, 5  ;;  %v945_v38 = vrot.slane %v943_v28, 4  ;;  %v948_v39 = vrot.slane %v946_v29, 5  ;;  %v957_v43 = vshrl.u32 %v3238_v27, 16  ;;  %v3239_v22 = vld [vmem:[%s4273_s28 + $0x68] sm:$0xf] }
  0x5f   : > { %2604 = vmatmul.mubr.bf16.gmra.mrb[12].mxu1 %v3376_v10  ;;  %v577_v42 = vor.u32 %v576_v32, %v573_v30  ;;  %v960_v44 = vshll.u32 %v3238_v27, 16  ;;  %v3385_v45 = vcombine.low %v3237_v24, %v3238_v27  ;;  %v591_v46 = vor.u32 %v590_v36, %v587_v34  ;;  %v450_v10 = vld [vmem:[%s4273_s28 + $0x6c] sm:$0x1]  ;;  %v3240_v25 = vld [vmem:[%s4273_s28 + $0x70] sm:$0xf] }
  0x60   : > { %v3221_v47 = vrot.slane %v690_v35, 9  ;;  %v767_v48 = vrot.slane %v447_v13, 5  ;;  %v935_v51 = vor.u32 %v4459_v0, %v4452_v57  ;;  %v4503_v53 = vrot.slane %v957_v43, 4  ;;  %v692_v32 = vld [vmem:[%s4273_s28 + $0x60] sm:$0xe] }
  0x61   : > { %v578_v52 = vrot.slane %v577_v42, 4  ;;  %2611 = vmatprep.mubr.bf16.mxu1 %v3385_v45  ;;  %v3222_v54 = vrot.slane %v691_v40, 9  ;;  %v4505_v55 = vrot.slane %v921_v18, 4  ;;  %v592_v56 = vrot.slane %v591_v46, 4 }
  0x62   : > { %v768_v58 = vsel %vm4293_vm4, %v3221_v47, %v767_v48  ;;  %v771_v59 = vrot.slane %v448_v14, 5  ;;  %v4511_v60 = vrot.slane %v960_v44, 5  ;;  %v3361_v61 = vcombine.low %v4476_v7, %v4481_v12  ;;  %v3984_v44 = vld [vmem:[%s5373_s1 + $0x1e8] sm:$0xff]  }
  0x63   : > { %v583_v57 = vsel %vm4299_vm5, %v578_v52, %v582_v33  ;;  %v597_v63 = vsel %vm4299_vm5, %v592_v56, %v596_v37  ;;  %v4531_v4 = vrot.slane %v935_v51, 4  ;;  %v949_v5 = vor.u32 %v948_v39, %v945_v38  ;;  %v693_v38 = vld [vmem:[%s4273_s28 + $0x68] sm:$0xe]  ;;  %3758 = vmatprep.subr.bf16.mxu1 %v3984_v44 }
  0x64   : > { %v772_v0 = vsel %vm4293_vm4, %v3222_v54, %v771_v59  ;;  %v3369_v6 = vcombine.low %v583_v57, %v597_v63  ;;  %v599_v12 = vshrl.u32 %v4526_v2, 16  ;;  %v602_v13 = vshll.u32 %v4526_v2, 16  ;;  %v3983_v39 = vld [vmem:[%s5373_s1 + $0x168] sm:$0xff]   ;;  %3759 = vmatpush3.bf16.msra.mxu1 %v3986_v62  ;;  %v3992_v62 = vld [vmem:[%s5373_s1 + $0x1b0] sm:$0xff]  }
  0x65   : > { %v3377_v7 = vcombine.low %v768_v58, %v772_v0  ;;  %v608_v14 = vshll.u32 %v449_v9, 16  ;;  %v613_v18 = vshrl.u32 %v4529_v3, 16  ;;  %v616_v20 = vshll.u32 %v4529_v3, 16  ;;  %3694 = vmatprep.subr.bf16.mxu0 %v3983_v39  ;;  %v3985_v59 = vld [vmem:[%s5373_s1 + $0x128] sm:$0xff]  }
  0x66   : > { %v622_v21 = vshll.u32 %v450_v10, 16  ;;  %2514 = vmatprep.mubr.bf16.mxu0 %v3369_v6  ;;  %v601_v23 = vrot.slane %v599_v12, 4  ;;  %v604_v24 = vrot.slane %v602_v13, 5  ;;  %v971_v26 = vshrl.u32 %v3239_v22, 16  ;;  %3695 = vmatpush3.bf16.msra.mxu0 %v3985_v59  ;;  %v4583_v6 = vld [vmem:[%s4273_s28 + $0x78] sm:$0xf] }
  0x67   : > { %2612 = vmatmul.mubr.bf16.gmra.mrb[16].mxu1 %v3377_v7  ;;  %v974_v27 = vshll.u32 %v3239_v22, 16  ;;  %2515 = vmatmul.mubr.bf16.gmra.mrb[16].mxu0 %v3361_v61  ;;  %v610_v28 = vrot.slane %v608_v14, 5  ;;  %v615_v29 = vrot.slane %v613_v18, 4  ;;  %v618_v30 = vrot.slane %v616_v20, 5  ;;  %v451_v7 = vld [vmem:[%s4273_s28 + $0x74] sm:$0x1] }
  0x68   : > { %v4542_v33 = vrot.slane %v949_v5, 4  ;;  %v605_v34 = vor.u32 %v604_v24, %v601_v23  ;;  %v624_v35 = vrot.slane %v622_v21, 5  ;;  %v4544_v36 = vrot.slane %v971_v26, 4  ;;  %v4580_v5 = vld [vmem:[%s4273_s28 + $0x70] sm:$0xf] }
  0x69   : > { %v985_v37 = vshrl.u32 %v3240_v25, 16  ;;  %v619_v40 = vor.u32 %v618_v30, %v615_v29  ;;  %v988_v42 = vshll.u32 %v3240_v25, 16  ;;  %v3386_v43 = vcombine.low %v3239_v22, %v3240_v25  ;;  %v3241_v18 = vld [vmem:[%s4273_s28 + $0x78] sm:$0xf]  ;;  %v3242_v20 = vld [vmem:[%s4273_s28 + $0x80] sm:$0xf] }
  0x6a   : > { %v963_v45 = vor.u32 %v4511_v60, %v4503_v53  ;;  %v606_v46 = vrot.slane %v605_v34, 4  ;;  %v4555_v47 = vrot.slane %v974_v27, 5  ;;  %v3223_v48 = vrot.slane %v692_v32, 9  ;;  %v694_v24 = vld [vmem:[%s4273_s28 + $0x70] sm:$0xe] }
  0x6b   : > { %v775_v49 = vrot.slane %v449_v9, 5  ;;  %v620_v50 = vrot.slane %v619_v40, 4  ;;  %v4557_v51 = vrot.slane %v985_v37, 4  ;;  %2619 = vmatprep.mubr.bf16.mxu1 %v3386_v43  ;;  %v3224_v52 = vrot.slane %v693_v38, 9  ;;  %v695_v30 = vld [vmem:[%s4273_s28 + $0x78] sm:$0xe] }
  0x6c   : > { %v779_v54 = vrot.slane %v450_v10, 5  ;;  %v611_v56 = vsel %vm4299_vm5, %v606_v46, %v610_v28  ;;  %v4561_v53 = vrot.slane %v988_v42, 5  ;;  %v3362_v60 = vcombine.low %v4526_v2, %v4529_v3  ;;  %v452_v2 = vld [vmem:[%s4273_s28 + $0x7c] sm:$0x1]  ;;  %v3989_v43 = vld [vmem:[%s5373_s1 + $0x170] sm:$0xff]  }
  0x6d   : > { %v776_v58 = vsel %vm4293_vm4, %v3223_v48, %v775_v49  ;;  %v625_v57 = vsel %vm4299_vm5, %v620_v50, %v624_v35  ;;  %v4577_v63 = vrot.slane %v963_v45, 4  ;;  %v627_v3 = vshrl.u32 %v4580_v5, 16  ;;  %3696 = vmatprep.subr.bf16.mxu0 %v3989_v43  ;;  %v3990_v50 = vld [vmem:[%s5373_s1 + $0x1f0] sm:$0xff]  }
  0x6e   : > { %v780_v61 = vsel %vm4293_vm4, %v3224_v52, %v779_v54  ;;  %v3370_v0 = vcombine.low %v611_v56, %v625_v57  ;;  %v630_v9 = vshll.u32 %v4580_v5, 16  ;;  %v636_v10 = vshll.u32 %v451_v7, 16  ;;  %3760 = vmatprep.subr.bf16.mxu1 %v3990_v50 }
  0x6f   : > { %v3378_v1 = vcombine.low %v776_v58, %v780_v61  ;;  %v641_v12 = vshrl.u32 %v4583_v6, 16  ;;  %v644_v13 = vshll.u32 %v4583_v6, 16  ;;  %v650_v14 = vshll.u32 %v452_v2, 16  ;;  %v3991_v58 = vld [vmem:[%s5373_s1 + $0x130] sm:$0xff]   ;;  %3761 = vmatpush3.bf16.msra.mxu1 %v3992_v62 }
  0x70   : > { %2522 = vmatprep.mubr.bf16.mxu0 %v3370_v0  ;;  %v629_v21 = vrot.slane %v627_v3, 4  ;;  %v632_v22 = vrot.slane %v630_v9, 5  ;;  %v977_v25 = vor.u32 %v4555_v47, %v4544_v36  ;;  %v638_v26 = vrot.slane %v636_v10, 5  ;;  %v4630_v0 = vld [vmem:[%s4273_s28 + $0x80] sm:$0xf]  ;;  %3697 = vmatpush3.bf16.msra.mxu0 %v3991_v58 }
  0x71   : > { %2620 = vmatmul.mubr.bf16.gmra.mrb[20].mxu1 %v3378_v1  ;;  %2523 = vmatmul.mubr.bf16.gmra.mrb[20].mxu0 %v3362_v60  ;;  %v643_v23 = vrot.slane %v641_v12, 4  ;;  %v646_v27 = vrot.slane %v644_v13, 5  ;;  %v999_v28 = vshrl.u32 %v3241_v18, 16  ;;  %v1002_v29 = vshll.u32 %v3241_v18, 16  ;;  %v3243_v12 = vld [vmem:[%s4273_s28 + $0x88] sm:$0xf] }
  0x72   : > { %v633_v32 = vor.u32 %v632_v22, %v629_v21  ;;  %v1013_v34 = vshrl.u32 %v3242_v20, 16  ;;  %v1016_v35 = vshll.u32 %v3242_v20, 16  ;;  %v3387_v37 = vcombine.low %v3241_v18, %v3242_v20  ;;  %v3244_v18 = vld [vmem:[%s4273_s28 + $0x90] sm:$0xf] }
  0x73   : > { %v647_v38 = vor.u32 %v646_v27, %v643_v23  ;;  %v652_v39 = vrot.slane %v650_v14, 5  ;;  %v4597_v40 = vrot.slane %v999_v28, 4  ;;  %v3225_v42 = vrot.slane %v694_v24, 9 }
  0x74   : > { %v634_v44 = vrot.slane %v633_v32, 4  ;;  %v4602_v36 = vrot.slane %v1002_v29, 5  ;;  %v4604_v45 = vrot.slane %v1013_v34, 4  ;;  %2627 = vmatprep.mubr.bf16.mxu1 %v3387_v37  ;;  %v783_v46 = vrot.slane %v451_v7, 5  ;;  %v4635_v7 = vld [vmem:[%s4273_s28 + $0x88] sm:$0xf] }
  0x75   : > { %v648_v47 = vrot.slane %v647_v38, 4  ;;  %v3226_v48 = vrot.slane %v695_v30, 9  ;;  %v787_v49 = vrot.slane %v452_v2, 5  ;;  %v4611_v54 = vrot.slane %v1016_v35, 5  ;;  %v697_v32 = vld [vmem:[%s4273_s28 + $0x88] sm:$0xe] }
  0x76   : > { %v639_v52 = vsel %vm4299_vm5, %v634_v44, %v638_v26  ;;  %v784_v56 = vsel %vm4293_vm4, %v3225_v42, %v783_v46  ;;  %v991_v59 = vor.u32 %v4561_v53, %v4557_v51  ;;  %v3363_v60 = vcombine.low %v4580_v5, %v4583_v6  ;;  %v453_v5 = vld [vmem:[%s4273_s28 + $0x84] sm:$0x1]  ;;  %v454_v6 = vld [vmem:[%s4273_s28 + $0x8c] sm:$0x1]  ;;  %v696_v26 = vld [vmem:[%s4273_s28 + $0x80] sm:$0xe] }
  0x77   : > { %v653_v57 = vsel %vm4299_vm5, %v648_v47, %v652_v39  ;;  %v788_v61 = vsel %vm4293_vm4, %v3226_v48, %v787_v49  ;;  %v4632_v1 = vrot.slane %v977_v25, 4  ;;  %v655_v2 = vshrl.u32 %v4630_v0, 16  ;;  %v3995_v44 = vld [vmem:[%s5373_s1 + $0x178] sm:$0xff]  }
  0x78   : > { %v3371_v51 = vcombine.low %v639_v52, %v653_v57  ;;  %v3379_v53 = vcombine.low %v784_v56, %v788_v61  ;;  %v658_v3 = vshll.u32 %v4630_v0, 16  ;;  %v664_v9 = vshll.u32 %v453_v5, 16  ;;  %v3996_v46 = vld [vmem:[%s5373_s1 + $0x1f8] sm:$0xff]   ;;  %3698 = vmatprep.subr.bf16.mxu0 %v3995_v44 }
  0x79   : > { %v669_v10 = vshrl.u32 %v4635_v7, 16  ;;  %v672_v13 = vshll.u32 %v4635_v7, 16  ;;  %v678_v14 = vshll.u32 %v454_v6, 16  ;;  %v1027_v20 = vshrl.u32 %v3243_v12, 16  ;;  %3762 = vmatprep.subr.bf16.mxu1 %v3996_v46  ;;  %v3997_v57 = vld [vmem:[%s5373_s1 + $0x138] sm:$0xff]  }
  0x7a   : > { %2530 = vmatprep.mubr.bf16.mxu0 %v3371_v51  ;;  %2628 = vmatmul.mubr.bf16.gmra.mrb[24].mxu1 %v3379_v53  ;;  %v4645_v21 = vrot.slane %v991_v59, 4  ;;  %v657_v22 = vrot.slane %v655_v2, 4  ;;  %v660_v23 = vrot.slane %v658_v3, 5  ;;  %v1030_v25 = vshll.u32 %v3243_v12, 16  ;;  %v3998_v51 = vld [vmem:[%s5373_s1 + $0x1b8] sm:$0xff]  }
  0x7b   : > { %2531 = vmatmul.mubr.bf16.gmra.mrb[24].mxu0 %v3363_v60  ;;  %v671_v24 = vrot.slane %v669_v10, 4  ;;  %v666_v27 = vrot.slane %v664_v9, 5  ;;  %v674_v28 = vrot.slane %v672_v13, 5  ;;  %v680_v29 = vrot.slane %v678_v14, 5  ;;  %v3245_v53 = vld [vmem:[%s4273_s28 + $0xc] sm:$0x1]  ;;  %3763 = vmatpush3.bf16.msra.mxu1 %v3998_v51 }
  0x7c   : > { %v4648_v30 = vrot.slane %v1027_v20, 4  ;;  %v661_v34 = vor.u32 %v660_v23, %v657_v22  ;;  %v1041_v35 = vshrl.u32 %v3244_v18, 16  ;;  %v1044_v37 = vshll.u32 %v3244_v18, 16  ;;  %3699 = vmatpush3.bf16.msra.mxu0 %v3997_v57  ;;  %v4688_v20 = vld [vmem:[%s4273_s28 + $0x10] sm:$0xf] }
  0x7d   : > { %v3388_v38 = vcombine.low %v3243_v12, %v3244_v18  ;;  %v675_v39 = vor.u32 %v674_v28, %v671_v24  ;;  %v3227_v42 = vrot.slane %v696_v26, 9  ;;  %v791_v43 = vrot.slane %v453_v5, 5  ;;  %v3246_v5 = vld [vmem:[%s4273_s28 + $0x14] sm:$0x1]  ;;  %v4691_v24 = vld [vmem:[%s4273_s28 + $0x18] sm:$0xf] }
  0x7e   : > { %v1005_v47 = vor.u32 %v4602_v36, %v4597_v40  ;;  %v662_v48 = vrot.slane %v661_v34, 4  ;;  %v4659_v49 = vrot.slane %v1030_v25, 5  ;;  %v4661_v50 = vrot.slane %v1041_v35, 4  ;;  %v4694_v25 = vld [vmem:[%s4273_s28 + $0x14] sm:$0x1] }
  0x7f   : > { %2635 = vmatprep.mubr.bf16.mxu1 %v3388_v38  ;;  %v3228_v52 = vrot.slane %v697_v32, 9  ;;  %v676_v56 = vrot.slane %v675_v39, 4  ;;  %v792_v58 = vsel %vm4293_vm4, %v3227_v42, %v791_v43  ;;  %v795_v59 = vrot.slane %v454_v6, 5  ;;  %v4705_v32 = vld [vmem:[%s4273_s28 + $0x1c] sm:$0x1]  ;;  %v4715_v39 = vld [vmem:[%s5373_s1 + $0x200] sm:$0xff]  }
  0x80   : > { %v667_v40 = vsel %vm4299_vm5, %v662_v48, %v666_v27  ;;  %v4667_v36 = vrot.slane %v1044_v37, 5  ;;  %v3364_v61 = vcombine.low %v4630_v0, %v4635_v7  ;;  %v4683_v6 = vrot.slane %v1005_v47, 4  ;;  %v3261_v0 = vld [vmem:[%s4273_s28 + $0x8] sm:$0xe]  ;;  %v3262_v7 = vld [vmem:[%s4273_s28 + $0x10] sm:$0xe]  ;;  %3828 = vmatprep.subr.bf16.mxu0 %v4715_v39  ;;  %3860 = vmatprep.subr.bf16.mxu1 %v4715_v39 }
  0x81   : > { %v681_v60 = vsel %vm4299_vm5, %v676_v56, %v680_v29  ;;  %v796_v62 = vsel %vm4293_vm4, %v3228_v52, %v795_v59  ;;  %v840_v9 = vshll.u32 %v3245_v53, 16  ;;  %v854_v10 = vshll.u32 %v3246_v5, 16  ;;  %v4722_v47 = vld [vmem:[%s4273_s28 + $0x1c] sm:$0x1] }
  0x82   : > { %v3372_v2 = vcombine.low %v667_v40, %v681_v60  ;;  %v3380_v3 = vcombine.low %v792_v58, %v796_v62  ;;  %v3277_v12 = vrot.slane %v3261_v0, 9  ;;  %v1104_v13 = vrot.slane %v3245_v53, 5  ;;  %v4729_v58 = vld [vmem:[%s4273_s28 + $0x24] sm:$0x1]  ;;  %v3264_v62 = vld [vmem:[%s4273_s28 + $0x20] sm:$0xe] }
  0x83   : > { %v3278_v14 = vrot.slane %v3262_v7, 9  ;;  %v1108_v18 = vrot.slane %v3246_v5, 5  ;;  %v842_v22 = vrot.slane %v840_v9, 5  ;;  %v856_v23 = vrot.slane %v854_v10, 5  ;;  %v4749_v7 = vld [vmem:[%s4273_s28 + $0x28] sm:$0xf] }
  0x84   : > { %2538 = vmatprep.mubr.bf16.mxu0 %v3372_v2  ;;  %2636 = vmatmul.mubr.bf16.gmra.mrb[28].mxu1 %v3380_v3  ;;  %v1019_v26 = vor.u32 %v4611_v54, %v4604_v45  ;;  %v1033_v27 = vor.u32 %v4659_v49, %v4648_v30  ;;  %v1105_v28 = vsel %vm4293_vm4, %v3277_v12, %v1104_v13  ;;  %v1200_v34 = vshrl.u32 %v4688_v20, 16  ;;  %v4738_v2 = vld [vmem:[%s4273_s28 + $0x20] sm:$0xf]  ;;  %v4743_v3 = vld [vmem:[%s5373_s1 + $0x208] sm:$0xff]   ;;  %v4752_v12 = vld [vmem:[%s4273_s28 + $0x24] sm:$0x1] }
  0x85   : > { %2539 = vmatmul.mubr.bf16.gmra.mrb[28].mxu0 %v3364_v61  ;;  %v1109_v29 = vsel %vm4293_vm4, %v3278_v14, %v1108_v18  ;;  %v1203_v35 = vshll.u32 %v4688_v20, 16  ;;  %v1209_v45 = vshll.u32 %v4694_v25, 16  ;;  %v1214_v54 = vshrl.u32 %v4691_v24, 16  ;;  %v3263_v61 = vld [vmem:[%s4273_s28 + $0x18] sm:$0xe] }
  0x86   : > { %v3397_v37 = vcombine.low %v1105_v28, %v1109_v29  ;;  %v1217_v38 = vshll.u32 %v4691_v24, 16  ;;  %v1202_v42 = vrot.slane %v1200_v34, 4  ;;  %v1223_v44 = vshll.u32 %v4705_v32, 16 }
  0x87   : > { %v1205_v43 = vrot.slane %v1203_v35, 5  ;;  %v843_v46 = vsel %vm4299_vm5, %v4335_v41, %v842_v22  ;;  %v1216_v48 = vrot.slane %v1214_v54, 4  ;;  %v857_v56 = vsel %vm4299_vm5, %v4356_v15, %v856_v23  ;;  %v4759_v22 = vld [vmem:[%s4273_s28 + $0x2c] sm:$0x1] }
  0x88   : > { %2676 = vmatprep.mubr.bf16.mxu0 %v3397_v37  ;;  %v1219_v52 = vrot.slane %v1217_v38, 5  ;;  %v4731_v59 = vrot.slane %v1019_v26, 4  ;;  %v1211_v57 = vrot.slane %v1209_v45, 5  ;;  %v1225_v41 = vrot.slane %v1223_v44, 5  ;;  %v4773_v54 = vld [vmem:[%s4273_s28 + $0x2c] sm:$0x1] }
  0x89   : > { %v1206_v40 = vor.u32 %v1205_v43, %v1202_v42  ;;  %v3389_v60 = vcombine.low %v843_v46, %v857_v56  ;;  %v3279_v53 = vrot.slane %v3263_v61, 9  ;;  %v1112_v15 = vrot.slane %v4722_v47, 5  ;;  %v4778_v46 = vld [vmem:[%s4273_s28 + $0x34] sm:$0x1] }
  0x8a   : > { %v1220_v51 = vor.u32 %v1219_v52, %v1216_v48  ;;  %v3280_v5 = vrot.slane %v3264_v62, 9  ;;  %v3405_v10 = vcombine.low %v4688_v20, %v4691_v24  ;;  %v1116_v0 = vrot.slane %v4729_v58, 5  ;;  %v3265_v48 = vld [vmem:[%s4273_s28 + $0x28] sm:$0xe]  ;;  %v4784_v52 = vld [vmem:[%s5373_s1 + $0x210] sm:$0xff]  }
  0x8b   : > { %v1207_v9 = vrot.slane %v1206_v40, 4  ;;  %v1047_v13 = vor.u32 %v4667_v36, %v4661_v50  ;;  %v1113_v18 = vsel %vm4293_vm4, %v3279_v53, %v1112_v15  ;;  %v1228_v23 = vshrl.u32 %v4738_v2, 16  ;;  %v4795_v15 = vld [vmem:[%s4273_s28 + $0x30] sm:$0xf] }
  0x8c   : > { %v1221_v14 = vrot.slane %v1220_v51, 4  ;;  %v1231_v20 = vshll.u32 %v4738_v2, 16  ;;  %v1117_v26 = vsel %vm4293_vm4, %v3280_v5, %v1116_v0  ;;  %v1237_v28 = vshll.u32 %v4752_v12, 16 }
  0x8d   : > { %v1212_v24 = vsel %vm4299_vm5, %v1207_v9, %v1211_v57  ;;  %2677 = vmatmul.mubr.bf16.vlgmr.msra.gmra.mrb[32].mxu0 %v3389_v60  ;;  %v1242_v29 = vshrl.u32 %v4749_v7, 16  ;;  %v3398_v35 = vcombine.low %v1113_v18, %v1117_v26  ;;  %v1230_v37 = vrot.slane %v1228_v23, 4  ;;  %v3266_v60 = vld [vmem:[%s4273_s28 + $0x30] sm:$0xe] }
  0x8e   : > { %v1226_v34 = vsel %vm4299_vm5, %v1221_v14, %v1225_v41  ;;  %3829 = vmatpush3.bf16.msra.mxu0 %v4715_v39  ;;  %v1233_v45 = vrot.slane %v1231_v20, 5  ;;  %v1239_v42 = vrot.slane %v1237_v28, 5  ;;  %v1245_v44 = vshll.u32 %v4749_v7, 16  ;;  %v4801_v20 = vld [vmem:[%s4273_s28 + $0x34] sm:$0x1] }
  0x8f   : > { %v3413_v38 = vcombine.low %v1212_v24, %v1226_v34  ;;  %v1244_v43 = vrot.slane %v1242_v29, 4  ;;  %3830 = vmatprep.subr.bf16.mxu0 %v4743_v3  ;;  %2684 = vmatprep.mubr.bf16.mxu0 %v3398_v35  ;;  %v1251_v40 = vshll.u32 %v4759_v22, 16  ;;  %v1481_v57 = vrot.slane %v4752_v12, 5  ;;  %v4816_v28 = vld [vmem:[%s4273_s28 + $0x38] sm:$0xf] }
  0x90   : > { %v1234_v56 = vor.u32 %v1233_v45, %v1230_v37  ;;  %v1485_v41 = vrot.slane %v4759_v22, 5  ;;  %v1247_v61 = vrot.slane %v1245_v44, 5  ;;  %v868_v62 = vshll.u32 %v4722_v47, 16  ;;  %v4826_v45 = vld [vmem:[%s4273_s28 + $0x3c] sm:$0x1] }
  0x91   : > { %2773 = vmatprep.mubr.bf16.mxu1 %v3413_v38  ;;  %v882_v51 = vshll.u32 %v4729_v58, 16  ;;  %v3406_v53 = vcombine.low %v4738_v2, %v4749_v7  ;;  %v1253_v9 = vrot.slane %v1251_v40, 5  ;;  %v3281_v0 = vrot.slane %v3265_v48, 9 }
  0x92   : > { %2774 = vmatmul.mubr.bf16.vlgmr.msra.gmra.mrb[32].mxu1 %v3405_v10  ;;  %v1235_v5 = vrot.slane %v1234_v56, 4  ;;  %3831 = vmatpush3.bf16.msra.mxu0 %v4743_v3  ;;  %v1120_v14 = vrot.slane %v4773_v54, 5  ;;  %v1248_v18 = vor.u32 %v1247_v61, %v1244_v43  ;;  %v870_v47 = vrot.slane %v868_v62, 5  ;;  %v4807_v10 = vld [vmem:[%s5373_s1 + $0x218] sm:$0xff]   ;;  %v4846_v62 = vld [vmem:[%s4273_s28 + $0x44] sm:$0x1] }
  0x93   : > { %3868 = vmatpush3.bf16.msra.mxu1 %v4715_v39  ;;  %v884_v58 = vrot.slane %v882_v51, 5  ;;  %v3282_v23 = vrot.slane %v3266_v60, 9  ;;  %3832 = vmatprep.subr.bf16.mxu0 %v4784_v52  ;;  %v1124_v26 = vrot.slane %v4778_v46, 5  ;;  %v1256_v29 = vshrl.u32 %v4795_v15, 16  ;;  %v3267_v51 = vld [vmem:[%s4273_s28 + $0x38] sm:$0xe] }
  0x94   : > { %v1240_v24 = vsel %vm4299_vm5, %v1235_v5, %v1239_v42  ;;  %3861 = vmatprep.subr.bf16.mxu1 %v4743_v3  ;;  %v1121_v39 = vsel %vm4293_vm4, %v3281_v0, %v1120_v14  ;;  %v1249_v34 = vrot.slane %v1248_v18, 4  ;;  %v871_v35 = vsel %vm4299_vm5, %v4383_v31, %v870_v47  ;;  %v4834_v31 = vld [vmem:[%s4273_s28 + $0x3c] sm:$0x1] }
  0x95   : > { %v885_v37 = vsel %vm4299_vm5, %v4414_v11, %v884_v58  ;;  %v1259_v38 = vshll.u32 %v4795_v15, 16  ;;  %v1125_v43 = vsel %vm4293_vm4, %v3282_v23, %v1124_v26  ;;  %v1258_v44 = vrot.slane %v1256_v29, 4  ;;  %v4839_v11 = vld [vmem:[%s5373_s1 + $0x220] sm:$0xff]  }
  0x96   : > { %v3390_v42 = vcombine.low %v871_v35, %v885_v37  ;;  %v1265_v48 = vshll.u32 %v4801_v20, 16  ;;  %3833 = vmatpush3.bf16.msra.mxu0 %v4784_v52  ;;  %v1254_v56 = vsel %vm4299_vm5, %v1249_v34, %v1253_v9  ;;  %v3399_v40 = vcombine.low %v1121_v39, %v1125_v43  ;;  %v4857_v39 = vld [vmem:[%s4273_s28 + $0x40] sm:$0xf]  ;;  %v4862_v35 = vld [vmem:[%s4273_s28 + $0x48] sm:$0xf] }
  0x97   : > { %3869 = vmatpush3.bf16.msra.mxu1 %v4743_v3  ;;  %v1261_v60 = vrot.slane %v1259_v38, 5  ;;  %v1270_v61 = vshrl.u32 %v4816_v28, 16  ;;  %3834 = vmatprep.subr.bf16.mxu0 %v4807_v10  ;;  %v3414_v5 = vcombine.low %v1240_v24, %v1254_v56  ;;  %v1273_v14 = vshll.u32 %v4816_v28, 16  ;;  %v3268_v3 = vld [vmem:[%s4273_s28 + $0x40] sm:$0xe] }
  0x98   : > { %2685 = vmatmul.mubr.bf16.gmra.mrb[36].mxu0 %v3390_v42  ;;  %v1267_v0 = vrot.slane %v1265_v48, 5  ;;  %v1279_v9 = vshll.u32 %v4826_v45, 16  ;;  %3862 = vmatprep.subr.bf16.mxu1 %v4784_v52  ;;  %v896_v58 = vshll.u32 %v4773_v54, 16  ;;  %v910_v23 = vshll.u32 %v4778_v46, 16  ;;  %v4865_v37 = vld [vmem:[%s4273_s28 + $0x44] sm:$0x1] }
  0x99   : > { %2692 = vmatprep.mubr.bf16.mxu0 %v3399_v40  ;;  %v1262_v18 = vor.u32 %v1261_v60, %v1258_v44  ;;  %v1272_v47 = vrot.slane %v1270_v61, 4  ;;  %2781 = vmatprep.mubr.bf16.mxu1 %v3414_v5  ;;  %v1275_v24 = vrot.slane %v1273_v14, 5  ;;  %v3407_v29 = vcombine.low %v4795_v15, %v4816_v28  ;;  %v4871_v54 = vld [vmem:[%s5373_s1 + $0x228] sm:$0xff]   ;;  %v4898_v14 = vld [vmem:[%s4273_s28 + $0x5c] sm:$0x1] }
  0x9a   : > { %v1281_v26 = vrot.slane %v1279_v9, 5  ;;  %v3283_v34 = vrot.slane %v3267_v51, 9  ;;  %3835 = vmatpush3.bf16.msra.mxu0 %v4807_v10  ;;  %2782 = vmatmul.mubr.bf16.gmra.mrb[36].mxu1 %v3406_v53  ;;  %v898_v38 = vrot.slane %v896_v58, 5  ;;  %v912_v42 = vrot.slane %v910_v23, 5  ;;  %v4892_v60 = vld [vmem:[%s4273_s28 + $0x4c] sm:$0x1] }
  0x9b   : > { %v1263_v46 = vrot.slane %v1262_v18, 4  ;;  %v1128_v43 = vrot.slane %v4834_v31, 5  ;;  %3836 = vmatprep.subr.bf16.mxu0 %v4839_v11  ;;  %v1276_v44 = vor.u32 %v1275_v24, %v1272_v47  ;;  %3870 = vmatpush3.bf16.msra.mxu1 %v4784_v52  ;;  %v3284_v48 = vrot.slane %v3268_v3, 9  ;;  %v3269_v18 = vld [vmem:[%s4273_s28 + $0x58] sm:$0xe]  ;;  %v4909_v47 = vld [vmem:[%s5373_s1 + $0x230] sm:$0xff]  }
  0x9c   : > { %v1132_v56 = vrot.slane %v4846_v62, 5  ;;  %v1284_v40 = vshrl.u32 %v4857_v39, 16  ;;  %v899_v7 = vsel %vm4299_vm5, %v4425_v19, %v898_v38  ;;  %v913_v53 = vsel %vm4299_vm5, %v4478_v8, %v912_v42  ;;  %3863 = vmatprep.subr.bf16.mxu1 %v4807_v10  ;;  %v3270_v38 = vld [vmem:[%s4273_s28 + $0x60] sm:$0xe]  ;;  %v4957_v28 = vld [vmem:[%s4273_s28 + $0x6c] sm:$0x1] }
  0x9d   : > { %v1268_v2 = vsel %vm4299_vm5, %v1263_v46, %v1267_v0  ;;  %v1129_v52 = vsel %vm4293_vm4, %v3283_v34, %v1128_v43  ;;  %v1277_v61 = vrot.slane %v1276_v44, 4  ;;  %v3391_v51 = vcombine.low %v899_v7, %v913_v53  ;;  %v4918_v46 = vld [vmem:[%s4273_s28 + $0x64] sm:$0x1] }
  0x9e   : > { %v1133_v5 = vsel %vm4293_vm4, %v3284_v48, %v1132_v56  ;;  %v1286_v0 = vrot.slane %v1284_v40, 4  ;;  %3837 = vmatpush3.bf16.msra.mxu0 %v4839_v11  ;;  %v1287_v8 = vshll.u32 %v4857_v39, 16  ;;  %v1293_v9 = vshll.u32 %v4865_v37, 16  ;;  %v4922_v56 = vld [vmem:[%s4273_s28 + $0x60] sm:$0xf] }
  0x9f   : > { %v3400_v19 = vcombine.low %v1129_v52, %v1133_v5  ;;  %v1298_v3 = vshrl.u32 %v4862_v35, 16  ;;  %3838 = vmatprep.subr.bf16.mxu0 %v4871_v54  ;;  %v1282_v58 = vsel %vm4299_vm5, %v1277_v61, %v1281_v26  ;;  %v1301_v23 = vshll.u32 %v4862_v35, 16  ;;  %3871 = vmatpush3.bf16.msra.mxu1 %v4807_v10  ;;  %v4928_v26 = vld [vmem:[%s5373_s1 + $0x238] sm:$0xff]  }
  0xa0   : > { %2693 = vmatmul.mubr.bf16.gmra.mrb[40].mxu0 %v3391_v51  ;;  %v1307_v24 = vshll.u32 %v4892_v60, 16  ;;  %v924_v34 = vshll.u32 %v4834_v31, 16  ;;  %v3415_v42 = vcombine.low %v1268_v2, %v1282_v58  ;;  %v1289_v43 = vrot.slane %v1287_v8, 5  ;;  %3864 = vmatprep.subr.bf16.mxu1 %v4839_v11  ;;  %v4936_v51 = vld [vmem:[%s4273_s28 + $0x64] sm:$0x1] }
  0xa1   : > { %2700 = vmatprep.mubr.bf16.mxu0 %v3400_v19  ;;  %v1295_v44 = vrot.slane %v1293_v9, 5  ;;  %v1300_v48 = vrot.slane %v1298_v3, 4  ;;  %v1303_v31 = vrot.slane %v1301_v23, 5  ;;  %v938_v7 = vshll.u32 %v4846_v62, 16  ;;  %v4949_v9 = vld [vmem:[%s4273_s28 + $0x68] sm:$0xf] }
  0xa2   : > { %v1309_v10 = vrot.slane %v1307_v24, 5  ;;  %v926_v40 = vrot.slane %v924_v34, 5  ;;  %3839 = vmatpush3.bf16.msra.mxu0 %v4871_v54  ;;  %2789 = vmatprep.mubr.bf16.mxu1 %v3415_v42  ;;  %v1290_v2 = vor.u32 %v1289_v43, %v1286_v0  ;;  %v3408_v53 = vcombine.low %v4857_v39, %v4862_v35  ;;  %v4968_v24 = vld [vmem:[%s4273_s28 + $0x6c] sm:$0x1] }
  0xa3   : > { %v3285_v52 = vrot.slane %v3269_v18, 9  ;;  %v1136_v61 = vrot.slane %v4898_v14, 5  ;;  %3840 = vmatprep.subr.bf16.mxu0 %v4909_v47  ;;  %2790 = vmatmul.mubr.bf16.gmra.mrb[40].mxu1 %v3407_v29  ;;  %v1304_v62 = vor.u32 %v1303_v31, %v1300_v48  ;;  %v940_v0 = vrot.slane %v938_v7, 5  ;;  %v4974_v48 = vld [vmem:[%s4273_s28 + $0x74] sm:$0x1] }
  0xa4   : > { %v927_v5 = vsel %vm4299_vm5, %v4505_v55, %v926_v40  ;;  %v3286_v19 = vrot.slane %v3270_v38, 9  ;;  %v1291_v39 = vrot.slane %v1290_v2, 4  ;;  %v1140_v8 = vrot.slane %v4918_v46, 5  ;;  %3872 = vmatpush3.bf16.msra.mxu1 %v4839_v11 }
  0xa5   : > { %v1137_v35 = vsel %vm4293_vm4, %v3285_v52, %v1136_v61  ;;  %v1312_v3 = vshrl.u32 %v4922_v56, 16  ;;  %v1305_v15 = vrot.slane %v1304_v62, 4  ;;  %v941_v55 = vsel %vm4299_vm5, %v4531_v4, %v940_v0  ;;  %3865 = vmatprep.subr.bf16.mxu1 %v4871_v54  ;;  %v4987_v0 = vld [vmem:[%s4273_s28 + $0x70] sm:$0xf] }
  0xa6   : > { %v1315_v29 = vshll.u32 %v4922_v56, 16  ;;  %v1321_v18 = vshll.u32 %v4936_v51, 16  ;;  %3841 = vmatpush3.bf16.msra.mxu0 %v4909_v47  ;;  %v1296_v11 = vsel %vm4299_vm5, %v1291_v39, %v1295_v44  ;;  %v3392_v58 = vcombine.low %v927_v5, %v941_v55  ;;  %v3271_v44 = vld [vmem:[%s4273_s28 + $0x68] sm:$0xe]  ;;  %v3272_v5 = vld [vmem:[%s4273_s28 + $0x70] sm:$0xe] }
  0xa7   : > { %v1141_v23 = vsel %vm4293_vm4, %v3286_v19, %v1140_v8  ;;  %v1314_v4 = vrot.slane %v1312_v3, 4  ;;  %3842 = vmatprep.subr.bf16.mxu0 %v4928_v26  ;;  %v1310_v34 = vsel %vm4299_vm5, %v1305_v15, %v1309_v10  ;;  %v1326_v40 = vshrl.u32 %v4949_v9, 16 }
  0xa8   : > { %v3401_v38 = vcombine.low %v1137_v35, %v1141_v23  ;;  %v1317_v42 = vrot.slane %v1315_v29, 5  ;;  %v1323_v43 = vrot.slane %v1321_v18, 5  ;;  %v3416_v31 = vcombine.low %v1296_v11, %v1310_v34  ;;  %2701 = vmatmul.mubr.bf16.gmra.mrb[44].mxu0 %v3392_v58  ;;  %3873 = vmatpush3.bf16.msra.mxu1 %v4871_v54  ;;  %v4997_v29 = vld [vmem:[%s4273_s28 + $0x74] sm:$0x1] }
  0xa9   : > { %v1329_v7 = vshll.u32 %v4949_v9, 16  ;;  %v1335_v2 = vshll.u32 %v4957_v28, 16  ;;  %v952_v52 = vshll.u32 %v4898_v14, 16  ;;  %v966_v61 = vshll.u32 %v4918_v46, 16  ;;  %3866 = vmatprep.subr.bf16.mxu1 %v4909_v47 }
  0xaa   : > { %2708 = vmatprep.mubr.bf16.mxu0 %v3401_v38  ;;  %v1318_v10 = vor.u32 %v1317_v42, %v1314_v4  ;;  %v3409_v62 = vcombine.low %v4922_v56, %v4949_v9  ;;  %2797 = vmatprep.mubr.bf16.mxu1 %v3416_v31  ;;  %v1328_v19 = vrot.slane %v1326_v40, 4  ;;  %v3287_v35 = vrot.slane %v3271_v44, 9  ;;  %v4993_v9 = vld [vmem:[%s4273_s28 + $0x78] sm:$0xf]  ;;  %v5012_v4 = vld [vmem:[%s4273_s28 + $0x7c] sm:$0x1] }
  0xab   : > { %v1331_v39 = vrot.slane %v1329_v7, 5  ;;  %v1337_v54 = vrot.slane %v1335_v2, 5  ;;  %3843 = vmatpush3.bf16.msra.mxu0 %v4928_v26  ;;  %2798 = vmatmul.mubr.bf16.gmra.mrb[44].mxu1 %v3408_v53  ;;  %v954_v46 = vrot.slane %v952_v52, 5  ;;  %v968_v8 = vrot.slane %v966_v61, 5  ;;  %v5021_v31 = vld [vmem:[%s4273_s28 + $0x7c] sm:$0x1] }
  0xac   : > { %v1319_v14 = vrot.slane %v1318_v10, 4  ;;  %v1144_v56 = vrot.slane %v4968_v24, 5  ;;  %v3288_v15 = vrot.slane %v3272_v5, 9  ;;  %v1148_v55 = vrot.slane %v4974_v48, 5  ;;  %3874 = vmatpush3.bf16.msra.mxu1 %v4909_v47  ;;  %v5029_v52 = vld [vmem:[%s4273_s28 + $0x84] sm:$0x1] }
  0xad   : > { %v1332_v3 = vor.u32 %v1331_v39, %v1328_v19  ;;  %v1340_v18 = vshrl.u32 %v4987_v0, 16  ;;  %v955_v11 = vsel %vm4299_vm5, %v4542_v33, %v954_v46  ;;  %v969_v58 = vsel %vm4299_vm5, %v4577_v63, %v968_v8  ;;  %3867 = vmatprep.subr.bf16.mxu1 %v4928_v26  ;;  %v3273_v61 = vld [vmem:[%s4273_s28 + $0x78] sm:$0xe] }
  0xae   : > { %v1324_v53 = vsel %vm4299_vm5, %v1319_v14, %v1323_v43  ;;  %v1145_v23 = vsel %vm4293_vm4, %v3287_v35, %v1144_v56  ;;  %v3393_v34 = vcombine.low %v955_v11, %v969_v58  ;;  %v1149_v38 = vsel %vm4293_vm4, %v3288_v15, %v1148_v55  ;;  %v3274_v14 = vld [vmem:[%s4273_s28 + $0x80] sm:$0xe] }
  0xaf   : > { %v1333_v47 = vrot.slane %v1332_v3, 4  ;;  %v1342_v42 = vrot.slane %v1340_v18, 4  ;;  %v3402_v33 = vcombine.low %v1145_v23, %v1149_v38  ;;  %v1343_v43 = vshll.u32 %v4987_v0, 16  ;;  %v5037_v3 = vld [vmem:[%s4273_s28 + $0x80] sm:$0xf] }
  0xb0   : > { %v1349_v63 = vshll.u32 %v4997_v29, 16  ;;  %v1354_v44 = vshrl.u32 %v4993_v9, 16  ;;  %2709 = vmatmul.mubr.bf16.gmra.mrb[48].mxu0 %v3393_v34  ;;  %v1357_v7 = vshll.u32 %v4993_v9, 16  ;;  %v1363_v2 = vshll.u32 %v5012_v4, 16  ;;  %3875 = vmatpush3.bf16.msra.mxu1 %v4928_v26 }
  0xb1   : > { %v1338_v40 = vsel %vm4299_vm5, %v1333_v47, %v1337_v54  ;;  %v1513_v10 = vrot.slane %v4997_v29, 5  ;;  %2716 = vmatprep.mubr.bf16.mxu0 %v3402_v33  ;;  %v1345_v19 = vrot.slane %v1343_v43, 5  ;;  %v1517_v8 = vrot.slane %v5012_v4, 5  ;;  %v5044_v47 = vld [vmem:[%s4273_s28 + $0x88] sm:$0xf] }
  0xb2   : > { %v3417_v5 = vcombine.low %v1324_v53, %v1338_v40  ;;  %v1351_v39 = vrot.slane %v1349_v63, 5  ;;  %v1356_v35 = vrot.slane %v1354_v44, 4  ;;  %v1359_v54 = vrot.slane %v1357_v7, 5  ;;  %v5065_v40 = vld [vmem:[%s4273_s28 + $0x8c] sm:$0x1] }
  0xb3   : > { %v1365_v46 = vrot.slane %v1363_v2, 5  ;;  %v980_v56 = vshll.u32 %v4968_v24, 16  ;;  %v1346_v15 = vor.u32 %v1345_v19, %v1342_v42  ;;  %v994_v26 = vshll.u32 %v4974_v48, 16  ;;  %v5048_v42 = vld [vmem:[%s4273_s28 + $0x84] sm:$0x1] }
  0xb4   : > { %2805 = vmatprep.mubr.bf16.mxu1 %v3417_v5  ;;  %v3410_v55 = vcombine.low %v4987_v0, %v4993_v9  ;;  %v3289_v18 = vrot.slane %v3273_v61, 9  ;;  %v1360_v53 = vor.u32 %v1359_v54, %v1356_v35  ;;  %v1152_v58 = vrot.slane %v5021_v31, 5  ;;  %v5070_v19 = vld [vmem:[%s4273_s28 + $0x8c] sm:$0x1]  ;;  %v5076_v54 = vld [vmem:[%s4273_s28 + $0x94] sm:$0x1] }
  0xb5   : > { %2806 = vmatmul.mubr.bf16.gmra.mrb[48].mxu1 %v3409_v62  ;;  %v982_v11 = vrot.slane %v980_v56, 5  ;;  %v3290_v23 = vrot.slane %v3274_v14, 9  ;;  %v1347_v24 = vrot.slane %v1346_v15, 4  ;;  %v996_v34 = vrot.slane %v994_v26, 5  ;;  %v3275_v56 = vld [vmem:[%s4273_s28 + $0x88] sm:$0xe] }
  0xb6   : > { %v1156_v38 = vrot.slane %v5029_v52, 5  ;;  %v1368_v48 = vshrl.u32 %v5037_v3, 16  ;;  %v1361_v0 = vrot.slane %v1360_v53, 4  ;;  %v1153_v9 = vsel %vm4293_vm4, %v3289_v18, %v1152_v58  ;;  %v3276_v53 = vld [vmem:[%s4273_s28 + $0x90] sm:$0xe] }
  0xb7   : > { %v983_v62 = vsel %vm4299_vm5, %v4632_v1, %v982_v11  ;;  %v1371_v33 = vshll.u32 %v5037_v3, 16  ;;  %v1352_v43 = vsel %vm4299_vm5, %v1347_v24, %v1351_v39  ;;  %v997_v63 = vsel %vm4299_vm5, %v4645_v21, %v996_v34  ;;  %v5086_v34 = vld [vmem:[%s4273_s28 + $0x90] sm:$0xf] }
  0xb8   : > { %v1157_v44 = vsel %vm4293_vm4, %v3290_v23, %v1156_v38  ;;  %v1370_v1 = vrot.slane %v1368_v48, 4  ;;  %v1366_v7 = vsel %vm4299_vm5, %v1361_v0, %v1365_v46  ;;  %v3394_v2 = vcombine.low %v983_v62, %v997_v63  ;;  %v5093_v63 = vld [vmem:[%s4273_s28 + $0x94] sm:$0x1] }
  0xb9   : > { %v3403_v61 = vcombine.low %v1153_v9, %v1157_v44  ;;  %v1373_v5 = vrot.slane %v1371_v33, 5  ;;  %v3418_v39 = vcombine.low %v1352_v43, %v1366_v7  ;;  %v1377_v35 = vshll.u32 %v5048_v42, 16 }
  0xba   : > { %v1382_v21 = vshrl.u32 %v5044_v47, 16  ;;  %v1385_v14 = vshll.u32 %v5044_v47, 16  ;;  %2717 = vmatmul.mubr.bf16.gmra.mrb[52].mxu0 %v3394_v2  ;;  %v1391_v46 = vshll.u32 %v5065_v40, 16  ;;  %v1008_v26 = vshll.u32 %v5021_v31, 16  ;;  %v5089_v31 = vld [vmem:[%s4273_s28 + $0x98] sm:$0xf] }
  0xbb   : > { %v1374_v15 = vor.u32 %v1373_v5, %v1370_v1  ;;  %v1022_v18 = vshll.u32 %v5029_v52, 16  ;;  %2813 = vmatprep.mubr.bf16.mxu1 %v3418_v39  ;;  %2724 = vmatprep.mubr.bf16.mxu0 %v3403_v61  ;;  %v1379_v11 = vrot.slane %v1377_v35, 5  ;;  %v3411_v24 = vcombine.low %v5037_v3, %v5044_v47  ;;  %v5110_v39 = vld [vmem:[%s4273_s28 + $0x9c] sm:$0x1] }
  0xbc   : > { %v1384_v58 = vrot.slane %v1382_v21, 4  ;;  %v1387_v23 = vrot.slane %v1385_v14, 5  ;;  %v1393_v48 = vrot.slane %v1391_v46, 5  ;;  %v1010_v0 = vrot.slane %v1008_v26, 5 }
  0xbd   : > { %2814 = vmatmul.mubr.bf16.gmra.mrb[52].mxu1 %v3410_v55  ;;  %v1375_v38 = vrot.slane %v1374_v15, 4  ;;  %v1024_v62 = vrot.slane %v1022_v18, 5  ;;  %v3291_v9 = vrot.slane %v3275_v56, 9  ;;  %v1160_v33 = vrot.slane %v5070_v19, 5 }
  0xbe   : > { %v1388_v52 = vor.u32 %v1387_v23, %v1384_v58  ;;  %v3292_v43 = vrot.slane %v3276_v53, 9  ;;  %v1011_v55 = vsel %vm4299_vm5, %v4683_v6, %v1010_v0  ;;  %v1164_v44 = vrot.slane %v5076_v54, 5  ;;  %v3326_v0 = vld [vmem:[%s4273_s28 + $0x18] sm:$0xe] }
  0xbf   : > { %v1380_v3 = vsel %vm4299_vm5, %v1375_v38, %v1379_v11  ;;  %v1025_v47 = vsel %vm4299_vm5, %v4731_v59, %v1024_v62  ;;  %v1161_v2 = vsel %vm4293_vm4, %v3291_v9, %v1160_v33  ;;  %v1396_v61 = vshrl.u32 %v5086_v34, 16  ;;  %v3325_v11 = vld [vmem:[%s4273_s28 + $0x10] sm:$0xe] }
  0xc0   : > { %v1389_v1 = vrot.slane %v1388_v52, 4  ;;  %v3395_v7 = vcombine.low %v1011_v55, %v1025_v47  ;;  %v1165_v5 = vsel %vm4293_vm4, %v3292_v43, %v1164_v44  ;;  %v1399_v6 = vshll.u32 %v5086_v34, 16  ;;  %v3333_v43 = vld [vmem:[%s4273_s28 + $0x60] sm:$0xe]  ;;  %v3328_v44 = vld [vmem:[%s4273_s28 + $0x28] sm:$0xe] }
  0xc1   : > { %v1405_v35 = vshll.u32 %v5093_v63, 16  ;;  %v1410_v59 = vshrl.u32 %v5089_v31, 16  ;;  %v3404_v14 = vcombine.low %v1161_v2, %v1165_v5  ;;  %v1398_v56 = vrot.slane %v1396_v61, 4  ;;  %v3335_v61 = vld [vmem:[%s4273_s28 + $0x70] sm:$0xe] }
  0xc2   : > { %v1394_v21 = vsel %vm4299_vm5, %v1389_v1, %v1393_v48  ;;  %v1413_v15 = vshll.u32 %v5089_v31, 16  ;;  %2725 = vmatmul.mubr.bf16.gmra.mrb[56].mxu0 %v3395_v7  ;;  %v1401_v26 = vrot.slane %v1399_v6, 5  ;;  %v1419_v23 = vshll.u32 %v5110_v39, 16  ;;  %v3336_v5 = vld [vmem:[%s4273_s28 + $0x78] sm:$0xe] }
  0xc3   : > { %v3419_v46 = vcombine.low %v1380_v3, %v1394_v21  ;;  %v1407_v18 = vrot.slane %v1405_v35, 5  ;;  %v1412_v53 = vrot.slane %v1410_v59, 4  ;;  %2732 = vmatprep.mubr.bf16.mxu0 %v3404_v14  ;;  %v1034_v38 = vrot.slane %v1033_v27, 4  ;;  %v3334_v3 = vld [vmem:[%s4273_s28 + $0x68] sm:$0xe] }
  0xc4   : > { %v1415_v58 = vrot.slane %v1413_v15, 5  ;;  %v1036_v48 = vshll.u32 %v5070_v19, 16  ;;  %v1402_v62 = vor.u32 %v1401_v26, %v1398_v56  ;;  %v1048_v52 = vrot.slane %v1047_v13, 4  ;;  %v3327_v13 = vld [vmem:[%s4273_s28 + $0x20] sm:$0xe] }
  0xc5   : > { %2821 = vmatprep.mubr.bf16.mxu1 %v3419_v46  ;;  %v1050_v9 = vshll.u32 %v5076_v54, 16  ;;  %v3412_v33 = vcombine.low %v5086_v34, %v5089_v31  ;;  %v1421_v49 = vrot.slane %v1419_v23, 5  ;;  %v3341_v19 = vrot.slane %v3325_v11, 9  ;;  %v3329_v21 = vld [vmem:[%s4273_s28 + $0x30] sm:$0xe] }
  0xc6   : > { %2822 = vmatmul.mubr.bf16.gmra.mrb[56].mxu1 %v3411_v24  ;;  %v1416_v30 = vor.u32 %v1415_v58, %v1412_v53  ;;  %v1038_v27 = vrot.slane %v1036_v48, 5  ;;  %v1403_v55 = vrot.slane %v1402_v62, 4  ;;  %v1473_v50 = vrot.slane %v4694_v25, 5  ;;  %v3330_v14 = vld [vmem:[%s4273_s28 + $0x38] sm:$0xe] }
  0xc7   : > { %v1052_v47 = vrot.slane %v1050_v9, 5  ;;  %v3342_v36 = vrot.slane %v3326_v0, 9  ;;  %v1477_v24 = vrot.slane %v4705_v32, 5  ;;  %v3349_v31 = vrot.slane %v3333_v43, 9  ;;  %v3337_v11 = vld [vmem:[%s4273_s28 + $0x80] sm:$0xe] }
  0xc8   : > { %v1417_v54 = vrot.slane %v1416_v30, 4  ;;  %v1039_v34 = vsel %vm4299_vm5, %v1034_v38, %v1038_v27  ;;  %v1408_v1 = vsel %vm4299_vm5, %v1403_v55, %v1407_v18  ;;  %v1474_v25 = vsel %vm4293_vm4, %v3341_v19, %v1473_v50  ;;  %v3338_v0 = vld [vmem:[%s4273_s28 + $0x88] sm:$0xe]  ;;  %v3331_v9 = vld [vmem:[%s4273_s28 + $0x40] sm:$0xe] }
  0xc9   : > { %v1053_v7 = vsel %vm4299_vm5, %v1048_v52, %v1052_v47  ;;  %v1505_v2 = vrot.slane %v4936_v51, 5  ;;  %v1478_v35 = vsel %vm4293_vm4, %v3342_v36, %v1477_v24  ;;  %v3350_v59 = vrot.slane %v3334_v3, 9  ;;  %v3332_v43 = vld [vmem:[%s4273_s28 + $0x48] sm:$0xe]  ;;  %v3340_v3 = vld [vmem:[%s4273_s28 + $0x98] sm:$0xe] }
  0xca   : > { %v1422_v6 = vsel %vm4299_vm5, %v1417_v54, %v1421_v49  ;;  %v3396_v32 = vcombine.low %v1039_v34, %v1053_v7  ;;  %v3421_v15 = vcombine.low %v1474_v25, %v1478_v35  ;;  %v1509_v51 = vrot.slane %v4957_v28, 5  ;;  %v3339_v49 = vld [vmem:[%s4273_s28 + $0x90] sm:$0xe] }
  0xcb   : > { %v3420_v56 = vcombine.low %v1408_v1, %v1422_v6  ;;  %v1506_v46 = vsel %vm4293_vm4, %v3349_v31, %v1505_v2  ;;  %v3343_v26 = vrot.slane %v3327_v13, 9  ;;  %v3344_v17 = vrot.slane %v3328_v44, 9 }
  0xcc   : > { %2733 = vmatmul.mubr.bf16.gmra.mrb[60].mxu0 %v3396_v32  ;;  %v3351_v18 = vrot.slane %v3335_v61, 9  ;;  %v3352_v53 = vrot.slane %v3336_v5, 9  ;;  %v1510_v58 = vsel %vm4293_vm4, %v3350_v59, %v1509_v51  ;;  %v3345_v23 = vrot.slane %v3329_v21, 9 }
  0xcd   : > { %2829 = vmatprep.mubr.bf16.mxu1 %v3420_v56  ;;  %3844 = vmatprep.mubr.bf16.mxu0 %v3421_v15  ;;  %v1489_v38 = vrot.slane %v4801_v20, 5  ;;  %v3346_v48 = vrot.slane %v3330_v14, 9  ;;  %v3425_v28 = vcombine.low %v1506_v46, %v1510_v58  ;;  %v1482_v62 = vsel %vm4293_vm4, %v3343_v26, %v1481_v57 }
  0xce   : > { %2830 = vmatmul.mubr.bf16.gmra.mrb[60].mxu1 %v3412_v33  ;;  %v1486_v52 = vsel %vm4293_vm4, %v3344_v17, %v1485_v41  ;;  %v1514_v20 = vsel %vm4293_vm4, %v3351_v18, %v1513_v10  ;;  %v1518_v12 = vsel %vm4293_vm4, %v3352_v53, %v1517_v8  ;;  %v1493_v22 = vrot.slane %v4826_v45, 5 }
  0xcf   : > { %v3422_v33 = vcombine.low %v1482_v62, %v1486_v52  ;;  %v1490_v57 = vsel %vm4293_vm4, %v3345_v23, %v1489_v38  ;;  %3852 = vmatprep.mubr.bf16.mxu1 %v3425_v28  ;;  %v3426_v41 = vcombine.low %v1514_v20, %v1518_v12  ;;  %v3353_v29 = vrot.slane %v3337_v11, 9 }
  0xd0   : > { %v1521_v30 = vrot.slane %v5048_v42, 5  ;;  %v3354_v10 = vrot.slane %v3338_v0, 9  ;;  %v1494_v27 = vsel %vm4293_vm4, %v3346_v48, %v1493_v22  ;;  %v1525_v4 = vrot.slane %v5065_v40, 5 }
  0xd1   : > { %v3347_v19 = vrot.slane %v3331_v9, 9  ;;  %v1497_v8 = vrot.slane %v4865_v37, 5  ;;  %v3423_v55 = vcombine.low %v1490_v57, %v1494_v27  ;;  %v3348_v47 = vrot.slane %v3332_v43, 9 }
  0xd2   : > { %v1522_v45 = vsel %vm4293_vm4, %v3353_v29, %v1521_v30  ;;  %v1501_v50 = vrot.slane %v4892_v60, 5  ;;  %v1526_v42 = vsel %vm4293_vm4, %v3354_v10, %v1525_v4  ;;  %v3355_v36 = vrot.slane %v3339_v49, 9 }
  0xd3   : > { %v1529_v13 = vrot.slane %v5093_v63, 5  ;;  %v3427_v54 = vcombine.low %v1522_v45, %v1526_v42  ;;  %v3356_v40 = vrot.slane %v3340_v3, 9  ;;  %v1533_v34 = vrot.slane %v5110_v39, 5 }
  0xd4   : > { %3845 = vmatmul.mubr.bf16.vlgmr.msra.gmra.mrb[64].mxu0 %v3422_v33  ;;  %v1498_v37 = vsel %vm4293_vm4, %v3347_v19, %v1497_v8  ;;  %v1502_v24 = vsel %vm4293_vm4, %v3348_v47, %v1501_v50 }
  0xd5   : > { %3848 = vmatprep.mubr.bf16.mxu0 %v3423_v55  ;;  %v1530_v60 = vsel %vm4293_vm4, %v3355_v36, %v1529_v13  ;;  %v1534_v63 = vsel %vm4293_vm4, %v3356_v40, %v1533_v34  ;;  %v3424_v31 = vcombine.low %v1498_v37, %v1502_v24 }
  0xd6   : > { %3853 = vmatmul.mubr.bf16.vlgmr.msra.gmra.mrb[64].mxu1 %v3426_v41  ;;  %v3428_v44 = vcombine.low %v1530_v60, %v1534_v63 }
  0xd7   : > { %3856 = vmatprep.mubr.bf16.mxu1 %v3427_v54 }
  0xdc   : > { %3849 = vmatmul.mubr.bf16.gmra.mrb[68].mxu0 %v3424_v31 }
  0xde   : > { %3857 = vmatmul.mubr.bf16.gmra.mrb[68].mxu1 %v3428_v44 }
 0x119   : > { %v3572_v7 = vpop.f32.mrb[0].mxu0 }
 0x11a   : > { %v3636_v39 = vpop.f32.mrb[0].mxu1  ;;  %v3573_v61 = vpop.f32.mrb[1].mxu0 }
 0x11b   : > { %v3637_v1 = vpop.f32.mrb[1].mxu1  ;;  %v3574_v6 = vadd.f32 %v3573_v61, %v3572_v7  ;;  %v3575_v32 = vpop.f32.mrb[2].mxu0 }
 0x11c   : > { %v3638_v25 = vadd.f32 %v3637_v1, %v3636_v39  ;;  %v3639_v2 = vpop.f32.mrb[2].mxu1  ;;  %v3576_v59 = vpop.f32.mrb[3].mxu0 }
 0x11d   : > { %v3640_v5 = vpop.f32.mrb[3].mxu1  ;;  %v3577_v14 = vadd.f32 %v3576_v59, %v3575_v32 }
 0x11e   : > { %v3641_v35 = vadd.f32 %v3640_v5, %v3639_v2  ;;  %v5205_v21 = vadd.f32 %v3638_v25, %v3574_v6 }
 0x120   : > { %v5207_v16 = vadd.f32 %v3641_v35, %v3577_v14 }
 0x121   : > { %v3578_v15 = vpop.f32.mrb[4].mxu0 }
 0x122   : > { %v3642_v56 = vpop.f32.mrb[4].mxu1  ;;  %v3579_v51 = vpop.f32.mrb[5].mxu0 }
 0x123   : > { %v3643_v46 = vpop.f32.mrb[5].mxu1  ;;  %v3580_v18 = vadd.f32 %v3579_v51, %v3578_v15  ;;  %v3581_v53 = vpop.f32.mrb[6].mxu0 }
 0x124   : > { %v3644_v26 = vadd.f32 %v3643_v46, %v3642_v56  ;;  %v3645_v17 = vpop.f32.mrb[6].mxu1  ;;  %v3582_v58 = vpop.f32.mrb[7].mxu0 }
 0x125   : > { %v3646_v11 = vpop.f32.mrb[7].mxu1  ;;  %v3583_v48 = vadd.f32 %v3582_v58, %v3581_v53 }
 0x126   : > { %v3647_v23 = vadd.f32 %v3646_v11, %v3645_v17  ;;  %v5209_v38 = vadd.f32 %v3644_v26, %v3580_v18 }
 0x128   : > { %v5211_v0 = vadd.f32 %v3647_v23, %v3583_v48 }
 0x129   : > { %v3584_v62 = vpop.f32.mrb[8].mxu0 }
 0x12a   : > { %v3648_v28 = vpop.f32.mrb[8].mxu1  ;;  %v3585_v20 = vpop.f32.mrb[9].mxu0 }
 0x12b   : > { %v3649_v52 = vpop.f32.mrb[9].mxu1  ;;  %v3586_v12 = vadd.f32 %v3585_v20, %v3584_v62  ;;  %v3587_v57 = vpop.f32.mrb[10].mxu0 }
 0x12c   : > { %v3650_v9 = vadd.f32 %v3649_v52, %v3648_v28  ;;  %v3651_v33 = vpop.f32.mrb[10].mxu1  ;;  %v3588_v43 = vpop.f32.mrb[11].mxu0 }
 0x12d   : > { %v3652_v22 = vpop.f32.mrb[11].mxu1  ;;  %v3589_v30 = vadd.f32 %v3588_v43, %v3587_v57 }
 0x12e   : > { %v3653_v41 = vadd.f32 %v3652_v22, %v3651_v33  ;;  %v5213_v29 = vadd.f32 %v3650_v9, %v3586_v12 }
 0x130   : > { %v5215_v10 = vadd.f32 %v3653_v41, %v3589_v30 }
 0x131   : > { %v3590_v27 = vpop.f32.mrb[12].mxu0 }
 0x132   : > { %v3654_v49 = vpop.f32.mrb[12].mxu1  ;;  %v3591_v19 = vpop.f32.mrb[13].mxu0 }
 0x133   : > { %v3655_v4 = vpop.f32.mrb[13].mxu1  ;;  %v3592_v55 = vadd.f32 %v3591_v19, %v3590_v27  ;;  %v3593_v45 = vpop.f32.mrb[14].mxu0 }
 0x134   : > { %v3656_v8 = vadd.f32 %v3655_v4, %v3654_v49  ;;  %v3657_v3 = vpop.f32.mrb[14].mxu1  ;;  %v3594_v50 = vpop.f32.mrb[15].mxu0 }
 0x135   : > { %v3658_v47 = vpop.f32.mrb[15].mxu1  ;;  %v3595_v13 = vadd.f32 %v3594_v50, %v3593_v45 }
 0x136   : > { %v3659_v42 = vadd.f32 %v3658_v47, %v3657_v3  ;;  %v5217_v36 = vadd.f32 %v3656_v8, %v3592_v55 }
 0x138   : > { %v5219_v54 = vadd.f32 %v3659_v42, %v3595_v13 }
 0x13a   : > { %v3660_v40 = vpop.f32.mrb[16].mxu1  ;;  %v3596_v34 = vpop.f32.mrb[16].mxu0 }
 0x13b   : > { %v3661_v37 = vpop.f32.mrb[17].mxu1  ;;  %v3597_v24 = vpop.f32.mrb[17].mxu0 }
 0x13c   : > { %v3662_v60 = vadd.f32 %v3661_v37, %v3660_v40  ;;  %v3663_v63 = vpop.f32.mrb[18].mxu1  ;;  %v3598_v31 = vadd.f32 %v3597_v24, %v3596_v34  ;;  %v3599_v44 = vpop.f32.mrb[18].mxu0 }
 0x13d   : > { %v3664_v39 = vpop.f32.mrb[19].mxu1  ;;  %v3600_v1 = vpop.f32.mrb[19].mxu0 }
 0x13e   : > { %v3665_v7 = vadd.f32 %v3664_v39, %v3663_v63  ;;  %v5221_v25 = vadd.f32 %v3662_v60, %v3598_v31  ;;  %v3601_v2 = vadd.f32 %v3600_v1, %v3599_v44 }
 0x140   : > { %v5223_v61 = vadd.f32 %v3665_v7, %v3601_v2 }
 0x144   : > { %v3666_v5 = vpop.f32.mrb[20].mxu1  ;;  %v3602_v6 = vpop.f32.mrb[20].mxu0 }
 0x145   : > { %v3667_v32 = vpop.f32.mrb[21].mxu1  ;;  %v3603_v35 = vpop.f32.mrb[21].mxu0 }
 0x146   : > { %v3668_v59 = vadd.f32 %v3667_v32, %v3666_v5  ;;  %v3669_v14 = vpop.f32.mrb[22].mxu1  ;;  %v3604_v56 = vadd.f32 %v3603_v35, %v3602_v6  ;;  %v3605_v15 = vpop.f32.mrb[22].mxu0 }
 0x147   : > { %v3670_v46 = vpop.f32.mrb[23].mxu1  ;;  %v3606_v51 = vpop.f32.mrb[23].mxu0 }
 0x148   : > { %v3671_v26 = vadd.f32 %v3670_v46, %v3669_v14  ;;  %v5225_v17 = vadd.f32 %v3668_v59, %v3604_v56  ;;  %v3607_v18 = vadd.f32 %v3606_v51, %v3605_v15 }
 0x14a   : > { %v5227_v53 = vadd.f32 %v3671_v26, %v3607_v18 }
 0x14d   : > { %v3672_v11 = vpop.f32.mrb[24].mxu1 }
 0x14e   : > { %v3608_v58 = vpop.f32.mrb[24].mxu0  ;;  %v3673_v23 = vpop.f32.mrb[25].mxu1 }
 0x14f   : > { %v3609_v48 = vpop.f32.mrb[25].mxu0  ;;  %v3674_v28 = vadd.f32 %v3673_v23, %v3672_v11  ;;  %v3675_v62 = vpop.f32.mrb[26].mxu1 }
 0x150   : > { %v3610_v52 = vadd.f32 %v3609_v48, %v3608_v58  ;;  %v3611_v20 = vpop.f32.mrb[26].mxu0  ;;  %v3676_v9 = vpop.f32.mrb[27].mxu1 }
 0x151   : > { %v3612_v33 = vpop.f32.mrb[27].mxu0  ;;  %v3677_v12 = vadd.f32 %v3676_v9, %v3675_v62 }
 0x152   : > { %v5229_v57 = vadd.f32 %v3674_v28, %v3610_v52  ;;  %v3613_v22 = vadd.f32 %v3612_v33, %v3611_v20 }
 0x154   : > { %v5231_v43 = vadd.f32 %v3677_v12, %v3613_v22 }
 0x157   : > { %v3678_v41 = vpop.f32.mrb[28].mxu1 }
 0x158   : > { %v3614_v30 = vpop.f32.mrb[28].mxu0  ;;  %v3679_v49 = vpop.f32.mrb[29].mxu1 }
 0x159   : > { %v3615_v27 = vpop.f32.mrb[29].mxu0  ;;  %v3680_v4 = vadd.f32 %v3679_v49, %v3678_v41  ;;  %v3681_v19 = vpop.f32.mrb[30].mxu1 }
 0x15a   : > { %v3616_v8 = vadd.f32 %v3615_v27, %v3614_v30  ;;  %v3617_v3 = vpop.f32.mrb[30].mxu0  ;;  %v3682_v55 = vpop.f32.mrb[31].mxu1 }
 0x15b   : > { %v3618_v45 = vpop.f32.mrb[31].mxu0  ;;  %v3683_v47 = vadd.f32 %v3682_v55, %v3681_v19 }
 0x15c   : > { %v5233_v50 = vadd.f32 %v3680_v4, %v3616_v8  ;;  %v3619_v42 = vadd.f32 %v3618_v45, %v3617_v3 }
 0x15e   : > { %v5235_v13 = vadd.f32 %v3683_v47, %v3619_v42 }
 0x160   : > { %v3700_v40 = vpop.f32.mrb[32].mxu0 }
 0x161   : > { %v3701_v34 = vpop.f32.mrb[33].mxu0 }
 0x162   : > { %v3702_v37 = vadd.f32 %v3701_v34, %v3700_v40  ;;  %v3703_v24 = vpop.f32.mrb[34].mxu0 }
 0x163   : > { %v3704_v60 = vpop.f32.mrb[35].mxu0 }
 0x164   : > { %v2679_v63 = vadd.f32 %v3702_v37, %v5205_v21  ;;  %v3705_v31 = vadd.f32 %v3704_v60, %v3703_v24 }
 0x165   : > { %v3764_v44 = vpop.f32.mrb[32].mxu1 }
 0x166   : > { %v3765_v39 = vpop.f32.mrb[33].mxu1  ;;  %v2682_v1 = vadd.f32 %v3705_v31, %v5207_v16 }
 0x167   : > { %v3766_v7 = vadd.f32 %v3765_v39, %v3764_v44  ;;  %v3767_v2 = vpop.f32.mrb[34].mxu1 }
 0x168   : > { %v3768_v5 = vpop.f32.mrb[35].mxu1 }
 0x169   : > { %v3769_v6 = vadd.f32 %v3768_v5, %v3767_v2  ;;  %v5239_v32 = vadd.f32 %v3766_v7, %v2679_v63 }
 0x16b   : > { %v3706_v35 = vpop.f32.mrb[36].mxu0  ;;  %v5241_v59 = vadd.f32 %v3769_v6, %v2682_v1 }
 0x16c   : > { %v3707_v14 = vpop.f32.mrb[37].mxu0 }
 0x16d   : > { %v3708_v56 = vadd.f32 %v3707_v14, %v3706_v35  ;;  %v3709_v15 = vpop.f32.mrb[38].mxu0  ;;  %v3770_v46 = vpop.f32.mrb[36].mxu1 }
 0x16e   : > { %v3710_v51 = vpop.f32.mrb[39].mxu0  ;;  %v3771_v26 = vpop.f32.mrb[37].mxu1 }
 0x16f   : > { %v2687_v21 = vadd.f32 %v3708_v56, %v5209_v38  ;;  %v3711_v18 = vadd.f32 %v3710_v51, %v3709_v15  ;;  %v3772_v11 = vadd.f32 %v3771_v26, %v3770_v46  ;;  %v3773_v16 = vpop.f32.mrb[38].mxu1 }
 0x170   : > { %v3774_v23 = vpop.f32.mrb[39].mxu1 }
 0x171   : > { %v2690_v58 = vadd.f32 %v3711_v18, %v5211_v0  ;;  %v3775_v48 = vadd.f32 %v3774_v23, %v3773_v16  ;;  %v5245_v28 = vadd.f32 %v3772_v11, %v2687_v21 }
 0x173   : > { %v3712_v62 = vpop.f32.mrb[40].mxu0  ;;  %v5247_v20 = vadd.f32 %v3775_v48, %v2690_v58 }
 0x174   : > { %v3713_v52 = vpop.f32.mrb[41].mxu0 }
 0x175   : > { %v3714_v9 = vadd.f32 %v3713_v52, %v3712_v62  ;;  %v3715_v33 = vpop.f32.mrb[42].mxu0 }
 0x176   : > { %v3716_v12 = vpop.f32.mrb[43].mxu0  ;;  %v3776_v22 = vpop.f32.mrb[40].mxu1 }
 0x177   : > { %v2695_v38 = vadd.f32 %v3714_v9, %v5213_v29  ;;  %v3717_v41 = vadd.f32 %v3716_v12, %v3715_v33  ;;  %v3777_v30 = vpop.f32.mrb[41].mxu1 }
 0x178   : > { %v3778_v49 = vadd.f32 %v3777_v30, %v3776_v22  ;;  %v3779_v27 = vpop.f32.mrb[42].mxu1 }
 0x179   : > { %v2698_v0 = vadd.f32 %v3717_v41, %v5215_v10  ;;  %v3780_v4 = vpop.f32.mrb[43].mxu1 }
 0x17a   : > { %v3781_v19 = vadd.f32 %v3780_v4, %v3779_v27  ;;  %v5251_v8 = vadd.f32 %v3778_v49, %v2695_v38 }
 0x17b   : > { %v3718_v3 = vpop.f32.mrb[44].mxu0 }
 0x17c   : > { %v3719_v55 = vpop.f32.mrb[45].mxu0  ;;  %v5253_v45 = vadd.f32 %v3781_v19, %v2698_v0 }
 0x17d   : > { %v3720_v47 = vadd.f32 %v3719_v55, %v3718_v3  ;;  %v3721_v42 = vpop.f32.mrb[46].mxu0 }
 0x17e   : > { %v3782_v40 = vpop.f32.mrb[44].mxu1  ;;  %v3722_v34 = vpop.f32.mrb[47].mxu0 }
 0x17f   : > { %v2703_v29 = vadd.f32 %v3720_v47, %v5217_v36  ;;  %v3783_v37 = vpop.f32.mrb[45].mxu1  ;;  %v3723_v24 = vadd.f32 %v3722_v34, %v3721_v42 }
 0x180   : > { %v3784_v60 = vadd.f32 %v3783_v37, %v3782_v40  ;;  %v3785_v63 = vpop.f32.mrb[46].mxu1 }
 0x181   : > { %v2706_v10 = vadd.f32 %v3723_v24, %v5219_v54  ;;  %v3786_v31 = vpop.f32.mrb[47].mxu1 }
 0x182   : > { %v3787_v44 = vadd.f32 %v3786_v31, %v3785_v63  ;;  %v5257_v39 = vadd.f32 %v3784_v60, %v2703_v29 }
 0x183   : > { %v3724_v1 = vpop.f32.mrb[48].mxu0 }
 0x184   : > { %v3725_v7 = vpop.f32.mrb[49].mxu0  ;;  %v5259_v2 = vadd.f32 %v3787_v44, %v2706_v10 }
 0x185   : > { %v3726_v5 = vadd.f32 %v3725_v7, %v3724_v1  ;;  %v3727_v6 = vpop.f32.mrb[50].mxu0 }
 0x186   : > { %v3728_v35 = vpop.f32.mrb[51].mxu0 }
 0x187   : > { %v2711_v36 = vadd.f32 %v3726_v5, %v5221_v25  ;;  %v3729_v56 = vadd.f32 %v3728_v35, %v3727_v6 }
 0x188   : > { %v3788_v14 = vpop.f32.mrb[48].mxu1 }
 0x189   : > { %v3789_v15 = vpop.f32.mrb[49].mxu1  ;;  %v2714_v54 = vadd.f32 %v3729_v56, %v5223_v61 }
 0x18a   : > { %v3790_v46 = vadd.f32 %v3789_v15, %v3788_v14  ;;  %v3791_v51 = vpop.f32.mrb[50].mxu1 }
 0x18b   : > { %v3792_v21 = vpop.f32.mrb[51].mxu1 }
 0x18c   : > { %v3793_v26 = vadd.f32 %v3792_v21, %v3791_v51  ;;  %v5263_v18 = vadd.f32 %v3790_v46, %v2711_v36  ;;  %v5280_v51 = vld [vmem:[%s5374_s2] ss:$0 sm:$0xff] }
 0x18d   : > { %v3730_v11 = vpop.f32.mrb[52].mxu0 }
 0x18e   : > { %v5265_v16 = vadd.f32 %v3793_v26, %v2714_v54  ;;  %v3731_v58 = vpop.f32.mrb[53].mxu0 }
 0x18f   : > { %v3732_v48 = vadd.f32 %v3731_v58, %v3730_v11  ;;  %v3733_v62 = vpop.f32.mrb[54].mxu0 }
 0x190   : > { %v3794_v23 = vpop.f32.mrb[52].mxu1  ;;  %v3734_v9 = vpop.f32.mrb[55].mxu0 }
 0x191   : > { %v3795_v52 = vpop.f32.mrb[53].mxu1  ;;  %v2719_v25 = vadd.f32 %v3732_v48, %v5225_v17  ;;  %v3735_v22 = vadd.f32 %v3734_v9, %v3733_v62  ;;  %v5289_v9 = vld [vmem:[%s5375_s3] ss:$0 sm:$0xff] }
 0x192   : > { %v3796_v33 = vadd.f32 %v3795_v52, %v3794_v23  ;;  %v3797_v12 = vpop.f32.mrb[54].mxu1 }
 0x193   : > { %v3798_v38 = vpop.f32.mrb[55].mxu1  ;;  %v2722_v61 = vadd.f32 %v3735_v22, %v5227_v53 }
 0x194   : > { %v3799_v41 = vadd.f32 %v3798_v38, %v3797_v12  ;;  %v2816_v30 = vadd.f32 %v3796_v33, %v2719_v25 }
 0x195   : > { %v3736_v49 = vpop.f32.mrb[56].mxu0 }
 0x196   : > { %v2819_v27 = vadd.f32 %v3799_v41, %v2722_v61  ;;  %v3737_v0 = vpop.f32.mrb[57].mxu0 }
 0x197   : > { %v3738_v4 = vadd.f32 %v3737_v0, %v3736_v49  ;;  %v3739_v19 = vpop.f32.mrb[58].mxu0 }
 0x198   : > { %v3740_v55 = vpop.f32.mrb[59].mxu0 }
 0x199   : > { %v3800_v3 = vpop.f32.mrb[56].mxu1  ;;  %v2727_v47 = vadd.f32 %v3738_v4, %v5229_v57  ;;  %v3741_v40 = vadd.f32 %v3740_v55, %v3739_v19 }
 0x19a   : > { %v3801_v42 = vpop.f32.mrb[57].mxu1 }
 0x19b   : > { %v3802_v17 = vadd.f32 %v3801_v42, %v3800_v3  ;;  %v3803_v34 = vpop.f32.mrb[58].mxu1  ;;  %v2730_v29 = vadd.f32 %v3741_v40, %v5231_v43 }
 0x19c   : > { %v3804_v37 = vpop.f32.mrb[59].mxu1 }
 0x19d   : > { %v3805_v24 = vadd.f32 %v3804_v37, %v3803_v34  ;;  %v5271_v53 = vadd.f32 %v3802_v17, %v2727_v47 }
 0x19f   : > { %v3742_v60 = vpop.f32.mrb[60].mxu0  ;;  %v5273_v63 = vadd.f32 %v3805_v24, %v2730_v29 }
 0x1a0   : > { %v3743_v10 = vpop.f32.mrb[61].mxu0 }
 0x1a1   : > { %v3806_v31 = vpop.f32.mrb[60].mxu1  ;;  %v3744_v44 = vadd.f32 %v3743_v10, %v3742_v60  ;;  %v3745_v1 = vpop.f32.mrb[62].mxu0 }
 0x1a2   : > { %v3807_v7 = vpop.f32.mrb[61].mxu1  ;;  %v3746_v5 = vpop.f32.mrb[63].mxu0 }
 0x1a3   : > { %v2735_v57 = vadd.f32 %v3744_v44, %v5233_v50  ;;  %v3808_v6 = vadd.f32 %v3807_v7, %v3806_v31  ;;  %v3809_v35 = vpop.f32.mrb[62].mxu1  ;;  %v3747_v14 = vadd.f32 %v3746_v5, %v3745_v1 }
 0x1a4   : > { %v3810_v36 = vpop.f32.mrb[63].mxu1 }
 0x1a5   : > { %v2738_v43 = vadd.f32 %v3747_v14, %v5235_v13  ;;  %v3811_v56 = vadd.f32 %v3810_v36, %v3809_v35  ;;  %v2832_v15 = vadd.f32 %v3808_v6, %v2735_v57 }
 0x1a7   : > { %v3846_v46 = vpop.f32.mrb[64].mxu0  ;;  %v2835_v54 = vadd.f32 %v3811_v56, %v2738_v43 }
 0x1a8   : > { %v2881_v21 = vadd.f32 %v3846_v46, %v5245_v28  ;;  %v2872_v26 = vpop.f32.mrb[65].mxu0 }
 0x1a9   : > { %v3854_v50 = vpop.f32.mrb[64].mxu1  ;;  %v2873_v11 = vadd.f32 %v2872_v26, %v5239_v32  ;;  %v3847_v58 = vpop.f32.mrb[66].mxu0 }
 0x1aa   : > { %v2948_v23 = vmul.f32 %v5280_v51, %v2881_v21  ;;  %v2913_v13 = vadd.f32 %v3854_v50, %v2816_v30  ;;  %v2904_v48 = vpop.f32.mrb[65].mxu1  ;;  %v2884_v62 = vadd.f32 %v3847_v58, %v5247_v20  ;;  %v2875_v52 = vpop.f32.mrb[67].mxu0 }
 0x1ab   : > { %v2946_v28 = vmul.f32 %v5280_v51, %v2873_v11  ;;  %v2905_v25 = vadd.f32 %v2904_v48, %v5263_v18  ;;  %v3855_v33 = vpop.f32.mrb[66].mxu1  ;;  %v2876_v32 = vadd.f32 %v2875_v52, %v5241_v59 }
 0x1ac   : > { %v2956_v12 = vmul.f32 %v5280_v51, %v2913_v13  ;;  %v2949_v22 = vmul.f32 %v5280_v51, %v2884_v62  ;;  %v2916_v20 = vadd.f32 %v3855_v33, %v2819_v27  ;;  %v2907_v38 = vpop.f32.mrb[67].mxu1  ;;  %v2971_v49 = vadd.f32 %v5289_v9, %v2948_v23 }
 0x1ad   : > { %v2954_v61 = vmul.f32 %v5280_v51, %v2905_v25  ;;  %v2947_v41 = vmul.f32 %v5280_v51, %v2876_v32  ;;  %v2908_v30 = vadd.f32 %v2907_v38, %v5265_v16  ;;  %v2969_v0 = vadd.f32 %v5289_v9, %v2946_v28 }
 0x1ae   : > { %v2972_v18 = vadd.f32 %v5289_v9, %v2949_v22  ;;  %v2957_v59 = vmul.f32 %v5280_v51, %v2916_v20  ;;  %v2979_v3 = vadd.f32 %v5289_v9, %v2956_v12 }
 0x1af   : > { %v2970_v4 = vadd.f32 %v5289_v9, %v2947_v41  ;;  %v2955_v19 = vmul.f32 %v5280_v51, %v2908_v30  ;;  %v3850_v27 = vpop.f32.mrb[68].mxu0  ;;  %v2977_v40 = vadd.f32 %v5289_v9, %v2954_v61 }
 0x1b0   : > { %v3517_v55 = vpack.c.bf16 %v2972_v18, %v2971_v49  ;;  %v2980_v47 = vadd.f32 %v5289_v9, %v2957_v59  ;;  %v2897_v16 = vadd.f32 %v3850_v27, %v5257_v39  ;;  %v2888_v42 = vpop.f32.mrb[69].mxu0 }
 0x1b1   : > { %v3512_v17 = vpack.c.bf16 %v2970_v4, %v2969_v0  ;;  %v2978_v34 = vadd.f32 %v5289_v9, %v2955_v19  ;;  %v3858_v29 = vpop.f32.mrb[68].mxu1  ;;  %v2889_v37 = vadd.f32 %v2888_v42, %v5251_v8  ;;  %v3851_v24 = vpop.f32.mrb[70].mxu0 }
 0x1b2   : > { %3549 = vst [vmem:[%s5313_s15 + $0x8] sm:$0xff] %v3517_v55   ;;  %v3537_v60 = vpack.c.bf16 %v2980_v47, %v2979_v3  ;;  %v2952_v10 = vmul.f32 %v5280_v51, %v2897_v16  ;;  %v2929_v39 = vadd.f32 %v3858_v29, %v2832_v15  ;;  %v2920_v31 = vpop.f32.mrb[69].mxu1  ;;  %v2900_v44 = vadd.f32 %v3851_v24, %v5259_v2  ;;  %v2891_v1 = vpop.f32.mrb[71].mxu0 }
 0x1b3   : > { %3513 = vst [vmem:[%s5313_s15] sm:$0xff] %v3512_v17   ;;  %v3532_v7 = vpack.c.bf16 %v2978_v34, %v2977_v40  ;;  %v2950_v8 = vmul.f32 %v5280_v51, %v2889_v37  ;;  %v2921_v5 = vadd.f32 %v2920_v31, %v5271_v53  ;;  %v3859_v57 = vpop.f32.mrb[70].mxu1  ;;  %v2892_v6 = vadd.f32 %v2891_v1, %v5253_v45 }
 0x1b4   : > { %3553 = vst [vmem:[%s5313_s15 + $0x28] sm:$0xff] %v3537_v60   ;;  %v2960_v35 = vmul.f32 %v5280_v51, %v2929_v39  ;;  %v2953_v14 = vmul.f32 %v5280_v51, %v2900_v44  ;;  %v2932_v36 = vadd.f32 %v3859_v57, %v2835_v54  ;;  %v2923_v43 = vpop.f32.mrb[71].mxu1  ;;  %v2975_v53 = vadd.f32 %v5289_v9, %v2952_v10 }
 0x1b5   : > { %3552 = vst [vmem:[%s5313_s15 + $0x20] sm:$0xff] %v3532_v7   ;;  %v2958_v2 = vmul.f32 %v5280_v51, %v2921_v5  ;;  %v2951_v56 = vmul.f32 %v5280_v51, %v2892_v6  ;;  %v2924_v15 = vadd.f32 %v2923_v43, %v5273_v63  ;;  %v2973_v54 = vadd.f32 %v5289_v9, %v2950_v8 }
 0x1b6   : > { %v2976_v45 = vadd.f32 %v5289_v9, %v2953_v14  ;;  %v2961_v46 = vmul.f32 %v5280_v51, %v2932_v36  ;;  %v2983_v50 = vadd.f32 %v5289_v9, %v2960_v35 }
 0x1b7   : > { %v2974_v21 = vadd.f32 %v5289_v9, %v2951_v56  ;;  %v2959_v26 = vmul.f32 %v5280_v51, %v2924_v15  ;;  %v2981_v63 = vadd.f32 %v5289_v9, %v2958_v2  ;;  %3023 = sbr.rel (!%p4115_p6) target bundleno = 454 (0x1c6), region = 85 }
 0x1b8   : > { %v3527_v11 = vpack.c.bf16 %v2976_v45, %v2975_v53  ;;  %v2984_v58 = vadd.f32 %v5289_v9, %v2961_v46 }
 0x1b9   : > { %v3522_v23 = vpack.c.bf16 %v2974_v21, %v2973_v54  ;;  %v2982_v13 = vadd.f32 %v5289_v9, %v2959_v26  ;;  %v3049_v52 = vld [vmem:[%s5313_s15 + $0x8] sm:$0xff] (%p4115_p6)  }
 0x1ba   : > { %3551 = vst [vmem:[%s5313_s15 + $0x18] sm:$0xff] %v3527_v11   ;;  %v3547_v48 = vpack.c.bf16 %v2984_v58, %v2983_v50  ;;  %v3045_v51 = vld [vmem:[%s5313_s15] sm:$0xff] (%p4115_p6)   ;;  %3050 = vst [vmem:[%s3029_s9 + $0x8] sm:$0xff] (%p4115_p6), %v3049_v52  }
 0x1bb   : > { %3550 = vst [vmem:[%s5313_s15 + $0x10] sm:$0xff] %v3522_v23   ;;  %v3542_v62 = vpack.c.bf16 %v2982_v13, %v2981_v63  ;;  %v3065_v33 = vld [vmem:[%s5313_s15 + $0x28] sm:$0xff] (%p4115_p6)   ;;  %3046 = vst [vmem:[%s3029_s9] sm:$0xff] (%p4115_p6), %v3045_v51  }
 0x1bc   : > { %3555 = vst [vmem:[%s5313_s15 + $0x38] sm:$0xff] %v3547_v48   ;;  %v3061_v25 = vld [vmem:[%s5313_s15 + $0x20] sm:$0xff] (%p4115_p6)   ;;  %3066 = vst [vmem:[%s3029_s9 + $0x88] sm:$0xff] (%p4115_p6), %v3065_v33  }
 0x1bd   : > { %3554 = vst [vmem:[%s5313_s15 + $0x30] sm:$0xff] %v3542_v62   ;;  %3062 = vst [vmem:[%s3029_s9 + $0x80] sm:$0xff] (%p4115_p6), %v3061_v25  }
 0x1c1   : > { %v3057_v28 = vld [vmem:[%s5313_s15 + $0x18] sm:$0xff]  }
 0x1c2   : > { %v3053_v9 = vld [vmem:[%s5313_s15 + $0x10] sm:$0xff]   ;;  %3058 = vst [vmem:[%s3029_s9 + $0x18] sm:$0xff] %v3057_v28  }
 0x1c3   : > { %3054 = vst [vmem:[%s3029_s9 + $0x10] sm:$0xff] %v3053_v9   ;;  %v3073_v12 = vld [vmem:[%s5313_s15 + $0x38] sm:$0xff]  }
 0x1c4   : > { %v3069_v32 = vld [vmem:[%s5313_s15 + $0x30] sm:$0xff]   ;;  %3074 = vst [vmem:[%s3029_s9 + $0x98] sm:$0xff] %v3073_v12  }
 0x1c5   : > { %3070 = vst [vmem:[%s3029_s9 + $0x90] sm:$0xff] %v3069_v32  }
 0x1c6 PF: > { %s14_s19 = sadd.s32 1, %s4053_s19   ;;  %s5382_s15 = smov %s4041_s16 }
 0x1c7   : > { %p11_p11 = scmp.ge.s32.totalorder %s14_s19, 6   ;;  %s5383_s16 = smov %s4120_s25 }
 0x1c8   : > { %s5384_s17 = smov %s4049_s18  ;;  %s5385_s18 = smov %s5387_s20 }
 0x1c9   :  { %13 = sbr.rel (!%p11_p11) target bundleno = 3 (0x3), region = 160 }

</bundles_post_ra>
